<compile_context>
chip_gen: v7x
topology: tpu7x:2x2x1
jax: 0.10.0
libtpu: 0.0.40
codegen_flags: <defaults>
</compile_context>

<pallas_src>
import jax
import jax.numpy as jnp
import numpy as np
from jax.experimental import pallas as pl
from jax.experimental.pallas import tpu as pltpu

H = W = 64      # input spatial dims (hard-coded by the module: range(0, 64, 2))
HO = WO = 32    # output spatial dims (one index kept per adjacent pair)


def _sup_res3_kernel(hsel_ref, wblk_ref, x_ref, noise_ref, o_ref):
    # hsel_ref : (32, 64)          one-hot H ("randj") selector
    # wblk_ref : (NB*64, NB*32)    block-diagonal one-hot W ("randi") selector
    # x_ref    : (64, NB*64)       NB image planes packed along the lane axis
    # noise_ref: (32, NB*32)       pre-generated N(0,1) noise, same packing as out
    # o_ref    : (32, NB*32)
    xc = jnp.dot(hsel_ref[...], x_ref[...],
                 preferred_element_type=jnp.float32,
                 precision=jax.lax.Precision.HIGHEST)          # (32, NB*64)
    xs = jnp.dot(xc, wblk_ref[...],
                 preferred_element_type=jnp.float32,
                 precision=jax.lax.Precision.HIGHEST)          # (32, NB*32)
    o_ref[...] = (xs + 0.2 * noise_ref[...]).astype(o_ref.dtype)


def sup_res3_apply(x, randi, randj, noise, nb=8):
    """x: (B, C, 64, 64) f32; randi/randj: (32,) int32; noise: (B, C, 32, 32) f32."""
    B, C, h, w = x.shape
    assert h == H and w == W, "Sup_res3 hard-codes 64x64 spatial dims"
    N = B * C
    nb = max(1, min(nb, N))
    G = -(-N // nb)          # grid steps
    Np = G * nb              # padded plane count

    xf = x.reshape(N, H, W).astype(jnp.float32)
    nf = noise.reshape(N, HO, WO).astype(jnp.float32)
    if Np != N:
        xf = jnp.pad(xf, ((0, Np - N), (0, 0), (0, 0)))
        nf = jnp.pad(nf, ((0, Np - N), (0, 0), (0, 0)))

    # Lane-pack nb planes per grid step (layout plumbing in the wrapper).
    x_pk = xf.reshape(G, nb, H, W).transpose(0, 2, 1, 3).reshape(G * H, nb * W)
    n_pk = nf.reshape(G, nb, HO, WO).transpose(0, 2, 1, 3).reshape(G * HO, nb * WO)

    # One-hot selection matrices so the gather runs on the MXU (exact in f32).
    wsel = jax.nn.one_hot(randi, W, dtype=jnp.float32).T       # (64, 32): wsel[randi[p], p]=1
    hsel = jax.nn.one_hot(randj, H, dtype=jnp.float32)         # (32, 64): hsel[q, randj[q]]=1
    wblk = jnp.kron(jnp.eye(nb, dtype=jnp.float32), wsel)      # (nb*64, nb*32) block-diagonal

    out_pk = pl.pallas_call(
        _sup_res3_kernel,
        out_shape=jax.ShapeDtypeStruct((G * HO, nb * WO), jnp.float32),
        grid=(G,),
        in_specs=[
            pl.BlockSpec((HO, H), lambda g: (0, 0)),           # hsel (resident)
            pl.BlockSpec((nb * W, nb * WO), lambda g: (0, 0)),  # wblk (resident)
            pl.BlockSpec((H, nb * W), lambda g: (g, 0)),        # packed image planes
            pl.BlockSpec((HO, nb * WO), lambda g: (g, 0)),      # packed noise
        ],
        out_specs=pl.BlockSpec((HO, nb * WO), lambda g: (g, 0)),
        compiler_params=pltpu.CompilerParams(
            dimension_semantics=("parallel",)),
    )(hsel, wblk, x_pk, n_pk)

    out = (out_pk.reshape(G, HO, nb, WO)
           .transpose(0, 2, 1, 3)
           .reshape(Np, HO, WO)[:N]
           .reshape(B, C, HO, WO))
    # TODO(synk): torch `b` flag only controls cpu/cuda placement — no Pallas equivalent.
    return jnp.squeeze(out)


def sup_res3(x, key, nb=8):
    """Full module semantics: draw randi/randj (uniform over {h, h+1}) and noise."""
    B, C, _, _ = x.shape
    k_i, k_j, k_n = jax.random.split(key, 3)
    base = jnp.arange(0, H, 2, dtype=jnp.int32)
    randi = base + jax.random.bernoulli(k_i, 0.5, (WO,)).astype(jnp.int32)  # W indices
    randj = base + jax.random.bernoulli(k_j, 0.5, (HO,)).astype(jnp.int32)  # H indices
    noise = jax.random.normal(k_n, (B, C, HO, WO), dtype=jnp.float32)
    return sup_res3_apply(x, randi, randj, noise, nb=nb)


if __name__ == "__main__":
    key = jax.random.PRNGKey(0)
    k_x, k_i, k_j, k_n = jax.random.split(key, 4)
    B, C = 2, 4  # spatial dims must be 64x64 (module hard-codes them)
    x = jax.random.normal(k_x, (B, C, H, W), dtype=jnp.float32)

    base = jnp.arange(0, H, 2, dtype=jnp.int32)
    randi = base + jax.random.bernoulli(k_i, 0.5, (WO,)).astype(jnp.int32)
    randj = base + jax.random.bernoulli(k_j, 0.5, (HO,)).astype(jnp.int32)
    noise = jax.random.normal(k_n, (B, C, HO, WO), dtype=jnp.float32)

    y = sup_res3_apply(x, randi, randj, noise, nb=8)
    jax.block_until_ready(y)
    assert y.shape == (B, C, HO, WO), y.shape

    # Reference: exact jittered gather + scaled noise.
    ref = x[:, :, randj, :][:, :, :, randi] + 0.2 * noise
    np.testing.assert_allclose(np.asarray(y), np.asarray(jnp.squeeze(ref)),
                               atol=1e-4, rtol=1e-4)
    print("KERNEL_OK")
</pallas_src>

<mosaic_0001>
module attributes {stable_mosaic.version = 11 : i64} {
  func.func @_sup_res3_kernel(%arg0: i32, %arg1: memref<32x64xf32, #tpu.memory_space<vmem>>, %arg2: memref<512x256xf32, #tpu.memory_space<vmem>>, %arg3: memref<64x512xf32, #tpu.memory_space<vmem>>, %arg4: memref<32x256xf32, #tpu.memory_space<vmem>>, %arg5: memref<32x256xf32, #tpu.memory_space<vmem>>) attributes {dimension_semantics = [#tpu.dimension_semantics<parallel>], iteration_bounds = array<i64: 1>, scalar_prefetch = 0 : i64, scratch_operands = 0 : i64, tpu.core_type = #tpu.core_type<tc>, window_params = [{pipeline_mode = #tpu.pipeline_mode<synchronous>, transform_indices = @transform_0, window_bounds = array<i64: 32, 64>}, {pipeline_mode = #tpu.pipeline_mode<synchronous>, transform_indices = @transform_1, window_bounds = array<i64: 512, 256>}, {transform_indices = @transform_2, window_bounds = array<i64: 64, 512>}, {transform_indices = @transform_3, window_bounds = array<i64: 32, 256>}, {transform_indices = @transform_4, window_bounds = array<i64: 32, 256>}]} {
    %c0 = arith.constant 0 : index
    %c0_0 = arith.constant 0 : index
    %0 = vector.load %arg1[%c0, %c0_0] : memref<32x64xf32, #tpu.memory_space<vmem>>, vector<32x64xf32>
    %c0_1 = arith.constant 0 : index
    %c0_2 = arith.constant 0 : index
    %1 = vector.load %arg3[%c0_1, %c0_2] : memref<64x512xf32, #tpu.memory_space<vmem>>, vector<64x512xf32>
    %cst = arith.constant dense<0.000000e+00> : vector<32x512xf32>
    %2 = tpu.matmul %0, %1, %cst {dimension_numbers = #tpu.dot_dimension_numbers<[1], [0], [0], [1], [0, 0, 1, 1], [], []>, precision = #tpu.contract_precision<fp32>} : vector<32x64xf32>, vector<64x512xf32>, vector<32x512xf32> -> vector<32x512xf32>
    %c0_3 = arith.constant 0 : index
    %c0_4 = arith.constant 0 : index
    %3 = vector.load %arg2[%c0_3, %c0_4] : memref<512x256xf32, #tpu.memory_space<vmem>>, vector<512x256xf32>
    %cst_5 = arith.constant dense<0.000000e+00> : vector<32x256xf32>
    %4 = tpu.matmul %2, %3, %cst_5 {dimension_numbers = #tpu.dot_dimension_numbers<[1], [0], [0], [1], [0, 0, 1, 1], [], []>, precision = #tpu.contract_precision<fp32>} : vector<32x512xf32>, vector<512x256xf32>, vector<32x256xf32> -> vector<32x256xf32>
    %c0_6 = arith.constant 0 : index
    %c0_7 = arith.constant 0 : index
    %5 = vector.load %arg4[%c0_6, %c0_7] : memref<32x256xf32, #tpu.memory_space<vmem>>, vector<32x256xf32>
    %cst_8 = arith.constant 2.000000e-01 : f32
    %6 = vector.broadcast %cst_8 : f32 to vector<32x256xf32>
    %7 = arith.mulf %6, %5 : vector<32x256xf32>
    %8 = arith.addf %4, %7 : vector<32x256xf32>
    %c0_9 = arith.constant 0 : index
    %c0_10 = arith.constant 0 : index
    %9 = vector.load %arg5[%c0_9, %c0_10] : memref<32x256xf32, #tpu.memory_space<vmem>>, vector<32x256xf32>
    tpu.vector_store %arg5[%c0_9, %c0_10], %8 {strides = array<i32>} : memref<32x256xf32, #tpu.memory_space<vmem>>, vector<32x256xf32>,
    return
  }
  func.func @transform_0(%arg0: i32) -> (i32, i32) {
    %c0_i32 = arith.constant 0 : i32
    %c0_i32_0 = arith.constant 0 : i32
    %c0_i32_1 = arith.constant 0 : i32
    return %c0_i32, %c0_i32_0 : i32, i32
  }
  func.func @transform_1(%arg0: i32) -> (i32, i32) {
    %c0_i32 = arith.constant 0 : i32
    %c0_i32_0 = arith.constant 0 : i32
    %c0_i32_1 = arith.constant 0 : i32
    return %c0_i32, %c0_i32_0 : i32, i32
  }
  func.func @transform_2(%arg0: i32) -> (i32, i32) {
    %c0_i32 = arith.constant 0 : i32
    %c0_i32_0 = arith.constant 0 : i32
    return %arg0, %c0_i32 : i32, i32
  }
  func.func @transform_3(%arg0: i32) -> (i32, i32) {
    %c0_i32 = arith.constant 0 : i32
    %c0_i32_0 = arith.constant 0 : i32
    return %arg0, %c0_i32 : i32, i32
  }
  func.func @transform_4(%arg0: i32) -> (i32, i32) {
    %c0_i32 = arith.constant 0 : i32
    %c0_i32_0 = arith.constant 0 : i32
    return %arg0, %c0_i32 : i32, i32
  }
}

</mosaic_0001>

<bundles_post_ra>
// kernel: tpu_custom_call.1
= control target key start
LH: loop header
LB: loop body
LE: loop exit
PB: predicated region body
PF: predicated region fallthrough
CT: control target
= control target key end

     0   :  { %9 = vsyncpa [#allocation3], 0  ;;  %s9606_s0 = inlined_call_operand.hbm [shape: f32[32,64], index: 0, kind: input, shape index: {}]   ;;  %s9607_s1 = inlined_call_operand.hbm [shape: f32[512,256], index: 1, kind: input, shape index: {}]   ;;  %s9608_s2 = inlined_call_operand.hbm [shape: f32[64,512], index: 2, kind: input, shape index: {}]   ;;  %s9609_s3 = inlined_call_operand.hbm [shape: f32[32,256], index: 3, kind: input, shape index: {}]   ;;  %s9610_s4 = inlined_call_operand.hbm [shape: f32[32,256], index: 4, kind: output, shape index: {}]  }
   0x1   :  { %10 = vsyncpa [#allocation6], 0 }
   0x2   :  { %11 = vsyncpa [#allocation9], 0 }
   0x3   :  { %12 = vsyncpa [#allocation4], 0  ;;  %s6087_s15 = smov [#allocation5]   ;;  %s5969_s19 = scalar_lea.hbm %s9607_s1, 16384 }
   0x4   :  { %s30_s16 = sshll.u32 %s6087_s15, 4  ;;  %p5970_p0 = scmp.ne.s32.totalorder %s9607_s1, %s5969_s19  ;;  %s31_s16 = int_to_ptr.vmem [resolvable:$true] %s30_s16 }
   0x5   :  { %p5973_p1 = scmp.lt.u32.totalorder %s5969_s19, %s9607_s1 }
   0x7   :  { %p5975_p2 = pnand %p5973_p1, %p5970_p0 }
   0x9   :  { %5978 = shalt.err (!%p5975_p2)
}
   0xa   :  { %s5979_s24 = scalar_lea.vmem %s31_s16, 16384  ;;  %p5984_p4 = scmp.lt.s32.totalorder %s31_s16, %s31_s16 }
   0xb   :  { %p5980_p3 = scmp.ne.s32.totalorder %s31_s16, %s5979_s24  ;;  %p5985_p5 = scmp.lt.s32.totalorder %s5979_s24, %s5979_s24 }
   0xd   :  { %p5986_p6 = por %p5985_p5, %p5984_p4 }
   0xf   :  { %p5987_p7 = pnand %p5986_p6, %p5980_p3 }
  0x11   :  { %5990 = shalt.err (!%p5987_p7)
}
  0x12   :  { %s6088_s25 = smov 256   ;;  %s6089_s26 = smov 16  }
  0x13   :  { %36 = dma.hbm_to_vmem [thread:$0]  %s9607_s1, 16384, %s31_s16, [#allocation6], %s6088_s25, %s6088_s25, %s6089_s26  }
  0x14   :  { %s6090_s29 = smov [#allocation2]   ;;  %s5991_s7 = scalar_lea.hbm %s9606_s0, 512 }
  0x15   :  { %s18_s30 = sshll.u32 %s6090_s29, 4  ;;  %p5992_p8 = scmp.ne.s32.totalorder %s9606_s0, %s5991_s7  ;;  %s19_s30 = int_to_ptr.vmem [resolvable:$true] %s18_s30 }
  0x16   :  { %p5995_p9 = scmp.lt.u32.totalorder %s5991_s7, %s9606_s0 }
  0x18   :  { %p5997_p10 = pnand %p5995_p9, %p5992_p8 }
  0x1a   :  { %6000 = shalt.err (!%p5997_p10)
}
  0x1b   :  { %s6001_s12 = scalar_lea.vmem %s19_s30, 512  ;;  %p6006_p12 = scmp.lt.s32.totalorder %s19_s30, %s19_s30 }
  0x1c   :  { %p6002_p11 = scmp.ne.s32.totalorder %s19_s30, %s6001_s12  ;;  %p6007_p13 = scmp.lt.s32.totalorder %s6001_s12, %s6001_s12 }
  0x1e   :  { %p6008_p0 = por %p6007_p13, %p6006_p12 }
  0x20   :  { %p6009_p1 = pnand %p6008_p0, %p6002_p11 }
  0x22   :  { %6012 = shalt.err (!%p6009_p1)
}
  0x23   :  { %s6091_s1 = smov 128   ;;  %s6092_s13 = smov 8  }
  0x24   :  { %24 = dma.hbm_to_vmem [thread:$0]  %s9606_s0, 512, %s19_s30, [#allocation3], %s6091_s1, %s6091_s1, %s6092_s13  }
  0x25   :  { %s6093_s16 = smov [#allocation7]   ;;  %s6013_s20 = scalar_lea.hbm %s9608_s2, 4096 }
  0x26   :  { %s42_s17 = sshll.u32 %s6093_s16, 4  ;;  %p6014_p2 = scmp.ne.s32.totalorder %s9608_s2, %s6013_s20  ;;  %s43_s17 = int_to_ptr.vmem [resolvable:$true] %s42_s17 }
  0x27   :  { %p6017_p3 = scmp.lt.u32.totalorder %s6013_s20, %s9608_s2 }
  0x29   :  { %p6019_p4 = pnand %p6017_p3, %p6014_p2 }
  0x2b   :  { %6022 = shalt.err (!%p6019_p4)
}
  0x2c   :  { %s6023_s27 = scalar_lea.vmem %s43_s17, 4096  ;;  %p6028_p6 = scmp.lt.s32.totalorder %s43_s17, %s43_s17 }
  0x2d   :  { %p6024_p5 = scmp.ne.s32.totalorder %s43_s17, %s6023_s27  ;;  %p6029_p7 = scmp.lt.s32.totalorder %s6023_s27, %s6023_s27 }
  0x2f   :  { %p6030_p8 = por %p6029_p7, %p6028_p6 }
  0x31   :  { %p6031_p9 = pnand %p6030_p8, %p6024_p5 }
  0x33   :  { %6034 = shalt.err (!%p6031_p9)
}
  0x34   :  { %s6094_s0 = smov 512   ;;  %s6095_s28 = smov 32  }
  0x35   :  { %48 = dma.hbm_to_vmem [thread:$0]  %s9608_s2, 4096, %s43_s17, [#allocation6], %s6094_s0, %s6094_s0, %s6095_s28  }
  0x36   :  { %s6096_s5 = smov [#allocation8]   ;;  %s6035_s9 = scalar_lea.hbm %s9609_s3, 1024 }
  0x37   :  { %s54_s6 = sshll.u32 %s6096_s5, 4  ;;  %p6036_p10 = scmp.ne.s32.totalorder %s9609_s3, %s6035_s9  ;;  %s55_s6 = int_to_ptr.vmem [resolvable:$true] %s54_s6 }
  0x38   :  { %p6039_p11 = scmp.lt.u32.totalorder %s6035_s9, %s9609_s3 }
  0x3a   :  { %p6041_p12 = pnand %p6039_p11, %p6036_p10 }
  0x3c   :  { %6044 = shalt.err (!%p6041_p12)
}
  0x3d   :  { %s6045_s13 = scalar_lea.vmem %s55_s6, 1024  ;;  %p6050_p0 = scmp.lt.s32.totalorder %s55_s6, %s55_s6 }
  0x3e   :  { %p6046_p13 = scmp.ne.s32.totalorder %s55_s6, %s6045_s13  ;;  %p6051_p1 = scmp.lt.s32.totalorder %s6045_s13, %s6045_s13 }
  0x40   :  { %p6052_p2 = por %p6051_p1, %p6050_p0 }
  0x42   :  { %p6053_p3 = pnand %p6052_p2, %p6046_p13 }
  0x44   :  { %6056 = shalt.err (!%p6053_p3)
}
  0x45   :  { %60 = dma.hbm_to_vmem [thread:$0]  %s9609_s3, 1024, %s55_s6, [#allocation9], %s6088_s25, %s6088_s25, %s6089_s26  }
  0x46   :  { %6079 = dma.done.wait [#allocation3], 512  }
  0x47   :  { %6080 = vsyncadd [#allocation3], 4294966784 }
  0x48   :  { %6081 = dma.done.wait [#allocation6], 20480  }
  0x49   :  { %6082 = vsyncadd [#allocation6], 4294946816 }
  0x4a   :  { %6083 = dma.done.wait [#allocation9], 1024  }
  0x4b   :  { %6084 = vsyncadd [#allocation9], 4294966272  ;;  %v9613_v0 = vmov 0.0   ;;  %v78_v1 = vld [vmem:[#allocation7 + $0x8] sm:$0xff]  ;;  %v80_v3 = vld [vmem:[#allocation7 + $0x18] sm:$0xff]  ;;  %vm109_vm0 = vcmask 523264  }
  0x4c   :  { %202 = vmatprep.mubr.f32.mxu0 %v9613_v0  ;;  %996 = vmatprep.mubr.f32.mxu1 %v9613_v0  ;;  %v82_v2 = vld [vmem:[#allocation7 + $0x28] sm:$0xff]  ;;  %v122_v4 = vand.u32 4294901760, %v78_v1  ;;  %v84_v6 = vld [vmem:[#allocation7 + $0x38] sm:$0xff]  ;;  %v916_v7 = vand.u32 4294901760, %v80_v3  ;;  %v77_v8 = vld [vmem:[#allocation7] sm:$0xff]  ;;  %s6098_s3 = smov [#allocation10]  }
  0x4d   :  { %v126_v5 = vand.u32 4294901760, %v82_v2  ;;  %v81_v9 = vld [vmem:[#allocation7 + $0x20] sm:$0xff]  ;;  %v920_v10 = vand.u32 4294901760, %v84_v6  ;;  %v124_v11 = vand.u32 4294901760, %v77_v8  ;;  %v79_v13 = vld [vmem:[#allocation7 + $0x10] sm:$0xff]  ;;  %v86_v15 = vld [vmem:[#allocation7 + $0x48] sm:$0xff] }
  0x4e   :  { %v128_v12 = vand.u32 4294901760, %v81_v9  ;;  %v83_v14 = vld [vmem:[#allocation7 + $0x30] sm:$0xff]  ;;  %v6182_v17 = vsub.f32 %v78_v1, %v122_v4  ;;  %v6186_v19 = vsub.f32 %v80_v3, %v916_v7  ;;  %v90_v20 = vld [vmem:[#allocation7 + $0x68] sm:$0xff]  ;;  %v88_v21 = vld [vmem:[#allocation7 + $0x58] sm:$0xff]  ;;  %v918_v29 = vand.u32 4294901760, %v79_v13  ;;  %s4807_s15 = sshll.u32 %s6098_s3, 4  ;;  %s4808_s15 = int_to_ptr.vmem [resolvable:$true] %s4807_s15 }
  0x4f   :  { %v6180_v16 = vpack.c.bf16 %v126_v5, %v122_v4  ;;  %v6184_v18 = vsub.f32 %v82_v2, %v126_v5  ;;  %v92_v22 = vld [vmem:[#allocation7 + $0x78] sm:$0xff]  ;;  %v6188_v23 = vpack.c.bf16 %v920_v10, %v916_v7  ;;  %v6190_v24 = vsub.f32 %v84_v6, %v920_v10  ;;  %v85_v27 = vld [vmem:[#allocation7 + $0x40] sm:$0xff]  ;;  %v87_v37 = vld [vmem:[#allocation7 + $0x50] sm:$0xff]  ;;  %s6057_s16 = scalar_lea.vmem %s4808_s15, 1024  ;;  %p6062_p5 = scmp.lt.s32.totalorder %s4808_s15, %s4808_s15 }
  0x50   :  { %v6192_v25 = vpack.c.bf16 %v128_v12, %v124_v11  ;;  %v6194_v26 = vsub.f32 %v77_v8, %v124_v11  ;;  %v6197_v28 = vsub.f32 %v81_v9, %v128_v12  ;;  %v922_v30 = vand.u32 4294901760, %v83_v14  ;;  %v89_v32 = vld [vmem:[#allocation7 + $0x60] sm:$0xff]  ;;  %v91_v38 = vld [vmem:[#allocation7 + $0x70] sm:$0xff]  ;;  %v94_v43 = vld [vmem:[#allocation7 + $0x88] sm:$0xff]  ;;  %p6058_p4 = scmp.ne.s32.totalorder %s4808_s15, %s6057_s16  ;;  %p6063_p6 = scmp.lt.s32.totalorder %s6057_s16, %s6057_s16 }
  0x51   :  { %4822 = vmatprep.subr.bf16.mxu0 %v6180_v16  ;;  %v130_v31 = vand.u32 4294901760, %v86_v15  ;;  %4918 = vmatprep.subr.bf16.mxu1 %v6188_v23  ;;  %v134_v33 = vand.u32 4294901760, %v90_v20  ;;  %v924_v34 = vand.u32 4294901760, %v88_v21  ;;  %v928_v35 = vand.u32 4294901760, %v92_v22  ;;  %v98_v44 = vld [vmem:[#allocation7 + $0xa8] sm:$0xff]  ;;  %v96_v45 = vld [vmem:[#allocation7 + $0x98] sm:$0xff] }
  0x52   :  { %4824 = vmatpush1.bf16.msra.mxu0 %v6192_v25  ;;  %v132_v36 = vand.u32 4294901760, %v85_v27  ;;  %v6201_v39 = vpack.c.bf16 %v922_v30, %v918_v29  ;;  %v6203_v40 = vsub.f32 %v79_v13, %v918_v29  ;;  %v6205_v41 = vsub.f32 %v83_v14, %v922_v30  ;;  %v100_v50 = vld [vmem:[#allocation7 + $0xb8] sm:$0xff]  ;;  %v93_v59 = vld [vmem:[#allocation7 + $0x80] sm:$0xff]  ;;  %v95_v2 = vld [vmem:[#allocation7 + $0x90] sm:$0xff]  ;;  %p6064_p7 = por %p6063_p6, %p6062_p5 }
  0x53   :  { %v6207_v42 = vsub.f32 %v86_v15, %v130_v31  ;;  %v6209_v46 = vpack.c.bf16 %v134_v33, %v130_v31  ;;  %v6211_v47 = vsub.f32 %v90_v20, %v134_v33  ;;  %v6213_v48 = vpack.c.bf16 %v928_v35, %v924_v34  ;;  %v97_v60 = vld [vmem:[#allocation7 + $0xa0] sm:$0xff]  ;;  %v99_v3 = vld [vmem:[#allocation7 + $0xb0] sm:$0xff]  ;;  %v102_v4 = vld [vmem:[#allocation7 + $0xc8] sm:$0xff] }
  0x54   :  { %v6215_v49 = vsub.f32 %v88_v21, %v924_v34  ;;  %4920 = vmatpush1.bf16.msra.mxu1 %v6201_v39  ;;  %v6218_v51 = vsub.f32 %v92_v22, %v928_v35  ;;  %v136_v52 = vand.u32 4294901760, %v89_v32  ;;  %v6220_v53 = vsub.f32 %v85_v27, %v132_v36  ;;  %v106_v9 = vld [vmem:[#allocation7 + $0xe8] sm:$0xff]  ;;  %v104_v10 = vld [vmem:[#allocation7 + $0xd8] sm:$0xff]  ;;  %v101_v33 = vld [vmem:[#allocation7 + $0xc0] sm:$0xff]  ;;  %p6065_p8 = pnand %p6064_p7, %p6058_p4 }
  0x55   :  { %10245 = vst [vmem:[#allocation15_spill] sm:$0xff] %v6213_v48  ;;  %v926_v54 = vand.u32 4294901760, %v87_v37  ;;  %4826 = vmatprep.subr.bf16.mxu0 %v6209_v46  ;;  %4922 = vmatprep.subr.bf16.mxu1 %v6213_v48  ;;  %v930_v55 = vand.u32 4294901760, %v91_v38  ;;  %v138_v56 = vand.u32 4294901760, %v94_v43  ;;  %v142_v57 = vand.u32 4294901760, %v98_v44  ;;  %v108_v11 = vld [vmem:[#allocation7 + $0xf8] sm:$0xff] }
  0x56   :  { %v932_v58 = vand.u32 4294901760, %v96_v45  ;;  %v6224_v61 = vpack.c.bf16 %v136_v52, %v132_v36  ;;  %v6226_v62 = vsub.f32 %v89_v32, %v136_v52  ;;  %v936_v1 = vand.u32 4294901760, %v100_v50 }
  0x57   :  { %v6228_v63 = vsub.f32 %v87_v37, %v926_v54  ;;  %v6230_v5 = vpack.c.bf16 %v930_v55, %v926_v54  ;;  %v6232_v6 = vsub.f32 %v91_v38, %v930_v55  ;;  %v6234_v7 = vpack.c.bf16 %v142_v57, %v138_v56  ;;  %v105_v38 = vld [vmem:[#allocation7 + $0xe0] sm:$0xff] }
  0x58   :  { %10246 = vst [vmem:[#allocation16_spill] sm:$0xff] %v6224_v61  ;;  %v6236_v8 = vsub.f32 %v94_v43, %v138_v56  ;;  %4828 = vmatpush1.bf16.msra.mxu0 %v6224_v61  ;;  %v6239_v12 = vsub.f32 %v98_v44, %v142_v57  ;;  %v6241_v13 = vpack.c.bf16 %v936_v1, %v932_v58  ;;  %v140_v20 = vand.u32 4294901760, %v93_v59  ;;  %v103_v43 = vld [vmem:[#allocation7 + $0xd0] sm:$0xff]  ;;  %v73_v55 = vld [vmem:[#allocation2] sm:$0xff] }
  0x59   :  { %10247 = vst [vmem:[#allocation17_spill] sm:$0xff] %v6230_v5  ;;  %10248 = vst [vmem:[#allocation18_spill] sm:$0xff] %v6234_v7  ;;  %v6243_v14 = vsub.f32 %v96_v45, %v932_v58  ;;  %v6245_v15 = vsub.f32 %v100_v50, %v936_v1  ;;  %4924 = vmatpush1.bf16.msra.mxu1 %v6230_v5  ;;  %4830 = vmatprep.subr.bf16.mxu0 %v6234_v7  ;;  %v144_v21 = vand.u32 4294901760, %v97_v60  ;;  %v107_v44 = vld [vmem:[#allocation7 + $0xf0] sm:$0xff] }
  0x5a   :  { %10249 = vst [vmem:[#allocation19_spill] sm:$0xff] %v6241_v13  ;;  %v934_v22 = vand.u32 4294901760, %v95_v2  ;;  %v938_v27 = vand.u32 4294901760, %v99_v3  ;;  %4926 = vmatprep.subr.bf16.mxu1 %v6241_v13  ;;  %v146_v29 = vand.u32 4294901760, %v102_v4  ;;  %v150_v30 = vand.u32 4294901760, %v106_v9 }
  0x5b   :  { %v940_v31 = vand.u32 4294901760, %v104_v10  ;;  %v944_v32 = vand.u32 4294901760, %v108_v11  ;;  %v6250_v34 = vpack.c.bf16 %v144_v21, %v140_v20  ;;  %v6252_v35 = vsub.f32 %v93_v59, %v140_v20 }
  0x5c   :  { %v6254_v36 = vsub.f32 %v97_v60, %v144_v21  ;;  %v6256_v37 = vpack.c.bf16 %v938_v27, %v934_v22  ;;  %v6258_v45 = vsub.f32 %v95_v2, %v934_v22  ;;  %v6260_v50 = vsub.f32 %v99_v3, %v938_v27 }
  0x5d   :  { %10250 = vst [vmem:[#allocation20_spill] sm:$0xff] %v6250_v34  ;;  %v6262_v52 = vpack.c.bf16 %v150_v30, %v146_v29  ;;  %v6264_v54 = vsub.f32 %v102_v4, %v146_v29  ;;  %4832 = vmatpush1.bf16.msra.mxu0 %v6250_v34  ;;  %v6268_v56 = vsub.f32 %v106_v9, %v150_v30  ;;  %v148_v59 = vand.u32 4294901760, %v101_v33 }
  0x5e   :  { %10251 = vst [vmem:[#allocation21_spill] sm:$0xff] %v6256_v37  ;;  %4928 = vmatpush1.bf16.msra.mxu1 %v6256_v37  ;;  %v6270_v57 = vpack.c.bf16 %v944_v32, %v940_v31  ;;  %v6272_v58 = vsub.f32 %v104_v10, %v940_v31  ;;  %v6275_v60 = vsub.f32 %v108_v11, %v944_v32  ;;  %v152_v1 = vand.u32 4294901760, %v105_v38 }
  0x5f   :  { %10252 = vst [vmem:[#allocation22_spill] sm:$0xff] %v6262_v52  ;;  %4834 = vmatprep.subr.bf16.mxu0 %v6262_v52  ;;  %v942_v2 = vand.u32 4294901760, %v103_v43  ;;  %v946_v3 = vand.u32 4294901760, %v107_v44  ;;  %v6278_v4 = vsub.f32 %v101_v33, %v148_v59  ;;  %v111_v20 = vsel %vm109_vm0, %v73_v55, 0 }
  0x60   :  { %10253 = vst [vmem:[#allocation23_spill] sm:$0xff] %v6270_v57  ;;  %10254 = vst [vmem:[#allocation24_spill] sm:$0xff] %v6275_v60  ;;  %4930 = vmatprep.subr.bf16.mxu1 %v6270_v57  ;;  %v9612_v9 = vand.u32 4294901760, %v6182_v17  ;;  %v9611_v21 = vand.u32 4294901760, %v6184_v18  ;;  %v6283_v10 = vpack.c.bf16 %v152_v1, %v148_v59  ;;  %v6285_v22 = vsub.f32 %v105_v38, %v152_v1 }
  0x61   :  { %v6287_v27 = vpack.c.bf16 %v946_v3, %v942_v2  ;;  %v6289_v11 = vsub.f32 %v103_v43, %v942_v2  ;;  %v6291_v29 = vsub.f32 %v107_v44, %v946_v3  ;;  %v6293_v30 = vand.u32 4294901760, %v111_v20 }
  0x62   :  { %10255 = vst [vmem:[#allocation25_spill] sm:$0xff] %v6283_v10  ;;  %v250_v31 = vsub.f32 %v6182_v17, %v9612_v9  ;;  %v262_v32 = vsub.f32 %v6184_v18, %v9611_v21  ;;  %4836 = vmatpush1.bf16.msra.mxu0 %v6283_v10  ;;  %v9615_v33 = vand.u32 4294901760, %v6186_v19  ;;  %v9618_v38 = vand.u32 4294901760, %v6190_v24 }
  0x63   :  { %10256 = vst [vmem:[#allocation26_spill] sm:$0xff] %v6287_v27  ;;  %10257 = vst [vmem:[#allocation27_spill] sm:$0xff] %v6293_v30  ;;  %4932 = vmatpush1.bf16.msra.mxu1 %v6287_v27  ;;  %v9625_v43 = vand.u32 4294901760, %v6194_v26  ;;  %v9626_v44 = vand.u32 4294901760, %v6197_v28  ;;  %v6308_v55 = vsub.f32 %v111_v20, %v6293_v30  ;;  %v9631_v2 = vand.u32 4294901760, %v6203_v40 }
  0x64   :  { %v251_v59 = vand.u32 4294901760, %v250_v31  ;;  %v263_v1 = vand.u32 4294901760, %v262_v32  ;;  %v1044_v3 = vsub.f32 %v6186_v19, %v9615_v33  ;;  %v1056_v21 = vsub.f32 %v6190_v24, %v9618_v38  ;;  %v74_v31 = vld [vmem:[#allocation2 + $0x8] sm:$0xff] }
  0x65   :  { %v256_v9 = vsub.f32 %v6194_v26, %v9625_v43  ;;  %v268_v20 = vsub.f32 %v6197_v28, %v9626_v44  ;;  %v6324_v32 = vand.u32 4294901760, %v6308_v55  ;;  %v1050_v33 = vsub.f32 %v6203_v40, %v9631_v2 }
  0x66   :  { %v4837_v0 = vpack.c.bf16 %v263_v1, %v251_v59  ;;  %v9638_v27 = vand.u32 4294901760, %v6205_v41  ;;  %v1045_v38 = vand.u32 4294901760, %v1044_v3  ;;  %v1057_v10 = vand.u32 4294901760, %v1056_v21 }
  0x67   :  { %10258 = vst [vmem:[#allocation28_spill] sm:$0xff] %v6324_v32  ;;  %v257_v57 = vand.u32 4294901760, %v256_v9  ;;  %v269_v37 = vand.u32 4294901760, %v268_v20  ;;  %v206_v43 = vsub.f32 %v6308_v55, %v6324_v32  ;;  %v1051_v44 = vand.u32 4294901760, %v1050_v33 }
  0x68   :  { %4838 = vmatprep.subr.bf16.mxu0 %v4837_v0  ;;  %v1062_v52 = vsub.f32 %v6205_v41, %v9638_v27  ;;  %v114_v59 = vsel %vm109_vm0, %v74_v31, 0  ;;  %v4933_v1 = vpack.c.bf16 %v1057_v10, %v1045_v38  ;;  %v9636_v3 = vand.u32 4294901760, %v6207_v42 }
  0x69   :  { %v4839_v34 = vpack.c.bf16 %v269_v37, %v257_v57  ;;  %v6336_v2 = vand.u32 4294901760, %v114_v59  ;;  %v207_v21 = vand.u32 4294901760, %v206_v43  ;;  %v9635_v20 = vand.u32 4294901760, %v6211_v47 }
  0x6a   :  { %v1063_v9 = vand.u32 4294901760, %v1062_v52  ;;  %v9634_v32 = vand.u32 4294901760, %v6215_v49  ;;  %4934 = vmatprep.subr.bf16.mxu1 %v4933_v1  ;;  %v274_v33 = vsub.f32 %v6207_v42, %v9636_v3  ;;  %v9637_v37 = vand.u32 4294901760, %v6218_v51 }
  0x6b   :  { %v6342_v0 = vsub.f32 %v114_v59, %v6336_v2  ;;  %v9641_v57 = vand.u32 4294901760, %v6220_v53  ;;  %208 = vmatmul.mubr.f32.vlgmr.msra.gmra.mrb[0].mxu0 %v207_v21  ;;  %1002 = vmatmul.mubr.f32.vlgmr.msra.gmra.mrb[0].mxu1 %v207_v21  ;;  %v286_v52 = vsub.f32 %v6211_v47, %v9635_v20  ;;  %v9646_v43 = vand.u32 4294901760, %v6226_v62 }
  0x6c   :  { %v4935_v10 = vpack.c.bf16 %v1063_v9, %v1051_v44  ;;  %v1068_v38 = vsub.f32 %v6215_v49, %v9634_v32  ;;  %4840 = vmatpush1.bf16.msra.mxu0 %v4839_v34  ;;  %v10260_v31 = vmov 0.0   ;;  %v275_v1 = vand.u32 4294901760, %v274_v33  ;;  %v75_v9 = vld [vmem:[#allocation2 + $0x10] sm:$0xff] }
  0x6d   :  { %10259 = vst [vmem:[#allocation29_spill] sm:$0xff] %v6342_v0  ;;  %213 = vmatprep.mubr.f32.mxu0 %v10260_v31  ;;  %v6358_v59 = vand.u32 4294901760, %v6342_v0  ;;  %v1080_v44 = vsub.f32 %v6218_v51, %v9637_v37  ;;  %v280_v21 = vsub.f32 %v6220_v53, %v9641_v57  ;;  %1007 = vmatprep.mubr.f32.mxu1 %v10260_v31  ;;  %v287_v32 = vand.u32 4294901760, %v286_v52 }
  0x6e   :  { %4936 = vmatpush1.bf16.msra.mxu1 %v4935_v10  ;;  %v1069_v34 = vand.u32 4294901760, %v1068_v38  ;;  %v292_v20 = vsub.f32 %v6226_v62, %v9646_v43  ;;  %v9653_v33 = vand.u32 4294901760, %v6228_v63  ;;  %v9652_v13 = vand.u32 4294901760, %v6232_v6 }
  0x6f   :  { %10261 = vst [vmem:[#allocation30_spill] sm:$0xff] %v6358_v59  ;;  %v217_v3 = vsub.f32 %v6342_v0, %v6358_v59  ;;  %v1081_v37 = vand.u32 4294901760, %v1080_v44  ;;  %v281_v27 = vand.u32 4294901760, %v280_v21  ;;  %v4841_v57 = vpack.c.bf16 %v287_v32, %v275_v1 }
  0x70   :  { %v293_v5 = vand.u32 4294901760, %v292_v20  ;;  %v1074_v10 = vsub.f32 %v6228_v63, %v9653_v33  ;;  %v117_v52 = vsel %vm109_vm0, %v75_v9, 0  ;;  %v1086_v43 = vsub.f32 %v6232_v6, %v9652_v13 }
  0x71   :  { %v218_v38 = vand.u32 4294901760, %v217_v3  ;;  %v4937_v7 = vpack.c.bf16 %v1081_v37, %v1069_v34  ;;  %v6381_v61 = vand.u32 4294901760, %v117_v52  ;;  %4842 = vmatprep.subr.bf16.mxu0 %v4841_v57  ;;  %v9650_v32 = vand.u32 4294901760, %v6236_v8 }
  0x72   :  { %v4843_v44 = vpack.c.bf16 %v293_v5, %v281_v27  ;;  %v1075_v21 = vand.u32 4294901760, %v1074_v10  ;;  %v9649_v20 = vand.u32 4294901760, %v6239_v12  ;;  %v1087_v1 = vand.u32 4294901760, %v1086_v43 }
  0x73   :  { %219 = vmatmul.mubr.f32.gmra.mrb[2].mxu0 %v218_v38  ;;  %1013 = vmatmul.mubr.f32.gmra.mrb[2].mxu1 %v218_v38  ;;  %v6386_v9 = vsub.f32 %v117_v52, %v6381_v61  ;;  %v9651_v3 = vand.u32 4294901760, %v6243_v14  ;;  %v9654_v37 = vand.u32 4294901760, %v6245_v15  ;;  %v298_v5 = vsub.f32 %v6236_v8, %v9650_v32 }
  0x74   :  { %4938 = vmatprep.subr.bf16.mxu1 %v4937_v7  ;;  %4844 = vmatpush1.bf16.msra.mxu0 %v4843_v44  ;;  %v310_v27 = vsub.f32 %v6239_v12, %v9649_v20  ;;  %v9659_v57 = vand.u32 4294901760, %v6252_v35  ;;  %v9660_v43 = vand.u32 4294901760, %v6254_v36  ;;  %v4939_v34 = vpack.c.bf16 %v1087_v1, %v1075_v21  ;;  %v76_v20 = vld [vmem:[#allocation2 + $0x18] sm:$0xff] }
  0x75   :  { %10262 = vst [vmem:[#allocation31_spill] sm:$0xff] %v6386_v9  ;;  %224 = vmatprep.mubr.f32.mxu0 %v10260_v31  ;;  %1018 = vmatprep.mubr.f32.mxu1 %v10260_v31  ;;  %v6401_v7 = vand.u32 4294901760, %v6386_v9  ;;  %v1092_v10 = vsub.f32 %v6243_v14, %v9651_v3  ;;  %v1104_v52 = vsub.f32 %v6245_v15, %v9654_v37  ;;  %v299_v38 = vand.u32 4294901760, %v298_v5 }
  0x76   :  { %v311_v44 = vand.u32 4294901760, %v310_v27  ;;  %v304_v21 = vsub.f32 %v6252_v35, %v9659_v57  ;;  %v316_v1 = vsub.f32 %v6254_v36, %v9660_v43  ;;  %4940 = vmatpush1.bf16.msra.mxu1 %v4939_v34  ;;  %v9668_v33 = vand.u32 4294901760, %v6258_v45 }
  0x77   :  { %10263 = vst [vmem:[#allocation32_spill] sm:$0xff] %v6401_v7  ;;  %v228_v32 = vsub.f32 %v6386_v9, %v6401_v7  ;;  %v1093_v3 = vand.u32 4294901760, %v1092_v10  ;;  %v1105_v13 = vand.u32 4294901760, %v1104_v52  ;;  %v9665_v59 = vand.u32 4294901760, %v6260_v50 }
  0x78   :  { %v4845_v37 = vpack.c.bf16 %v311_v44, %v299_v38  ;;  %v305_v5 = vand.u32 4294901760, %v304_v21  ;;  %v317_v27 = vand.u32 4294901760, %v316_v1  ;;  %v1098_v43 = vsub.f32 %v6258_v45, %v9668_v33 }
  0x79   :  { %v229_v48 = vand.u32 4294901760, %v228_v32  ;;  %v4941_v57 = vpack.c.bf16 %v1105_v13, %v1093_v3  ;;  %v120_v34 = vsel %vm109_vm0, %v76_v20, 0  ;;  %v1110_v10 = vsub.f32 %v6260_v50, %v9665_v59 }
  0x7a   :  { %4846 = vmatprep.subr.bf16.mxu0 %v4845_v37  ;;  %v4847_v0 = vpack.c.bf16 %v317_v27, %v305_v5  ;;  %v6426_v52 = vand.u32 4294901760, %v120_v34  ;;  %v9664_v38 = vand.u32 4294901760, %v6264_v54  ;;  %v1099_v32 = vand.u32 4294901760, %v1098_v43 }
  0x7b   :  { %230 = vmatmul.mubr.f32.gmra.mrb[4].mxu0 %v229_v48  ;;  %1024 = vmatmul.mubr.f32.gmra.mrb[4].mxu1 %v229_v48  ;;  %v9663_v13 = vand.u32 4294901760, %v6268_v56  ;;  %v9666_v3 = vand.u32 4294901760, %v6272_v58  ;;  %v9667_v44 = vand.u32 4294901760, %v6275_v60  ;;  %v1111_v20 = vand.u32 4294901760, %v1110_v10 }
  0x7c   :  { %10264 = vst [vmem:[#allocation33_spill] sm:$0xff] %v6426_v52  ;;  %4942 = vmatprep.subr.bf16.mxu1 %v4941_v57  ;;  %4848 = vmatpush1.bf16.msra.mxu0 %v4847_v0  ;;  %v6433_v37 = vsub.f32 %v120_v34, %v6426_v52  ;;  %v322_v21 = vsub.f32 %v6264_v54, %v9664_v38  ;;  %v9673_v1 = vand.u32 4294901760, %v6278_v4  ;;  %v9676_v43 = vand.u32 4294901760, %v6285_v22 }
  0x7d   :  { %235 = vmatprep.mubr.f32.mxu0 %v10260_v31  ;;  %1029 = vmatprep.mubr.f32.mxu1 %v10260_v31  ;;  %v334_v48 = vsub.f32 %v6268_v56, %v9663_v13  ;;  %v1116_v0 = vsub.f32 %v6272_v58, %v9666_v3  ;;  %v1128_v57 = vsub.f32 %v6275_v60, %v9667_v44 }
  0x7e   :  { %v4943_v5 = vpack.c.bf16 %v1111_v20, %v1099_v32  ;;  %v6452_v27 = vand.u32 4294901760, %v6433_v37  ;;  %v323_v34 = vand.u32 4294901760, %v322_v21  ;;  %v328_v10 = vsub.f32 %v6278_v4, %v9673_v1 }
  0x7f   :  { %v335_v13 = vand.u32 4294901760, %v334_v48  ;;  %v1117_v38 = vand.u32 4294901760, %v1116_v0  ;;  %v1129_v59 = vand.u32 4294901760, %v1128_v57  ;;  %v340_v3 = vsub.f32 %v6285_v22, %v9676_v43  ;;  %v6639_v43 = vld [vmem:[#allocation5 + $0x58] sm:$0xff] }
  0x80   :  { %10265 = vst [vmem:[#allocation34_spill] sm:$0xff] %v6452_v27  ;;  %4944 = vmatpush1.bf16.msra.mxu1 %v4943_v5  ;;  %v239_v44 = vsub.f32 %v6433_v37, %v6452_v27  ;;  %v329_v32 = vand.u32 4294901760, %v328_v10  ;;  %v9675_v20 = vand.u32 4294901760, %v6289_v11  ;;  %v9674_v21 = vand.u32 4294901760, %v6291_v29  ;;  %10309 = vst [vmem:[#allocation60_spill] sm:$0xff] %v6639_v43 }
  0x81   :  { %v4849_v33 = vpack.c.bf16 %v335_v13, %v323_v34  ;;  %v4945_v7 = vpack.c.bf16 %v1129_v59, %v1117_v38  ;;  %v341_v9 = vand.u32 4294901760, %v340_v3  ;;  %v4853_v57 = vpack.c.bf16 %v6184_v18, %v6182_v17 }
  0x82   :  { %v240_v1 = vand.u32 4294901760, %v239_v44  ;;  %v1122_v48 = vsub.f32 %v6289_v11, %v9675_v20  ;;  %v1134_v0 = vsub.f32 %v6291_v29, %v9674_v21  ;;  %v4949_v38 = vpack.c.bf16 %v6190_v24, %v6186_v19  ;;  %v6545_v21 = vld [vmem:[#allocation5 + $0x28] sm:$0xff] }
  0x83   :  { %4850 = vmatprep.subr.bf16.mxu0 %v4849_v33  ;;  %4946 = vmatprep.subr.bf16.mxu1 %v4945_v7  ;;  %v4851_v5 = vpack.c.bf16 %v341_v9, %v329_v32  ;;  %v4855_v3 = vpack.c.bf16 %v6197_v28, %v6194_v26  ;;  %v4857_v33 = vpack.c.bf16 %v6211_v47, %v6207_v42  ;;  %v6480_v9 = vld [vmem:[#allocation5 + $0x8] sm:$0xff]  ;;  %v10268_v34 = vand.u32 4294901760, %v6184_v18 }
  0x84   :  { %241 = vmatmul.mubr.f32.gmra.mrb[6].mxu0 %v240_v1  ;;  %1035 = vmatmul.mubr.f32.gmra.mrb[6].mxu1 %v240_v1  ;;  %v1123_v13 = vand.u32 4294901760, %v1122_v48  ;;  %v1135_v59 = vand.u32 4294901760, %v1134_v0  ;;  %10266 = vst [vmem:[#allocation35_spill] sm:$0xff] %v6480_v9  ;;  %v4951_v7 = vpack.c.bf16 %v6205_v41, %v6203_v40  ;;  %v10267_v1 = vand.u32 4294901760, %v6182_v17  ;;  %10279 = vst [vmem:[#allocation40_spill] sm:$0xff] %v6545_v21 }
  0x85   :  { %4852 = vmatpush1.bf16.msra.mxu0 %v4851_v5  ;;  %391 = vmatprep.mubr.f32.mxu0 %v10260_v31  ;;  %v10269_v32 = vand.u32 4294901760, %v6186_v19  ;;  %v10270_v48 = vand.u32 4294901760, %v6190_v24  ;;  %v4953_v5 = vpack.c.bf16 %v6218_v51, %v6215_v49  ;;  %v10272_v17 = vand.u32 4294901760, %v6197_v28  ;;  %v6521_v28 = vld [vmem:[#allocation5] sm:$0xff] }
  0x86   :  { %v4947_v44 = vpack.c.bf16 %v1135_v59, %v1123_v13  ;;  %1185 = vmatprep.mubr.f32.mxu1 %v10260_v31  ;;  %4854 = vmatprep.subr.bf16.mxu0 %v4853_v57  ;;  %v6489_v10 = vpack.c.bf16 %v10268_v34, %v10267_v1  ;;  %v6497_v57 = vld [vmem:[#allocation5 + $0x18] sm:$0xff]  ;;  %v10271_v13 = vand.u32 4294901760, %v6194_v26  ;;  %v10273_v59 = vand.u32 4294901760, %v6203_v40  ;;  %10275 = vst [vmem:[#allocation36_spill] sm:$0xff] %v6521_v28  ;;  %v6531_v34 = vld [vmem:[#allocation5 + $0x10] sm:$0xff]  ;;  %v6589_v1 = vld [vmem:[#allocation5 + $0x20] sm:$0xff] }
  0x87   :  { %v6495_v0 = vpack.c.bf16 %v10270_v48, %v10269_v32  ;;  %v10274_v19 = vand.u32 4294901760, %v6205_v41  ;;  %v9682_v26 = vand.u32 4294901760, %v6480_v9  ;;  %v4955_v40 = vpack.c.bf16 %v6232_v6, %v6228_v63  ;;  %10276 = vst [vmem:[#allocation37_spill] sm:$0xff] %v6531_v34  ;;  %v6533_v32 = vld [vmem:[#allocation5 + $0x200] sm:$0xff]  ;;  %10292 = vst [vmem:[#allocation49_spill] sm:$0xff] %v6589_v1 }
  0x88   :  { %4948 = vmatpush1.bf16.msra.mxu1 %v4947_v44  ;;  %393 = vmatmul.mubr.f32.vlgmr.msra.gmra.mrb[0].mxu0 %v6293_v30  ;;  %v6505_v18 = vpack.c.bf16 %v10272_v17, %v10271_v13  ;;  %v6513_v44 = vld [vmem:[#allocation5 + $0x208] sm:$0xff]  ;;  %v4861_v41 = vpack.c.bf16 %v6239_v12, %v6236_v8  ;;  %10277 = vst [vmem:[#allocation38_spill] sm:$0xff] %v6533_v32 }
  0x89   :  { %4950 = vmatprep.subr.bf16.mxu1 %v4949_v38  ;;  %4856 = vmatpush1.bf16.msra.mxu0 %v4855_v3  ;;  %v6511_v24 = vpack.c.bf16 %v10274_v19, %v10273_v59  ;;  %v4859_v38 = vpack.c.bf16 %v6226_v62, %v6220_v53  ;;  %v6519_v3 = vld [vmem:[#allocation5 + $0x218] sm:$0xff]  ;;  %v4863_v48 = vpack.c.bf16 %v6254_v36, %v6252_v35  ;;  %v6543_v19 = vld [vmem:[#allocation5 + $0x210] sm:$0xff] }
  0x8a   :  { %398 = vmatprep.mubr.f32.mxu0 %v10260_v31  ;;  %4858 = vmatprep.subr.bf16.mxu0 %v4857_v33  ;;  %v4957_v33 = vpack.c.bf16 %v6245_v15, %v6243_v14  ;;  %v4959_v13 = vpack.c.bf16 %v6260_v50, %v6258_v45  ;;  %v4865_v17 = vpack.c.bf16 %v6268_v56, %v6264_v54  ;;  %v6557_v59 = vld [vmem:[#allocation5 + $0x38] sm:$0xff] }
  0x8b   :  { %1187 = vmatmul.mubr.f32.vlgmr.msra.gmra.mrb[0].mxu1 %v6293_v30  ;;  %10278 = vst [vmem:[#allocation39_spill] sm:$0xff] %v6543_v19  ;;  %v6553_v20 = vsub.f32 %v6480_v9, %v9682_v26  ;;  %10281 = vst [vmem:[#allocation42_spill] sm:$0xff] %v6557_v59  ;;  %v6559_v30 = vld [vmem:[#allocation5 + $0x228] sm:$0xff] }
  0x8c   :  { %4952 = vmatpush1.bf16.msra.mxu1 %v4951_v7  ;;  %1192 = vmatprep.mubr.f32.mxu1 %v10260_v31  ;;  %v4961_v7 = vpack.c.bf16 %v6275_v60, %v6272_v58  ;;  %10282 = vst [vmem:[#allocation43_spill] sm:$0xff] %v6559_v30  ;;  %v10285_v60 = vand.u32 4294901760, %v6513_v44 }
  0x8d   :  { %400 = vmatmul.mubr.f32.gmra.mrb[2].mxu0 %v6336_v2  ;;  %4954 = vmatprep.subr.bf16.mxu1 %v4953_v5  ;;  %10280 = vst [vmem:[#allocation41_spill] sm:$0xff] %v6553_v20  ;;  %v10283_v5 = vand.u32 4294901760, %v6497_v57  ;;  %v6574_v20 = vld [vmem:[#allocation5 + $0x238] sm:$0xff] }
  0x8e   :  { %4860 = vmatpush1.bf16.msra.mxu0 %v4859_v38  ;;  %405 = vmatprep.mubr.f32.mxu0 %v10260_v31  ;;  %v6570_v26 = vsub.f32 %v6513_v44, %v10285_v60  ;;  %10287 = vst [vmem:[#allocation46_spill] sm:$0xff] %v6574_v20  ;;  %v10288_v38 = vand.u32 4294901760, %v6519_v3 }
  0x8f   :  { %v6565_v27 = vsub.f32 %v6497_v57, %v10283_v5  ;;  %1194 = vmatmul.mubr.f32.gmra.mrb[2].mxu1 %v6336_v2  ;;  %4862 = vmatprep.subr.bf16.mxu0 %v4861_v41  ;;  %v10290_v5 = vand.u32 4294901760, %v6521_v28  ;;  %v10294_v41 = vand.u32 4294901760, %v6531_v34 }
  0x90   :  { %10286 = vst [vmem:[#allocation45_spill] sm:$0xff] %v6570_v26  ;;  %v6580_v9 = vsub.f32 %v6519_v3, %v10288_v38  ;;  %v6591_v26 = vld [vmem:[#allocation5 + $0x30] sm:$0xff]  ;;  %4956 = vmatpush1.bf16.msra.mxu1 %v4955_v40  ;;  %1199 = vmatprep.mubr.f32.mxu1 %v10260_v31  ;;  %v4867_v40 = vpack.c.bf16 %v6285_v22, %v6278_v4 }
  0x91   :  { %10284 = vst [vmem:[#allocation44_spill] sm:$0xff] %v6565_v27  ;;  %v6585_v27 = vsub.f32 %v6521_v28, %v10290_v5  ;;  %10293 = vst [vmem:[#allocation50_spill] sm:$0xff] %v6591_v26  ;;  %v6597_v38 = vsub.f32 %v6531_v34, %v10294_v41  ;;  %v6608_v28 = vld [vmem:[#allocation5 + $0x230] sm:$0xff]  ;;  %407 = vmatmul.mubr.f32.gmra.mrb[4].mxu0 %v6381_v61  ;;  %4958 = vmatprep.subr.bf16.mxu1 %v4957_v33  ;;  %v10300_v41 = vand.u32 4294901760, %v6543_v19 }
  0x92   :  { %10289 = vst [vmem:[#allocation47_spill] sm:$0xff] %v6580_v9  ;;  %v10296_v9 = vand.u32 4294901760, %v6533_v32  ;;  %10299 = vst [vmem:[#allocation54_spill] sm:$0xff] %v6608_v28  ;;  %4864 = vmatpush1.bf16.msra.mxu0 %v4863_v48  ;;  %412 = vmatprep.mubr.f32.mxu0 %v10260_v31  ;;  %v10305_v33 = vand.u32 4294901760, %v6557_v59  ;;  %v10310_v48 = vand.u32 4294901760, %v6574_v20  ;;  %v10401_v34 = vand.u32 4294901760, %v6207_v42 }
  0x93   :  { %10291 = vst [vmem:[#allocation48_spill] sm:$0xff] %v6585_v27  ;;  %10295 = vst [vmem:[#allocation51_spill] sm:$0xff] %v6597_v38  ;;  %v6606_v27 = vld [vmem:[#allocation5 + $0x220] sm:$0xff]  ;;  %v6616_v38 = vsub.f32 %v6543_v19, %v10300_v41  ;;  %v10307_v41 = vand.u32 4294901760, %v6559_v30  ;;  %1201 = vmatmul.mubr.f32.gmra.mrb[4].mxu1 %v6381_v61  ;;  %4866 = vmatprep.subr.bf16.mxu0 %v4865_v17  ;;  %v10406_v42 = vand.u32 4294901760, %v6215_v49 }
  0x94   :  { %v6602_v5 = vsub.f32 %v6533_v32, %v10296_v9  ;;  %10298 = vst [vmem:[#allocation53_spill] sm:$0xff] %v6606_v27  ;;  %v10302_v9 = vand.u32 4294901760, %v6545_v21  ;;  %v6630_v32 = vsub.f32 %v6557_v59, %v10305_v33  ;;  %4960 = vmatpush1.bf16.msra.mxu1 %v4959_v13  ;;  %1206 = vmatprep.mubr.f32.mxu1 %v10260_v31  ;;  %v6669_v13 = vld [vmem:[#allocation5 + $0x50] sm:$0xff]  ;;  %v10319_v59 = vand.u32 4294901760, %v6606_v27 }
  0x95   :  { %10301 = vst [vmem:[#allocation55_spill] sm:$0xff] %v6616_v38  ;;  %v6635_v38 = vsub.f32 %v6559_v30, %v10307_v41  ;;  %v6649_v41 = vld [vmem:[#allocation5 + $0x248] sm:$0xff]  ;;  %10318 = vst [vmem:[#allocation67_spill] sm:$0xff] %v6669_v13  ;;  %414 = vmatmul.mubr.f32.gmra.mrb[6].mxu0 %v6426_v52  ;;  %4962 = vmatprep.subr.bf16.mxu1 %v4961_v7  ;;  %v6886_v30 = vld [vmem:[#allocation5 + $0xa0] sm:$0xff] }
  0x96   :  { %10297 = vst [vmem:[#allocation52_spill] sm:$0xff] %v6602_v5  ;;  %v6621_v60 = vsub.f32 %v6545_v21, %v10302_v9  ;;  %v6624_v5 = vld [vmem:[#allocation5 + $0x48] sm:$0xff]  ;;  %10306 = vst [vmem:[#allocation58_spill] sm:$0xff] %v6630_v32  ;;  %v9701_v9 = vand.u32 4294901760, %v6589_v1  ;;  %v6645_v21 = vsub.f32 %v6574_v20, %v10310_v48  ;;  %v10315_v48 = vand.u32 4294901760, %v6591_v26  ;;  %v6683_v32 = vld [vmem:[#allocation5 + $0x240] sm:$0xff]  ;;  %4868 = vmatpush1.bf16.msra.mxu0 %v4867_v40 }
  0x97   :  { %10304 = vst [vmem:[#allocation57_spill] sm:$0xff] %v6624_v5  ;;  %10308 = vst [vmem:[#allocation59_spill] sm:$0xff] %v6635_v38  ;;  %v6651_v38 = vld [vmem:[#allocation5 + $0x258] sm:$0xff]  ;;  %v6675_v20 = vsub.f32 %v6606_v27, %v10319_v59  ;;  %516 = vmatprep.mubr.f32.mxu0 %v10260_v31  ;;  %v10325_v7 = vand.u32 4294901760, %v6624_v5  ;;  %v9712_v59 = vand.u32 4294901760, %v6649_v41  ;;  %1208 = vmatmul.mubr.f32.gmra.mrb[6].mxu1 %v6426_v52 }
  0x98   :  { %10303 = vst [vmem:[#allocation56_spill] sm:$0xff] %v6621_v60  ;;  %10311 = vst [vmem:[#allocation61_spill] sm:$0xff] %v6645_v21  ;;  %v4963_v60 = vpack.c.bf16 %v6291_v29, %v6289_v11  ;;  %v6659_v17 = vsub.f32 %v6589_v1, %v9701_v9  ;;  %v6664_v33 = vsub.f32 %v6591_v26, %v10315_v48  ;;  %v6667_v21 = vld [vmem:[#allocation5 + $0x40] sm:$0xff]  ;;  %v10321_v9 = vand.u32 4294901760, %v6608_v28  ;;  %v10389_v52 = vld [vmem:[#allocation22_spill] sm:$0xff] }
  0x99   :  { %10312 = vst [vmem:[#allocation62_spill] sm:$0xff] %v6649_v41  ;;  %10313 = vst [vmem:[#allocation63_spill] sm:$0xff] %v6651_v38  ;;  %v9710_v48 = vand.u32 4294901760, %v6639_v43  ;;  %v6691_v26 = vsub.f32 %v6624_v5, %v10325_v7  ;;  %4870 = vmatprep.subr.bf16.mxu0 %v6180_v16  ;;  %1310 = vmatprep.mubr.f32.mxu1 %v10260_v31  ;;  %v10331_v5 = vand.u32 4294901760, %v6651_v38  ;;  %v6721_v7 = vld [vmem:[#allocation5 + $0x268] sm:$0xff] }
  0x9a   :  { %10314 = vst [vmem:[#allocation64_spill] sm:$0xff] %v6659_v17  ;;  %10316 = vst [vmem:[#allocation65_spill] sm:$0xff] %v6664_v33  ;;  %v6680_v17 = vsub.f32 %v6608_v28, %v10321_v9  ;;  %v6685_v33 = vld [vmem:[#allocation5 + $0x250] sm:$0xff]  ;;  %v6695_v9 = vld [vmem:[#allocation5 + $0x68] sm:$0xff]  ;;  %4964 = vmatpush1.bf16.msra.mxu1 %v4963_v60  ;;  %519 = vmatmul.mubr.f32.vlgmr.msra.gmra.mrb[0].mxu0 %v6308_v55  ;;  %v10335_v60 = vand.u32 4294901760, %v6667_v21 }
  0x9b   :  { %10317 = vst [vmem:[#allocation66_spill] sm:$0xff] %v6667_v21  ;;  %10320 = vst [vmem:[#allocation68_spill] sm:$0xff] %v6675_v20  ;;  %v6702_v40 = vsub.f32 %v6639_v43, %v9710_v48  ;;  %v6712_v20 = vsub.f32 %v6649_v41, %v9712_v59  ;;  %v6717_v1 = vsub.f32 %v6651_v38, %v10331_v5  ;;  %4966 = vmatprep.subr.bf16.mxu1 %v6188_v23  ;;  %v6738_v48 = vld [vmem:[#allocation5 + $0x60] sm:$0xff]  ;;  %v10360_v41 = vld [vmem:[#allocation16_spill] sm:$0xff] }
  0x9c   :  { %10322 = vst [vmem:[#allocation69_spill] sm:$0xff] %v6680_v17  ;;  %10323 = vst [vmem:[#allocation70_spill] sm:$0xff] %v6683_v32  ;;  %v6730_v59 = vsub.f32 %v6667_v21, %v10335_v60  ;;  %v10337_v5 = vand.u32 4294901760, %v6669_v13  ;;  %4872 = vmatpush1.bf16.msra.mxu0 %v6192_v25  ;;  %524 = vmatprep.mubr.f32.mxu0 %v10260_v31  ;;  %v10341_v43 = vand.u32 4294901760, %v6683_v32  ;;  %v10347_v21 = vand.u32 4294901760, %v6695_v9 }
  0x9d   :  { %10324 = vst [vmem:[#allocation71_spill] sm:$0xff] %v6685_v33  ;;  %10326 = vst [vmem:[#allocation72_spill] sm:$0xff] %v6691_v26  ;;  %v6706_v26 = vld [vmem:[#allocation5 + $0x78] sm:$0xff]  ;;  %1313 = vmatmul.mubr.f32.vlgmr.msra.gmra.mrb[0].mxu1 %v6308_v55  ;;  %4874 = vmatprep.subr.bf16.mxu0 %v6209_v46 }
  0x9e   :  { %10327 = vst [vmem:[#allocation73_spill] sm:$0xff] %v6695_v9  ;;  %10328 = vst [vmem:[#allocation74_spill] sm:$0xff] %v6702_v40  ;;  %v6723_v40 = vld [vmem:[#allocation5 + $0x278] sm:$0xff]  ;;  %v6747_v60 = vsub.f32 %v6683_v32, %v10341_v43  ;;  %v9727_v17 = vand.u32 4294901760, %v6706_v26  ;;  %v6764_v43 = vsub.f32 %v6695_v9, %v10347_v21  ;;  %4968 = vmatpush1.bf16.msra.mxu1 %v6201_v39  ;;  %1318 = vmatprep.mubr.f32.mxu1 %v10260_v31  ;;  %v10378_v21 = vld [vmem:[#allocation31_spill] sm:$0xff] }
  0x9f   :  { %10329 = vst [vmem:[#allocation75_spill] sm:$0xff] %v6706_v26  ;;  %10330 = vst [vmem:[#allocation76_spill] sm:$0xff] %v6712_v20  ;;  %v6740_v20 = vld [vmem:[#allocation5 + $0x70] sm:$0xff]  ;;  %v10354_v9 = vand.u32 4294901760, %v6721_v7  ;;  %v10356_v38 = vand.u32 4294901760, %v6723_v40 }
  0xa0   :  { %10332 = vst [vmem:[#allocation77_spill] sm:$0xff] %v6717_v1  ;;  %10333 = vst [vmem:[#allocation78_spill] sm:$0xff] %v6721_v7  ;;  %v6735_v1 = vsub.f32 %v6669_v13, %v10337_v5  ;;  %v6757_v13 = vld [vmem:[#allocation5 + $0x270] sm:$0xff]  ;;  %v6775_v55 = vsub.f32 %v6706_v26, %v9727_v17  ;;  %v6797_v26 = vld [vmem:[#allocation5 + $0x298] sm:$0xff]  ;;  %4876 = vmatpush1.bf16.msra.mxu0 %v10360_v41 }
  0xa1   :  { %10334 = vst [vmem:[#allocation79_spill] sm:$0xff] %v6723_v40  ;;  %10336 = vst [vmem:[#allocation80_spill] sm:$0xff] %v6730_v59  ;;  %v10343_v59 = vand.u32 4294901760, %v6685_v33  ;;  %v6786_v32 = vsub.f32 %v6721_v7, %v10354_v9  ;;  %v6791_v17 = vsub.f32 %v6723_v40, %v10356_v38  ;;  %v10361_v9 = vand.u32 4294901760, %v6738_v48  ;;  %v6814_v40 = vld [vmem:[#allocation5 + $0x90] sm:$0xff]  ;;  %v10367_v7 = vld [vmem:[#allocation18_spill] sm:$0xff] }
  0xa2   :  { %10338 = vst [vmem:[#allocation81_spill] sm:$0xff] %v6735_v1  ;;  %10339 = vst [vmem:[#allocation82_spill] sm:$0xff] %v6738_v48  ;;  %v6755_v1 = vld [vmem:[#allocation5 + $0x260] sm:$0xff]  ;;  %v10363_v38 = vand.u32 4294901760, %v6740_v20  ;;  %4878 = vmatprep.subr.bf16.mxu0 %v10367_v7  ;;  %v10386_v19 = vand.u32 4294901760, %v6797_v26 }
  0xa3   :  { %10340 = vst [vmem:[#allocation83_spill] sm:$0xff] %v6740_v20  ;;  %10342 = vst [vmem:[#allocation84_spill] sm:$0xff] %v6747_v60  ;;  %v6752_v5 = vsub.f32 %v6685_v33, %v10343_v59  ;;  %v10352_v60 = vld [vmem:[#allocation29_spill] sm:$0xff]  ;;  %v10353_v59 = vld [vmem:[#allocation15_spill] sm:$0xff]  ;;  %v10368_v28 = vand.u32 4294901760, %v6755_v1 }
  0xa4   :  { %10345 = vst [vmem:[#allocation86_spill] sm:$0xff] %v6755_v1  ;;  %10346 = vst [vmem:[#allocation87_spill] sm:$0xff] %v6757_v13  ;;  %527 = vmatmul.mubr.f32.gmra.mrb[2].mxu0 %v10352_v60  ;;  %4970 = vmatprep.subr.bf16.mxu1 %v10353_v59  ;;  %v6812_v33 = vld [vmem:[#allocation5 + $0x80] sm:$0xff] }
  0xa5   :  { %10344 = vst [vmem:[#allocation85_spill] sm:$0xff] %v6752_v5  ;;  %10348 = vst [vmem:[#allocation88_spill] sm:$0xff] %v6764_v43  ;;  %v6768_v5 = vld [vmem:[#allocation5 + $0x88] sm:$0xff]  ;;  %v6779_v43 = vld [vmem:[#allocation5 + $0x98] sm:$0xff]  ;;  %532 = vmatprep.mubr.f32.mxu0 %v10260_v31  ;;  %1321 = vmatmul.mubr.f32.gmra.mrb[2].mxu1 %v10352_v60 }
  0xa6   :  { %10349 = vst [vmem:[#allocation89_spill] sm:$0xff] %v6768_v5  ;;  %10350 = vst [vmem:[#allocation90_spill] sm:$0xff] %v6775_v55  ;;  %v6795_v55 = vld [vmem:[#allocation5 + $0x288] sm:$0xff]  ;;  %1326 = vmatprep.mubr.f32.mxu1 %v10260_v31  ;;  %v10375_v60 = vand.u32 4294901760, %v6768_v5 }
  0xa7   :  { %10351 = vst [vmem:[#allocation91_spill] sm:$0xff] %v6779_v43  ;;  %10355 = vst [vmem:[#allocation29_spill] sm:$0xff] %v6786_v32  ;;  %v6804_v32 = vsub.f32 %v6738_v48, %v10361_v9  ;;  %v6821_v9 = vsub.f32 %v6755_v1, %v10368_v28  ;;  %v10374_v48 = vld [vmem:[#allocation17_spill] sm:$0xff]  ;;  %v10380_v1 = vand.u32 4294901760, %v6779_v43 }
  0xa8   :  { %10357 = vst [vmem:[#allocation15_spill] sm:$0xff] %v6791_v17  ;;  %10358 = vst [vmem:[#allocation92_spill] sm:$0xff] %v6795_v55  ;;  %v6809_v17 = vsub.f32 %v6740_v20, %v10363_v38  ;;  %v6831_v20 = vld [vmem:[#allocation5 + $0x290] sm:$0xff]  ;;  %4972 = vmatpush1.bf16.msra.mxu1 %v10374_v48  ;;  %v6838_v28 = vsub.f32 %v6768_v5, %v10375_v60  ;;  %535 = vmatmul.mubr.f32.gmra.mrb[4].mxu0 %v10378_v21  ;;  %v6951_v60 = vld [vmem:[#allocation5 + $0x2c8] sm:$0xff] }
  0xa9   :  { %10359 = vst [vmem:[#allocation93_spill] sm:$0xff] %v6797_v26  ;;  %10362 = vst [vmem:[#allocation16_spill] sm:$0xff] %v6804_v32  ;;  %v10370_v32 = vand.u32 4294901760, %v6757_v13  ;;  %v6849_v27 = vsub.f32 %v6779_v43, %v10380_v1  ;;  %540 = vmatprep.mubr.f32.mxu0 %v10260_v31  ;;  %v6865_v1 = vsub.f32 %v6797_v26, %v10386_v19  ;;  %v6871_v43 = vld [vmem:[#allocation5 + $0x2b8] sm:$0xff]  ;;  %1329 = vmatmul.mubr.f32.gmra.mrb[4].mxu1 %v10378_v21  ;;  %v6888_v26 = vld [vmem:[#allocation5 + $0xb0] sm:$0xff] }
  0xaa   :  { %10364 = vst [vmem:[#allocation94_spill] sm:$0xff] %v6809_v17  ;;  %10365 = vst [vmem:[#allocation95_spill] sm:$0xff] %v6812_v33  ;;  %v6829_v17 = vld [vmem:[#allocation5 + $0x280] sm:$0xff]  ;;  %v10392_v19 = vand.u32 4294901760, %v6814_v40  ;;  %1334 = vmatprep.mubr.f32.mxu1 %v10260_v31 }
  0xab   :  { %10366 = vst [vmem:[#allocation96_spill] sm:$0xff] %v6814_v40  ;;  %10369 = vst [vmem:[#allocation18_spill] sm:$0xff] %v6821_v9  ;;  %v6826_v38 = vsub.f32 %v6757_v13, %v10370_v32  ;;  %v10379_v13 = vld [vmem:[#allocation19_spill] sm:$0xff]  ;;  %v10383_v9 = vld [vmem:[#allocation20_spill] sm:$0xff]  ;;  %v10384_v32 = vand.u32 4294901760, %v6795_v55  ;;  %v10396_v21 = vand.u32 4294901760, %v6829_v17 }
  0xac   :  { %10372 = vst [vmem:[#allocation98_spill] sm:$0xff] %v6829_v17  ;;  %10373 = vst [vmem:[#allocation99_spill] sm:$0xff] %v6831_v20  ;;  %4974 = vmatprep.subr.bf16.mxu1 %v10379_v13  ;;  %4880 = vmatpush1.bf16.msra.mxu0 %v10383_v9 }
  0xad   :  { %10371 = vst [vmem:[#allocation97_spill] sm:$0xff] %v6826_v38  ;;  %10376 = vst [vmem:[#allocation17_spill] sm:$0xff] %v6838_v28  ;;  %v6842_v38 = vld [vmem:[#allocation5 + $0xa8] sm:$0xff]  ;;  %v6853_v28 = vld [vmem:[#allocation5 + $0xb8] sm:$0xff]  ;;  %v6860_v5 = vsub.f32 %v6795_v55, %v10384_v32  ;;  %4882 = vmatprep.subr.bf16.mxu0 %v10389_v52  ;;  %v10390_v32 = vand.u32 4294901760, %v6812_v33  ;;  %543 = vmatmul.mubr.f32.gmra.mrb[6].mxu0 %v6433_v37 }
  0xae   :  { %10377 = vst [vmem:[#allocation100_spill] sm:$0xff] %v6842_v38  ;;  %10381 = vst [vmem:[#allocation31_spill] sm:$0xff] %v6849_v27  ;;  %v6869_v27 = vld [vmem:[#allocation5 + $0x2a8] sm:$0xff]  ;;  %v10395_v55 = vld [vmem:[#allocation21_spill] sm:$0xff]  ;;  %629 = vmatprep.mubr.f32.mxu0 %v10260_v31  ;;  %1337 = vmatmul.mubr.f32.gmra.mrb[6].mxu1 %v6433_v37 }
  0xaf   :  { %10382 = vst [vmem:[#allocation19_spill] sm:$0xff] %v6853_v28  ;;  %10385 = vst [vmem:[#allocation20_spill] sm:$0xff] %v6860_v5  ;;  %v6878_v5 = vsub.f32 %v6812_v33, %v10390_v32  ;;  %4976 = vmatpush1.bf16.msra.mxu1 %v10395_v55  ;;  %v6895_v32 = vsub.f32 %v6829_v17, %v10396_v21  ;;  %v10400_v33 = vld [vmem:[#allocation23_spill] sm:$0xff]  ;;  %v10402_v21 = vand.u32 4294901760, %v6211_v47  ;;  %v10403_v17 = vand.u32 4294901760, %v6842_v38  ;;  %v10405_v55 = vld [vmem:[#allocation25_spill] sm:$0xff] }
  0xb0   :  { %10387 = vst [vmem:[#allocation101_spill] sm:$0xff] %v6865_v1  ;;  %10388 = vst [vmem:[#allocation102_spill] sm:$0xff] %v6871_v43  ;;  %v6883_v1 = vsub.f32 %v6814_v40, %v10392_v19  ;;  %v6905_v40 = vld [vmem:[#allocation5 + $0x2b0] sm:$0xff]  ;;  %4978 = vmatprep.subr.bf16.mxu1 %v10400_v33  ;;  %4884 = vmatpush1.bf16.msra.mxu0 %v10405_v55  ;;  %v10407_v47 = vand.u32 4294901760, %v6218_v51  ;;  %v10410_v49 = vand.u32 4294901760, %v6869_v27  ;;  %v10414_v37 = vld [vmem:[#allocation26_spill] sm:$0xff] }
  0xb1   :  { %10391 = vst [vmem:[#allocation22_spill] sm:$0xff] %v6878_v5  ;;  %10394 = vst [vmem:[#allocation104_spill] sm:$0xff] %v6888_v26  ;;  %v10398_v5 = vand.u32 4294901760, %v6831_v20  ;;  %4886 = vmatprep.subr.bf16.mxu0 %v6489_v10  ;;  %1423 = vmatprep.mubr.f32.mxu1 %v10260_v31  ;;  %v10415_v10 = vand.u32 4294901760, %v6220_v53  ;;  %v10421_v53 = vld [vmem:[#allocation28_spill] sm:$0xff] }
  0xb2   :  { %10393 = vst [vmem:[#allocation103_spill] sm:$0xff] %v6883_v1  ;;  %10397 = vst [vmem:[#allocation105_spill] sm:$0xff] %v6895_v32  ;;  %v6903_v1 = vld [vmem:[#allocation5 + $0x2a0] sm:$0xff]  ;;  %v4889_v32 = vpack.c.bf16 %v10402_v21, %v10401_v34  ;;  %v4985_v34 = vpack.c.bf16 %v10407_v47, %v10406_v42  ;;  %v10408_v21 = vand.u32 4294901760, %v6853_v28  ;;  %v6942_v51 = vsub.f32 %v6869_v27, %v10410_v49 }
  0xb3   :  { %v6900_v19 = vsub.f32 %v6831_v20, %v10398_v5  ;;  %v6916_v5 = vsub.f32 %v6842_v38, %v10403_v17  ;;  %v6920_v20 = vld [vmem:[#allocation5 + $0xc8] sm:$0xff]  ;;  %v10412_v42 = vand.u32 4294901760, %v6871_v43  ;;  %4980 = vmatpush1.bf16.msra.mxu1 %v10414_v37  ;;  %v10416_v49 = vand.u32 4294901760, %v6226_v62  ;;  %v6972_v38 = vld [vmem:[#allocation5 + $0xc0] sm:$0xff]  ;;  %633 = vmatmul.mubr.f32.vlgmr.msra.gmra.mrb[0].mxu0 %v10421_v53 }
  0xb4   :  { %v6931_v17 = vsub.f32 %v6853_v28, %v10408_v21  ;;  %10411 = vst [vmem:[#allocation107_spill] sm:$0xff] %v6942_v51  ;;  %4982 = vmatprep.subr.bf16.mxu1 %v6495_v0  ;;  %v10422_v62 = vand.u32 4294901760, %v6228_v63  ;;  %v10426_v28 = vand.u32 4294901760, %v6905_v40  ;;  %v6995_v0 = vld [vmem:[#allocation5 + $0x2d0] sm:$0xff]  ;;  %4888 = vmatpush1.bf16.msra.mxu0 %v6505_v18  ;;  %v10428_v63 = vand.u32 4294901760, %v6236_v8 }
  0xb5   :  { %10399 = vst [vmem:[#allocation106_spill] sm:$0xff] %v6900_v19  ;;  %10404 = vst [vmem:[#allocation23_spill] sm:$0xff] %v6916_v5  ;;  %v6935_v5 = vld [vmem:[#allocation5 + $0xd8] sm:$0xff]  ;;  %v6947_v47 = vsub.f32 %v6871_v43, %v10412_v42  ;;  %v4891_v51 = vpack.c.bf16 %v10416_v49, %v10415_v10  ;;  %v10417_v42 = vand.u32 4294901760, %v6886_v30  ;;  %v10419_v19 = vand.u32 4294901760, %v6888_v26  ;;  %v6974_v43 = vld [vmem:[#allocation5 + $0xd0] sm:$0xff]  ;;  %638 = vmatprep.mubr.f32.mxu0 %v10260_v31 }
  0xb6   :  { %10409 = vst [vmem:[#allocation25_spill] sm:$0xff] %v6931_v17  ;;  %v6953_v17 = vld [vmem:[#allocation5 + $0x2d8] sm:$0xff]  ;;  %v10423_v10 = vand.u32 4294901760, %v6232_v6  ;;  %v10429_v6 = vand.u32 4294901760, %v6239_v12  ;;  %1427 = vmatmul.mubr.f32.vlgmr.msra.gmra.mrb[0].mxu1 %v10421_v53  ;;  %4890 = vmatprep.subr.bf16.mxu0 %v4889_v32  ;;  %v10432_v18 = vand.u32 4294901760, %v6243_v14  ;;  %v10433_v8 = vand.u32 4294901760, %v6245_v15 }
  0xb7   :  { %10413 = vst [vmem:[#allocation108_spill] sm:$0xff] %v6947_v47  ;;  %v6964_v47 = vsub.f32 %v6886_v30, %v10417_v42  ;;  %v6969_v21 = vsub.f32 %v6888_v26, %v10419_v19  ;;  %v10424_v42 = vand.u32 4294901760, %v6903_v1  ;;  %v6993_v26 = vld [vmem:[#allocation5 + $0x2c0] sm:$0xff]  ;;  %4984 = vmatpush1.bf16.msra.mxu1 %v6511_v24  ;;  %1432 = vmatprep.mubr.f32.mxu1 %v10260_v31  ;;  %v10436_v14 = vand.u32 4294901760, %v6951_v60  ;;  %v10440_v24 = vld [vmem:[#allocation30_spill] sm:$0xff] }
  0xb8   :  { %v4987_v49 = vpack.c.bf16 %v10423_v10, %v10422_v62  ;;  %v4893_v62 = vpack.c.bf16 %v10429_v6, %v10428_v63  ;;  %v10430_v10 = vand.u32 4294901760, %v6920_v20  ;;  %v4989_v12 = vpack.c.bf16 %v10433_v8, %v10432_v18  ;;  %642 = vmatmul.mubr.f32.gmra.mrb[2].mxu0 %v10440_v24  ;;  %4986 = vmatprep.subr.bf16.mxu1 %v4985_v34  ;;  %v7062_v34 = vld [vmem:[#allocation5 + $0xf0] sm:$0xff] }
  0xb9   :  { %10418 = vst [vmem:[#allocation26_spill] sm:$0xff] %v6964_v47  ;;  %10420 = vst [vmem:[#allocation109_spill] sm:$0xff] %v6969_v21  ;;  %v6985_v19 = vsub.f32 %v6903_v1, %v10424_v42  ;;  %v6990_v21 = vsub.f32 %v6905_v40, %v10426_v28  ;;  %v10434_v63 = vand.u32 4294901760, %v6935_v5  ;;  %v7024_v47 = vld [vmem:[#allocation5 + $0xf8] sm:$0xff]  ;;  %v7031_v15 = vsub.f32 %v6951_v60, %v10436_v14 }
  0xba   :  { %v7006_v28 = vsub.f32 %v6920_v20, %v10430_v10  ;;  %v10438_v32 = vand.u32 4294901760, %v6953_v17  ;;  %v7042_v42 = vld [vmem:[#allocation5 + $0x2f8] sm:$0xff]  ;;  %v10441_v10 = vand.u32 4294901760, %v6252_v35  ;;  %v10442_v14 = vand.u32 4294901760, %v6254_v36  ;;  %4892 = vmatpush1.bf16.msra.mxu0 %v4891_v51  ;;  %647 = vmatprep.mubr.f32.mxu0 %v10260_v31  ;;  %v7080_v51 = vld [vmem:[#allocation5 + $0x2e0] sm:$0xff] }
  0xbb   :  { %10425 = vst [vmem:[#allocation28_spill] sm:$0xff] %v6985_v19  ;;  %10427 = vst [vmem:[#allocation110_spill] sm:$0xff] %v6990_v21  ;;  %v7010_v21 = vld [vmem:[#allocation5 + $0xe8] sm:$0xff]  ;;  %v7020_v6 = vsub.f32 %v6935_v5, %v10434_v63  ;;  %v10445_v18 = vand.u32 4294901760, %v6974_v43  ;;  %v10447_v35 = vand.u32 4294901760, %v6258_v45  ;;  %v10448_v36 = vand.u32 4294901760, %v6260_v50  ;;  %1436 = vmatmul.mubr.f32.gmra.mrb[2].mxu1 %v10440_v24  ;;  %4894 = vmatprep.subr.bf16.mxu0 %v4893_v62 }
  0xbc   :  { %10431 = vst [vmem:[#allocation111_spill] sm:$0xff] %v7006_v28  ;;  %10437 = vst [vmem:[#allocation113_spill] sm:$0xff] %v7031_v15  ;;  %v7036_v53 = vsub.f32 %v6953_v17, %v10438_v32  ;;  %v7040_v63 = vld [vmem:[#allocation5 + $0x2e8] sm:$0xff]  ;;  %v4895_v15 = vpack.c.bf16 %v10442_v14, %v10441_v10  ;;  %v7060_v28 = vld [vmem:[#allocation5 + $0xe0] sm:$0xff]  ;;  %v10449_v10 = vand.u32 4294901760, %v6993_v26  ;;  %v10453_v45 = vand.u32 4294901760, %v6264_v54  ;;  %4988 = vmatpush1.bf16.msra.mxu1 %v4987_v49 }
  0xbd   :  { %10435 = vst [vmem:[#allocation112_spill] sm:$0xff] %v7020_v6  ;;  %v10443_v6 = vand.u32 4294901760, %v6972_v38  ;;  %v7057_v8 = vsub.f32 %v6974_v43, %v10445_v18  ;;  %v10451_v18 = vand.u32 4294901760, %v6995_v0  ;;  %v10454_v50 = vand.u32 4294901760, %v6268_v56  ;;  %1441 = vmatprep.mubr.f32.mxu1 %v10260_v31  ;;  %v10458_v54 = vld [vmem:[#allocation24_spill] sm:$0xff]  ;;  %4990 = vmatprep.subr.bf16.mxu1 %v4989_v12 }
  0xbe   :  { %10439 = vst [vmem:[#allocation114_spill] sm:$0xff] %v7036_v53  ;;  %v7072_v14 = vsub.f32 %v6993_v26, %v10449_v10  ;;  %v10457_v62 = vand.u32 4294901760, %v6272_v58  ;;  %v10459_v24 = vand.u32 4294901760, %v10458_v54  ;;  %v10463_v49 = vand.u32 4294901760, %v7040_v63  ;;  %4896 = vmatpush1.bf16.msra.mxu0 %v4895_v15  ;;  %v7145_v15 = vld [vmem:[#allocation5 + $0x100] sm:$0xff] }
  0xbf   :  { %v7052_v32 = vsub.f32 %v6972_v38, %v10443_v6  ;;  %10446 = vst [vmem:[#allocation115_spill] sm:$0xff] %v7057_v8  ;;  %v4991_v6 = vpack.c.bf16 %v10448_v36, %v10447_v35  ;;  %v7077_v53 = vsub.f32 %v6995_v0, %v10451_v18  ;;  %v4897_v35 = vpack.c.bf16 %v10454_v50, %v10453_v45  ;;  %v7110_v8 = vld [vmem:[#allocation5 + $0x118] sm:$0xff]  ;;  %v7125_v18 = vld [vmem:[#allocation5 + $0x308] sm:$0xff] }
  0xc0   :  { %10450 = vst [vmem:[#allocation116_spill] sm:$0xff] %v7072_v14  ;;  %v10455_v36 = vand.u32 4294901760, %v7010_v21  ;;  %v4993_v56 = vpack.c.bf16 %v10459_v24, %v10457_v62  ;;  %v10460_v45 = vand.u32 4294901760, %v7024_v47  ;;  %v7116_v58 = vsub.f32 %v7040_v63, %v10463_v49  ;;  %v7147_v14 = vld [vmem:[#allocation5 + $0x110] sm:$0xff] }
  0xc1   :  { %10444 = vst [vmem:[#allocation30_spill] sm:$0xff] %v7052_v32  ;;  %10452 = vst [vmem:[#allocation117_spill] sm:$0xff] %v7077_v53  ;;  %v7082_v32 = vld [vmem:[#allocation5 + $0x2f0] sm:$0xff]  ;;  %v7096_v53 = vld [vmem:[#allocation5 + $0x108] sm:$0xff]  ;;  %v10465_v62 = vand.u32 4294901760, %v7042_v42  ;;  %v10467_v12 = vand.u32 4294901760, %v6278_v4  ;;  %4898 = vmatprep.subr.bf16.mxu0 %v4897_v35  ;;  %4992 = vmatpush1.bf16.msra.mxu1 %v4991_v6 }
  0xc2   :  { %v7092_v10 = vsub.f32 %v7010_v21, %v10455_v36  ;;  %v7106_v50 = vsub.f32 %v7024_v47, %v10460_v45  ;;  %v7127_v36 = vld [vmem:[#allocation5 + $0x318] sm:$0xff]  ;;  %v10468_v49 = vand.u32 4294901760, %v6285_v22  ;;  %v10471_v24 = vand.u32 4294901760, %v7062_v34  ;;  %4994 = vmatprep.subr.bf16.mxu1 %v4993_v56 }
  0xc3   :  { %v7121_v54 = vsub.f32 %v7042_v42, %v10465_v62  ;;  %v10473_v4 = vand.u32 4294901760, %v7080_v51  ;;  %v10477_v35 = vand.u32 4294901760, %v6289_v11  ;;  %v10482_v6 = vand.u32 4294901760, %v7110_v8 }
  0xc4   :  { %10456 = vst [vmem:[#allocation118_spill] sm:$0xff] %v7092_v10  ;;  %10461 = vst [vmem:[#allocation24_spill] sm:$0xff] %v7106_v50  ;;  %v10462_v10 = vld [vmem:[#allocation32_spill] sm:$0xff]  ;;  %v10469_v50 = vand.u32 4294901760, %v7060_v28  ;;  %v7142_v45 = vsub.f32 %v7062_v34, %v10471_v24  ;;  %v9795_v24 = vand.u32 4294901760, %v7127_v36 }
  0xc5   :  { %651 = vmatmul.mubr.f32.gmra.mrb[4].mxu0 %v10462_v10  ;;  %10464 = vst [vmem:[#allocation32_spill] sm:$0xff] %v7116_v58  ;;  %10466 = vst [vmem:[#allocation119_spill] sm:$0xff] %v7121_v54  ;;  %v4899_v58 = vpack.c.bf16 %v10468_v49, %v10467_v12  ;;  %1445 = vmatmul.mubr.f32.gmra.mrb[4].mxu1 %v10462_v10  ;;  %v7153_v22 = vsub.f32 %v7080_v51, %v10473_v4  ;;  %v7161_v49 = vld [vmem:[#allocation5 + $0x300] sm:$0xff]  ;;  %v7163_v54 = vld [vmem:[#allocation5 + $0x310] sm:$0xff]  ;;  %v10478_v10 = vand.u32 4294901760, %v6291_v29 }
  0xc6   :  { %656 = vmatprep.mubr.f32.mxu0 %v10260_v31  ;;  %v7137_v62 = vsub.f32 %v7060_v28, %v10469_v50  ;;  %10472 = vst [vmem:[#allocation121_spill] sm:$0xff] %v7142_v45  ;;  %v10475_v50 = vand.u32 4294901760, %v7082_v32  ;;  %1450 = vmatprep.mubr.f32.mxu1 %v10260_v31  ;;  %v7183_v11 = vsub.f32 %v7110_v8, %v10482_v6  ;;  %v7219_v6 = vld [vmem:[#allocation5 + $0x120] sm:$0xff] }
  0xc7   :  { %10474 = vst [vmem:[#allocation122_spill] sm:$0xff] %v7153_v22  ;;  %v4995_v4 = vpack.c.bf16 %v10478_v10, %v10477_v35  ;;  %v10479_v22 = vand.u32 4294901760, %v7096_v53  ;;  %4900 = vmatpush1.bf16.msra.mxu0 %v4899_v58  ;;  %v7198_v56 = vsub.f32 %v7127_v36, %v9795_v24  ;;  %v7202_v35 = vld [vmem:[#allocation5 + $0x328] sm:$0xff]  ;;  %v10487_v58 = vand.u32 4294901760, %v7145_v15  ;;  %10491 = vst [vmem:[#allocation130_spill] sm:$0xff] %v7219_v6  ;;  %v7235_v29 = vld [vmem:[#allocation5 + $0x320] sm:$0xff] }
  0xc8   :  { %10470 = vst [vmem:[#allocation120_spill] sm:$0xff] %v7137_v62  ;;  %v7158_v12 = vsub.f32 %v7082_v32, %v10475_v50  ;;  %v9794_v50 = vand.u32 4294901760, %v7125_v18  ;;  %v10481_v62 = vld [vmem:[#allocation34_spill] sm:$0xff]  ;;  %4902 = vmatprep.subr.bf16.mxu0 %v6180_v16  ;;  %v10489_v24 = vand.u32 4294901760, %v7147_v14  ;;  %v10493_v16 = vand.u32 4294901760, %v7161_v49 }
  0xc9   :  { %v7173_v45 = vsub.f32 %v7096_v53, %v10479_v22  ;;  %660 = vmatmul.mubr.f32.gmra.mrb[6].mxu0 %v10481_v62  ;;  %10483 = vst [vmem:[#allocation34_spill] sm:$0xff] %v7183_v11  ;;  %v7187_v22 = vld [vmem:[#allocation5 + $0x138] sm:$0xff]  ;;  %10486 = vst [vmem:[#allocation127_spill] sm:$0xff] %v7198_v56  ;;  %1454 = vmatmul.mubr.f32.gmra.mrb[6].mxu1 %v10481_v62 }
  0xca   :  { %10476 = vst [vmem:[#allocation123_spill] sm:$0xff] %v7158_v12  ;;  %v7177_v12 = vld [vmem:[#allocation5 + $0x128] sm:$0xff]  ;;  %10484 = vst [vmem:[#allocation125_spill] sm:$0xff] %v7187_v22  ;;  %778 = vmatprep.mubr.f32.mxu0 %v10260_v31  ;;  %v7193_v10 = vsub.f32 %v7125_v18, %v9794_v50  ;;  %v7204_v11 = vld [vmem:[#allocation5 + $0x338] sm:$0xff]  ;;  %v7211_v50 = vsub.f32 %v7145_v15, %v10487_v58  ;;  %v7216_v56 = vsub.f32 %v7147_v14, %v10489_v24 }
  0xcb   :  { %10480 = vst [vmem:[#allocation124_spill] sm:$0xff] %v7173_v45  ;;  %4996 = vmatpush1.bf16.msra.mxu1 %v4995_v4  ;;  %1572 = vmatprep.mubr.f32.mxu1 %v10260_v31  ;;  %v7227_v62 = vsub.f32 %v7161_v49, %v10493_v16  ;;  %v10495_v58 = vand.u32 4294901760, %v7163_v54  ;;  %v9805_v24 = vand.u32 4294901760, %v7187_v22  ;;  %v10497_v45 = vld [vmem:[#allocation27_spill] sm:$0xff]  ;;  %v10498_v4 = vand.u32 4294901760, %v7177_v12 }
  0xcc   :  { %10485 = vst [vmem:[#allocation126_spill] sm:$0xff] %v7193_v10  ;;  %10488 = vst [vmem:[#allocation128_spill] sm:$0xff] %v7211_v50  ;;  %v7221_v10 = vld [vmem:[#allocation5 + $0x130] sm:$0xff]  ;;  %4998 = vmatprep.subr.bf16.mxu1 %v6188_v23  ;;  %v7292_v23 = vld [vmem:[#allocation5 + $0x140] sm:$0xff] }
  0xcd   :  { %10490 = vst [vmem:[#allocation129_spill] sm:$0xff] %v7216_v56  ;;  %10492 = vst [vmem:[#allocation131_spill] sm:$0xff] %v7221_v10  ;;  %v7232_v50 = vsub.f32 %v7163_v54, %v10495_v58  ;;  %v7237_v56 = vld [vmem:[#allocation5 + $0x330] sm:$0xff]  ;;  %780 = vmatmul.mubr.f32.vlgmr.msra.gmra.mrb[0].mxu0 %v10497_v45  ;;  %v7244_v16 = vsub.f32 %v7177_v12, %v10498_v4  ;;  %v9809_v58 = vand.u32 4294901760, %v7204_v11 }
  0xce   :  { %10494 = vst [vmem:[#allocation132_spill] sm:$0xff] %v7227_v62  ;;  %v9808_v62 = vand.u32 4294901760, %v7202_v35  ;;  %4904 = vmatpush1.bf16.msra.mxu0 %v6192_v25  ;;  %785 = vmatprep.mubr.f32.mxu0 %v10260_v31  ;;  %v7255_v19 = vsub.f32 %v7187_v22, %v9805_v24  ;;  %v7277_v22 = vld [vmem:[#allocation5 + $0x358] sm:$0xff]  ;;  %10510 = vst [vmem:[#allocation142_spill] sm:$0xff] %v7292_v23 }
  0xcf   :  { %10496 = vst [vmem:[#allocation133_spill] sm:$0xff] %v7232_v50  ;;  %10499 = vst [vmem:[#allocation27_spill] sm:$0xff] %v7244_v16  ;;  %v7248_v50 = vld [vmem:[#allocation5 + $0x148] sm:$0xff]  ;;  %v7259_v16 = vld [vmem:[#allocation5 + $0x158] sm:$0xff]  ;;  %1574 = vmatmul.mubr.f32.vlgmr.msra.gmra.mrb[0].mxu1 %v10497_v45  ;;  %4906 = vmatprep.subr.bf16.mxu0 %v6209_v46  ;;  %v7271_v24 = vsub.f32 %v7204_v11, %v9809_v58  ;;  %v10506_v46 = vand.u32 4294901760, %v7219_v6  ;;  %v10508_v58 = vand.u32 4294901760, %v7221_v10 }
  0xd0   :  { %10500 = vst [vmem:[#allocation134_spill] sm:$0xff] %v7248_v50  ;;  %10501 = vst [vmem:[#allocation135_spill] sm:$0xff] %v7255_v19  ;;  %v7266_v25 = vsub.f32 %v7202_v35, %v9808_v62  ;;  %v7275_v19 = vld [vmem:[#allocation5 + $0x348] sm:$0xff]  ;;  %5000 = vmatpush1.bf16.msra.mxu1 %v6201_v39  ;;  %1579 = vmatprep.mubr.f32.mxu1 %v10260_v31  ;;  %v10512_v39 = vand.u32 4294901760, %v7235_v29  ;;  %v9819_v4 = vand.u32 4294901760, %v7259_v16 }
  0xd1   :  { %10502 = vst [vmem:[#allocation136_spill] sm:$0xff] %v7259_v16  ;;  %10504 = vst [vmem:[#allocation138_spill] sm:$0xff] %v7271_v24  ;;  %v7284_v62 = vsub.f32 %v7219_v6, %v10506_v46  ;;  %v7289_v24 = vsub.f32 %v7221_v10, %v10508_v58  ;;  %787 = vmatmul.mubr.f32.gmra.mrb[2].mxu0 %v6336_v2  ;;  %5002 = vmatprep.subr.bf16.mxu1 %v10353_v59  ;;  %v7311_v10 = vld [vmem:[#allocation5 + $0x350] sm:$0xff]  ;;  %v10517_v59 = vand.u32 4294901760, %v7248_v50  ;;  %v7366_v6 = vld [vmem:[#allocation5 + $0x160] sm:$0xff] }
  0xd2   :  { %10503 = vst [vmem:[#allocation137_spill] sm:$0xff] %v7266_v25  ;;  %10505 = vst [vmem:[#allocation139_spill] sm:$0xff] %v7277_v22  ;;  %v7294_v25 = vld [vmem:[#allocation5 + $0x150] sm:$0xff]  ;;  %v7301_v46 = vsub.f32 %v7235_v29, %v10512_v39  ;;  %4908 = vmatpush1.bf16.msra.mxu0 %v10360_v41  ;;  %792 = vmatprep.mubr.f32.mxu0 %v10260_v31  ;;  %v7329_v41 = vsub.f32 %v7259_v16, %v9819_v4  ;;  %v7351_v16 = vld [vmem:[#allocation5 + $0x378] sm:$0xff] }
  0xd3   :  { %10507 = vst [vmem:[#allocation140_spill] sm:$0xff] %v7284_v62  ;;  %10509 = vst [vmem:[#allocation141_spill] sm:$0xff] %v7289_v24  ;;  %v10514_v62 = vand.u32 4294901760, %v7237_v56  ;;  %v7309_v24 = vld [vmem:[#allocation5 + $0x340] sm:$0xff]  ;;  %v7318_v39 = vsub.f32 %v7248_v50, %v10517_v59  ;;  %1581 = vmatmul.mubr.f32.gmra.mrb[2].mxu1 %v6336_v2  ;;  %4910 = vmatprep.subr.bf16.mxu0 %v10367_v7  ;;  %v10523_v7 = vand.u32 4294901760, %v7277_v22  ;;  %v10539_v59 = vand.u32 4294901760, %v7311_v10 }
  0xd4   :  { %10511 = vst [vmem:[#allocation143_spill] sm:$0xff] %v7294_v25  ;;  %10513 = vst [vmem:[#allocation144_spill] sm:$0xff] %v7301_v46  ;;  %v9822_v46 = vand.u32 4294901760, %v7275_v19  ;;  %5004 = vmatpush1.bf16.msra.mxu1 %v10374_v48  ;;  %1586 = vmatprep.mubr.f32.mxu1 %v10260_v31  ;;  %v10527_v48 = vand.u32 4294901760, %v7292_v23 }
  0xd5   :  { %v7306_v58 = vsub.f32 %v7237_v56, %v10514_v62  ;;  %10516 = vst [vmem:[#allocation146_spill] sm:$0xff] %v7311_v10  ;;  %10518 = vst [vmem:[#allocation147_spill] sm:$0xff] %v7318_v39  ;;  %v7333_v39 = vld [vmem:[#allocation5 + $0x178] sm:$0xff]  ;;  %v7345_v4 = vsub.f32 %v7277_v22, %v10523_v7  ;;  %794 = vmatmul.mubr.f32.gmra.mrb[4].mxu0 %v6381_v61  ;;  %5006 = vmatprep.subr.bf16.mxu1 %v10379_v13  ;;  %v10529_v7 = vand.u32 4294901760, %v7294_v25  ;;  %v10533_v13 = vld [vmem:[#allocation35_spill] sm:$0xff] }
  0xd6   :  { %10520 = vst [vmem:[#allocation149_spill] sm:$0xff] %v7329_v41  ;;  %10521 = vst [vmem:[#allocation150_spill] sm:$0xff] %v7333_v39  ;;  %v7340_v62 = vsub.f32 %v7275_v19, %v9822_v46  ;;  %v7349_v41 = vld [vmem:[#allocation5 + $0x368] sm:$0xff]  ;;  %v7358_v46 = vsub.f32 %v7292_v23, %v10527_v48  ;;  %4912 = vmatpush1.bf16.msra.mxu0 %v10383_v9  ;;  %799 = vmatprep.mubr.f32.mxu0 %v10260_v31  ;;  %v10534_v50 = vand.u32 4294901760, %v10533_v13  ;;  %v7391_v22 = vld [vmem:[#allocation5 + $0x370] sm:$0xff] }
  0xd7   :  { %10515 = vst [vmem:[#allocation145_spill] sm:$0xff] %v7306_v58  ;;  %v7322_v58 = vld [vmem:[#allocation5 + $0x168] sm:$0xff]  ;;  %10524 = vst [vmem:[#allocation152_spill] sm:$0xff] %v7345_v4  ;;  %v7363_v4 = vsub.f32 %v7294_v25, %v10529_v7  ;;  %v10535_v48 = vand.u32 4294901760, %v6497_v57  ;;  %v10537_v23 = vand.u32 4294901760, %v7309_v24  ;;  %v7389_v25 = vld [vmem:[#allocation5 + $0x360] sm:$0xff]  ;;  %1588 = vmatmul.mubr.f32.gmra.mrb[4].mxu1 %v6381_v61  ;;  %4914 = vmatprep.subr.bf16.mxu0 %v10389_v52 }
  0xd8   :  { %10519 = vst [vmem:[#allocation148_spill] sm:$0xff] %v7322_v58  ;;  %10522 = vst [vmem:[#allocation151_spill] sm:$0xff] %v7340_v62  ;;  %v7368_v62 = vld [vmem:[#allocation5 + $0x170] sm:$0xff]  ;;  %v10543_v57 = vand.u32 4294901760, %v6513_v44  ;;  %v10546_v13 = vand.u32 4294901760, %v7322_v58  ;;  %1593 = vmatprep.mubr.f32.mxu1 %v10260_v31  ;;  %v10549_v52 = vld [vmem:[#allocation36_spill] sm:$0xff] }
  0xd9   :  { %10525 = vst [vmem:[#allocation153_spill] sm:$0xff] %v7349_v41  ;;  %10526 = vst [vmem:[#allocation154_spill] sm:$0xff] %v7351_v16  ;;  %v7381_v7 = vsub.f32 %v7309_v24, %v10537_v23  ;;  %v10550_v44 = vand.u32 4294901760, %v10549_v52  ;;  %v10557_v52 = vand.u32 4294901760, %v7349_v41  ;;  %v10568_v9 = vand.u32 4294901760, %v7368_v62 }
  0xda   :  { %10528 = vst [vmem:[#allocation155_spill] sm:$0xff] %v7358_v46  ;;  %10530 = vst [vmem:[#allocation156_spill] sm:$0xff] %v7363_v4  ;;  %v7376_v46 = vpack.c.bf16 %v10535_v48, %v10534_v50  ;;  %v7386_v4 = vsub.f32 %v7311_v10, %v10539_v59  ;;  %v10544_v50 = vand.u32 4294901760, %v6519_v3  ;;  %v7404_v59 = vsub.f32 %v7322_v58, %v10546_v13  ;;  %v10551_v3 = vld [vmem:[#allocation37_spill] sm:$0xff]  ;;  %v7441_v48 = vld [vmem:[#allocation5 + $0x388] sm:$0xff] }
  0xdb   :  { %10531 = vst [vmem:[#allocation157_spill] sm:$0xff] %v7366_v6  ;;  %10532 = vst [vmem:[#allocation158_spill] sm:$0xff] %v7368_v62  ;;  %v10554_v10 = vand.u32 4294901760, %v7333_v39  ;;  %4916 = vmatpush1.bf16.msra.mxu0 %v10405_v55  ;;  %v10577_v55 = vand.u32 4294901760, %v7391_v22 }
  0xdc   :  { %10536 = vst [vmem:[#allocation35_spill] sm:$0xff] %v7376_v46  ;;  %10538 = vst [vmem:[#allocation159_spill] sm:$0xff] %v7381_v7  ;;  %v7399_v23 = vpack.c.bf16 %v10544_v50, %v10543_v57  ;;  %v10548_v7 = vld [vmem:[#allocation21_spill] sm:$0xff]  ;;  %v10552_v57 = vand.u32 4294901760, %v10551_v3  ;;  %v10559_v3 = vand.u32 4294901760, %v7351_v16 }
  0xdd   :  { %10540 = vst [vmem:[#allocation160_spill] sm:$0xff] %v7386_v4  ;;  %10541 = vst [vmem:[#allocation161_spill] sm:$0xff] %v7389_v25  ;;  %v7408_v4 = vld [vmem:[#allocation5 + $0x188] sm:$0xff]  ;;  %5008 = vmatpush1.bf16.msra.mxu1 %v10548_v7  ;;  %v7421_v13 = vsub.f32 %v7333_v39, %v10554_v10  ;;  %v10556_v7 = vld [vmem:[#allocation33_spill] sm:$0xff] }
  0xde   :  { %10542 = vst [vmem:[#allocation162_spill] sm:$0xff] %v7391_v22  ;;  %10545 = vst [vmem:[#allocation163_spill] sm:$0xff] %v7399_v23  ;;  %v7416_v50 = vpack.c.bf16 %v10552_v57, %v10550_v44  ;;  %801 = vmatmul.mubr.f32.gmra.mrb[6].mxu0 %v10556_v7  ;;  %5010 = vmatprep.subr.bf16.mxu1 %v10400_v33  ;;  %v7432_v44 = vsub.f32 %v7349_v41, %v10557_v52  ;;  %v10561_v33 = vld [vmem:[#allocation38_spill] sm:$0xff]  ;;  %v7466_v41 = vld [vmem:[#allocation5 + $0x190] sm:$0xff] }
  0xdf   :  { %10547 = vst [vmem:[#allocation164_spill] sm:$0xff] %v7404_v59  ;;  %10555 = vst [vmem:[#allocation36_spill] sm:$0xff] %v7421_v13  ;;  %v7425_v59 = vld [vmem:[#allocation5 + $0x198] sm:$0xff]  ;;  %v7437_v10 = vsub.f32 %v7351_v16, %v10559_v3  ;;  %887 = vmatprep.mubr.f32.mxu0 %v10260_v31  ;;  %v10562_v52 = vand.u32 4294901760, %v10561_v33  ;;  %v10566_v3 = vand.u32 4294901760, %v7366_v6  ;;  %v7464_v16 = vld [vmem:[#allocation5 + $0x180] sm:$0xff]  ;;  %1595 = vmatmul.mubr.f32.gmra.mrb[6].mxu1 %v10556_v7 }
  0xe0   :  { %10553 = vst [vmem:[#allocation21_spill] sm:$0xff] %v7416_v50  ;;  %10558 = vst [vmem:[#allocation37_spill] sm:$0xff] %v7432_v44  ;;  %v7443_v13 = vld [vmem:[#allocation5 + $0x398] sm:$0xff]  ;;  %v10563_v44 = vld [vmem:[#allocation39_spill] sm:$0xff]  ;;  %5398 = vmatprep.subr.bf16.mxu0 %v7399_v23  ;;  %1681 = vmatprep.mubr.f32.mxu1 %v10260_v31 }
  0xe1   :  { %10560 = vst [vmem:[#allocation33_spill] sm:$0xff] %v7437_v10  ;;  %v10564_v39 = vand.u32 4294901760, %v10563_v44  ;;  %v7456_v57 = vsub.f32 %v7366_v6, %v10566_v3  ;;  %v7461_v10 = vsub.f32 %v7368_v62, %v10568_v9  ;;  %v10572_v33 = vld [vmem:[#allocation46_spill] sm:$0xff]  ;;  %v7487_v6 = vld [vmem:[#allocation5 + $0x380] sm:$0xff]  ;;  %v7489_v23 = vld [vmem:[#allocation5 + $0x390] sm:$0xff]  ;;  %5012 = vmatpush1.bf16.msra.mxu1 %v10414_v37 }
  0xe2   :  { %889 = vmatmul.mubr.f32.vlgmr.msra.gmra.mrb[0].mxu0 %v10497_v45  ;;  %5014 = vmatprep.subr.bf16.mxu1 %v7376_v46  ;;  %v10586_v37 = vld [vmem:[#allocation53_spill] sm:$0xff]  ;;  %v10597_v62 = vld [vmem:[#allocation62_spill] sm:$0xff] }
  0xe3   :  { %v7451_v58 = vpack.c.bf16 %v10564_v39, %v10562_v52  ;;  %10567 = vst [vmem:[#allocation39_spill] sm:$0xff] %v7456_v57  ;;  %10569 = vst [vmem:[#allocation165_spill] sm:$0xff] %v7461_v10  ;;  %v10570_v39 = vld [vmem:[#allocation43_spill] sm:$0xff]  ;;  %v10573_v52 = vand.u32 4294901760, %v10572_v33  ;;  %v10575_v57 = vand.u32 4294901760, %v7389_v25  ;;  %v7484_v10 = vsub.f32 %v7391_v22, %v10577_v55  ;;  %v10581_v33 = vld [vmem:[#allocation42_spill] sm:$0xff]  ;;  %894 = vmatprep.mubr.f32.mxu0 %v10260_v31 }
  0xe4   :  { %v10571_v44 = vand.u32 4294901760, %v10570_v39  ;;  %v10579_v39 = vld [vmem:[#allocation40_spill] sm:$0xff]  ;;  %v10587_v22 = vand.u32 4294901760, %v10586_v37  ;;  %1683 = vmatmul.mubr.f32.vlgmr.msra.gmra.mrb[0].mxu1 %v10497_v45  ;;  %v10606_v45 = vld [vmem:[#allocation49_spill] sm:$0xff] }
  0xe5   :  { %10565 = vst [vmem:[#allocation38_spill] sm:$0xff] %v7451_v58  ;;  %v7479_v9 = vsub.f32 %v7389_v25, %v10575_v57  ;;  %10578 = vst [vmem:[#allocation166_spill] sm:$0xff] %v7484_v10  ;;  %v10582_v57 = vand.u32 4294901760, %v10581_v33  ;;  %5400 = vmatpush1.bf16.msra.mxu0 %v7451_v58  ;;  %v10593_v10 = vand.u32 4294901760, %v7441_v48  ;;  %v10599_v58 = vld [vmem:[#allocation63_spill] sm:$0xff]  ;;  %1688 = vmatprep.mubr.f32.mxu1 %v10260_v31 }
  0xe6   :  { %v7474_v3 = vpack.c.bf16 %v10573_v52, %v10571_v44  ;;  %v10580_v44 = vand.u32 4294901760, %v10579_v39  ;;  %v10588_v39 = vld [vmem:[#allocation54_spill] sm:$0xff]  ;;  %v10600_v46 = vand.u32 4294901760, %v10599_v58  ;;  %5016 = vmatpush1.bf16.msra.mxu1 %v7416_v50  ;;  %896 = vmatmul.mubr.f32.gmra.mrb[2].mxu0 %v6336_v2  ;;  %v10615_v50 = vld [vmem:[#allocation57_spill] sm:$0xff] }
  0xe7   :  { %10576 = vst [vmem:[#allocation46_spill] sm:$0xff] %v7479_v9  ;;  %v10584_v9 = vand.u32 4294901760, %v7408_v4  ;;  %v10589_v25 = vand.u32 4294901760, %v10588_v39  ;;  %v7526_v37 = vsub.f32 %v7441_v48, %v10593_v10  ;;  %v10602_v10 = vand.u32 4294901760, %v7464_v16  ;;  %901 = vmatprep.mubr.f32.mxu0 %v10260_v31 }
  0xe8   :  { %10574 = vst [vmem:[#allocation43_spill] sm:$0xff] %v7474_v3  ;;  %v7497_v52 = vpack.c.bf16 %v10582_v57, %v10580_v44  ;;  %v10591_v44 = vand.u32 4294901760, %v7425_v59  ;;  %5402 = vmatprep.subr.bf16.mxu0 %v7474_v3  ;;  %v10613_v3 = vand.u32 4294901760, %v7489_v23  ;;  %1690 = vmatmul.mubr.f32.gmra.mrb[2].mxu1 %v6336_v2  ;;  %v10635_v2 = vld [vmem:[#allocation73_spill] sm:$0xff] }
  0xe9   :  { %v7502_v55 = vsub.f32 %v7408_v4, %v10584_v9  ;;  %v7512_v33 = vpack.c.bf16 %v10589_v25, %v10587_v22  ;;  %10594 = vst [vmem:[#allocation167_spill] sm:$0xff] %v7526_v37  ;;  %v10595_v22 = vand.u32 4294901760, %v7443_v13  ;;  %v10598_v9 = vand.u32 4294901760, %v10597_v62  ;;  %1695 = vmatprep.mubr.f32.mxu1 %v10260_v31 }
  0xea   :  { %10583 = vst [vmem:[#allocation40_spill] sm:$0xff] %v7497_v52  ;;  %v7517_v57 = vsub.f32 %v7425_v59, %v10591_v44  ;;  %v10607_v62 = vand.u32 4294901760, %v10606_v45  ;;  %v10608_v44 = vld [vmem:[#allocation50_spill] sm:$0xff]  ;;  %5018 = vmatprep.subr.bf16.mxu1 %v7497_v52  ;;  %v10616_v45 = vand.u32 4294901760, %v10615_v50  ;;  %903 = vmatmul.mubr.f32.gmra.mrb[4].mxu0 %v6381_v61 }
  0xeb   :  { %10585 = vst [vmem:[#allocation42_spill] sm:$0xff] %v7502_v55  ;;  %10590 = vst [vmem:[#allocation53_spill] sm:$0xff] %v7512_v33  ;;  %v7531_v25 = vsub.f32 %v7443_v13, %v10595_v22  ;;  %v7546_v55 = vsub.f32 %v7464_v16, %v10602_v10  ;;  %v10604_v22 = vand.u32 4294901760, %v7466_v41  ;;  %v10609_v58 = vand.u32 4294901760, %v10608_v44  ;;  %5404 = vmatpush1.bf16.msra.mxu0 %v7512_v33  ;;  %v10625_v52 = vld [vmem:[#allocation78_spill] sm:$0xff]  ;;  %v10632_v33 = vld [vmem:[#allocation67_spill] sm:$0xff] }
  0xec   :  { %10592 = vst [vmem:[#allocation54_spill] sm:$0xff] %v7517_v57  ;;  %v7541_v57 = vpack.c.bf16 %v10600_v46, %v10598_v9  ;;  %v10611_v9 = vand.u32 4294901760, %v7487_v6  ;;  %v10626_v50 = vand.u32 4294901760, %v10625_v52  ;;  %v10636_v52 = vand.u32 4294901760, %v10635_v2  ;;  %908 = vmatprep.mubr.f32.mxu0 %v10260_v31  ;;  %1697 = vmatmul.mubr.f32.gmra.mrb[4].mxu1 %v6381_v61  ;;  %v10655_v61 = vld [vmem:[#allocation89_spill] sm:$0xff] }
  0xed   :  { %10596 = vst [vmem:[#allocation168_spill] sm:$0xff] %v7531_v25  ;;  %10603 = vst [vmem:[#allocation63_spill] sm:$0xff] %v7546_v55  ;;  %v7551_v39 = vsub.f32 %v7466_v41, %v10604_v22  ;;  %v7559_v46 = vpack.c.bf16 %v10609_v58, %v10607_v62  ;;  %v7569_v22 = vsub.f32 %v7489_v23, %v10613_v3  ;;  %v10620_v58 = vld [vmem:[#allocation70_spill] sm:$0xff]  ;;  %1702 = vmatprep.mubr.f32.mxu1 %v10260_v31 }
  0xee   :  { %10601 = vst [vmem:[#allocation62_spill] sm:$0xff] %v7541_v57  ;;  %v7564_v10 = vsub.f32 %v7487_v6, %v10611_v9  ;;  %v10621_v9 = vand.u32 4294901760, %v10620_v58  ;;  %5406 = vmatprep.subr.bf16.mxu0 %v7541_v57  ;;  %v10642_v57 = vld [vmem:[#allocation87_spill] sm:$0xff]  ;;  %910 = vmatmul.mubr.f32.gmra.mrb[6].mxu0 %v10556_v7  ;;  %v10660_v31 = vld [vmem:[#allocation98_spill] sm:$0xff] }
  0xef   :  { %10605 = vst [vmem:[#allocation169_spill] sm:$0xff] %v7551_v39  ;;  %10610 = vst [vmem:[#allocation49_spill] sm:$0xff] %v7559_v46  ;;  %v10617_v39 = vld [vmem:[#allocation60_spill] sm:$0xff]  ;;  %5020 = vmatpush1.bf16.msra.mxu1 %v7559_v46 }
  0xf0   :  { %10612 = vst [vmem:[#allocation50_spill] sm:$0xff] %v7564_v10  ;;  %10614 = vst [vmem:[#allocation170_spill] sm:$0xff] %v7569_v22  ;;  %v10618_v44 = vand.u32 4294901760, %v10617_v39  ;;  %v10622_v10 = vld [vmem:[#allocation71_spill] sm:$0xff]  ;;  %1704 = vmatmul.mubr.f32.gmra.mrb[6].mxu1 %v10556_v7 }
  0xf1   :  { %v10623_v55 = vand.u32 4294901760, %v10622_v10  ;;  %v10627_v22 = vld [vmem:[#allocation79_spill] sm:$0xff]  ;;  %v10633_v10 = vand.u32 4294901760, %v10632_v33  ;;  %v10643_v33 = vand.u32 4294901760, %v10642_v57 }
  0xf2   :  { %v7577_v62 = vpack.c.bf16 %v10618_v44, %v10616_v45  ;;  %v10628_v39 = vand.u32 4294901760, %v10627_v22  ;;  %v10630_v44 = vld [vmem:[#allocation66_spill] sm:$0xff] }
  0xf3   :  { %v7585_v3 = vpack.c.bf16 %v10623_v55, %v10621_v9  ;;  %v10631_v58 = vand.u32 4294901760, %v10630_v44  ;;  %v10637_v9 = vld [vmem:[#allocation75_spill] sm:$0xff] }
  0xf4   :  { %10619 = vst [vmem:[#allocation57_spill] sm:$0xff] %v7577_v62  ;;  %v7593_v45 = vpack.c.bf16 %v10628_v39, %v10626_v50  ;;  %5022 = vmatprep.subr.bf16.mxu1 %v7577_v62  ;;  %v10638_v22 = vand.u32 4294901760, %v10637_v9  ;;  %v10640_v39 = vld [vmem:[#allocation86_spill] sm:$0xff]  ;;  %v10647_v62 = vld [vmem:[#allocation93_spill] sm:$0xff] }
  0xf5   :  { %10624 = vst [vmem:[#allocation60_spill] sm:$0xff] %v7585_v3  ;;  %v7601_v55 = vpack.c.bf16 %v10633_v10, %v10631_v58  ;;  %5408 = vmatpush1.bf16.msra.mxu0 %v7585_v3  ;;  %v10641_v44 = vand.u32 4294901760, %v10640_v39  ;;  %v10645_v10 = vld [vmem:[#allocation92_spill] sm:$0xff]  ;;  %v10648_v9 = vand.u32 4294901760, %v10647_v62  ;;  %v10652_v3 = vld [vmem:[#allocation83_spill] sm:$0xff] }
  0xf6   :  { %10629 = vst [vmem:[#allocation70_spill] sm:$0xff] %v7593_v45  ;;  %v7609_v50 = vpack.c.bf16 %v10638_v22, %v10636_v52  ;;  %5410 = vmatprep.subr.bf16.mxu0 %v7593_v45  ;;  %v10646_v2 = vand.u32 4294901760, %v10645_v10  ;;  %v10650_v22 = vld [vmem:[#allocation82_spill] sm:$0xff]  ;;  %v10653_v57 = vand.u32 4294901760, %v10652_v3  ;;  %v10657_v10 = vld [vmem:[#allocation91_spill] sm:$0xff]  ;;  %v10665_v3 = vand.u32 4294901760, %v6869_v27 }
  0xf7   :  { %10634 = vst [vmem:[#allocation71_spill] sm:$0xff] %v7601_v55  ;;  %v7617_v58 = vpack.c.bf16 %v10643_v33, %v10641_v44  ;;  %5024 = vmatpush1.bf16.msra.mxu1 %v7601_v55  ;;  %v10651_v39 = vand.u32 4294901760, %v10650_v22  ;;  %v10656_v33 = vand.u32 4294901760, %v10655_v61  ;;  %v10658_v62 = vand.u32 4294901760, %v10657_v10  ;;  %v10662_v45 = vld [vmem:[#allocation99_spill] sm:$0xff] }
  0xf8   :  { %10639 = vst [vmem:[#allocation78_spill] sm:$0xff] %v7609_v50  ;;  %v7625_v52 = vpack.c.bf16 %v10648_v9, %v10646_v2  ;;  %5026 = vmatprep.subr.bf16.mxu1 %v7609_v50  ;;  %v10661_v9 = vand.u32 4294901760, %v10660_v31  ;;  %v10663_v22 = vand.u32 4294901760, %v10662_v45  ;;  %v10674_v45 = vld [vmem:[#allocation100_spill] sm:$0xff]  ;;  %v10679_v27 = vand.u32 4294901760, %v6903_v1 }
  0xf9   :  { %10644 = vst [vmem:[#allocation79_spill] sm:$0xff] %v7617_v58  ;;  %v7633_v44 = vpack.c.bf16 %v10653_v57, %v10651_v39  ;;  %v7641_v2 = vpack.c.bf16 %v10658_v62, %v10656_v33  ;;  %5412 = vmatpush1.bf16.msra.mxu0 %v7617_v58  ;;  %v10666_v39 = vld [vmem:[#allocation102_spill] sm:$0xff]  ;;  %v10669_v33 = vld [vmem:[#allocation95_spill] sm:$0xff]  ;;  %v10671_v62 = vld [vmem:[#allocation96_spill] sm:$0xff]  ;;  %v10675_v7 = vand.u32 4294901760, %v10674_v45  ;;  %v10690_v1 = vand.u32 4294901760, %v6935_v5 }
  0xfa   :  { %10649 = vst [vmem:[#allocation66_spill] sm:$0xff] %v7625_v52  ;;  %v7648_v55 = vpack.c.bf16 %v10663_v22, %v10661_v9  ;;  %5414 = vmatprep.subr.bf16.mxu0 %v7625_v52  ;;  %v10667_v57 = vand.u32 4294901760, %v10666_v39  ;;  %v10670_v10 = vand.u32 4294901760, %v10669_v33  ;;  %v10672_v31 = vand.u32 4294901760, %v10671_v62  ;;  %v10676_v9 = vld [vmem:[#allocation19_spill] sm:$0xff] }
  0xfb   :  { %10654 = vst [vmem:[#allocation67_spill] sm:$0xff] %v7633_v44  ;;  %10659 = vst [vmem:[#allocation73_spill] sm:$0xff] %v7641_v2  ;;  %5028 = vmatpush1.bf16.msra.mxu1 %v7633_v44  ;;  %v10677_v22 = vand.u32 4294901760, %v10676_v9  ;;  %v10683_v33 = vand.u32 4294901760, %v6953_v17  ;;  %v10685_v62 = vand.u32 4294901760, %v6886_v30  ;;  %v10693_v17 = vand.u32 4294901760, %v6995_v0 }
  0xfc   :  { %10664 = vst [vmem:[#allocation75_spill] sm:$0xff] %v7648_v55  ;;  %v7656_v61 = vpack.c.bf16 %v10667_v57, %v10665_v3  ;;  %v7663_v58 = vpack.c.bf16 %v10672_v31, %v10670_v10  ;;  %5030 = vmatprep.subr.bf16.mxu1 %v7641_v2  ;;  %v10680_v3 = vand.u32 4294901760, %v6905_v40  ;;  %v10682_v57 = vand.u32 4294901760, %v6951_v60  ;;  %v10686_v31 = vld [vmem:[#allocation104_spill] sm:$0xff] }
  0xfd   :  { %v7670_v52 = vpack.c.bf16 %v10677_v22, %v10675_v7  ;;  %5416 = vmatpush1.bf16.msra.mxu0 %v7648_v55  ;;  %v10687_v45 = vand.u32 4294901760, %v10686_v31  ;;  %v10689_v40 = vand.u32 4294901760, %v6920_v20  ;;  %v10692_v60 = vand.u32 4294901760, %v6993_v26 }
  0xfe   :  { %10668 = vst [vmem:[#allocation86_spill] sm:$0xff] %v7656_v61  ;;  %10673 = vst [vmem:[#allocation87_spill] sm:$0xff] %v7663_v58  ;;  %v7677_v39 = vpack.c.bf16 %v10680_v3, %v10679_v27  ;;  %5418 = vmatprep.subr.bf16.mxu0 %v7656_v61  ;;  %v7684_v10 = vpack.c.bf16 %v10683_v33, %v10682_v57  ;;  %v10695_v30 = vand.u32 4294901760, %v7040_v63  ;;  %v10696_v27 = vand.u32 4294901760, %v7042_v42 }
  0xff   :  { %10678 = vst [vmem:[#allocation92_spill] sm:$0xff] %v7670_v52  ;;  %5032 = vmatpush1.bf16.msra.mxu1 %v7663_v58  ;;  %v7691_v7 = vpack.c.bf16 %v10687_v45, %v10685_v62  ;;  %v7698_v9 = vpack.c.bf16 %v10690_v1, %v10689_v40  ;;  %v7705_v22 = vpack.c.bf16 %v10693_v17, %v10692_v60  ;;  %v10698_v20 = vand.u32 4294901760, %v6972_v38 }
 0x100   :  { %10681 = vst [vmem:[#allocation93_spill] sm:$0xff] %v7677_v39  ;;  %10684 = vst [vmem:[#allocation82_spill] sm:$0xff] %v7684_v10  ;;  %5034 = vmatprep.subr.bf16.mxu1 %v7670_v52  ;;  %v7712_v3 = vpack.c.bf16 %v10696_v27, %v10695_v30  ;;  %v10699_v5 = vand.u32 4294901760, %v6974_v43  ;;  %v10701_v26 = vand.u32 4294901760, %v7010_v21  ;;  %v10702_v0 = vand.u32 4294901760, %v7024_v47 }
 0x101   :  { %10688 = vst [vmem:[#allocation83_spill] sm:$0xff] %v7691_v7  ;;  %10691 = vst [vmem:[#allocation89_spill] sm:$0xff] %v7698_v9  ;;  %5420 = vmatpush1.bf16.msra.mxu0 %v7677_v39  ;;  %v10704_v42 = vand.u32 4294901760, %v7080_v51  ;;  %v10705_v63 = vand.u32 4294901760, %v7082_v32  ;;  %v10707_v43 = vand.u32 4294901760, %v7125_v18  ;;  %v10708_v38 = vand.u32 4294901760, %v7127_v36 }
 0x102   :  { %10694 = vst [vmem:[#allocation91_spill] sm:$0xff] %v7705_v22  ;;  %5422 = vmatprep.subr.bf16.mxu0 %v7684_v10  ;;  %10697 = vst [vmem:[#allocation98_spill] sm:$0xff] %v7712_v3  ;;  %v7719_v57 = vpack.c.bf16 %v10699_v5, %v10698_v20  ;;  %v7726_v33 = vpack.c.bf16 %v10702_v0, %v10701_v26  ;;  %v10710_v47 = vand.u32 4294901760, %v7060_v28  ;;  %v10711_v21 = vand.u32 4294901760, %v7062_v34  ;;  %v10801_v10 = vld [vmem:[#allocation45_spill] sm:$0xff] }
 0x103   :  { %5036 = vmatpush1.bf16.msra.mxu1 %v7691_v7  ;;  %v7733_v62 = vpack.c.bf16 %v10705_v63, %v10704_v42  ;;  %v7740_v31 = vpack.c.bf16 %v10708_v38, %v10707_v43  ;;  %v10713_v32 = vand.u32 4294901760, %v7096_v53  ;;  %v10714_v51 = vand.u32 4294901760, %v7110_v8  ;;  %v10738_v42 = vld [vmem:[#allocation131_spill] sm:$0xff]  ;;  %v10743_v38 = vld [vmem:[#allocation136_spill] sm:$0xff] }
 0x104   :  { %10700 = vst [vmem:[#allocation99_spill] sm:$0xff] %v7719_v57  ;;  %5038 = vmatprep.subr.bf16.mxu1 %v7698_v9  ;;  %10703 = vst [vmem:[#allocation102_spill] sm:$0xff] %v7726_v33  ;;  %v7747_v45 = vpack.c.bf16 %v10711_v21, %v10710_v47  ;;  %v10716_v18 = vand.u32 4294901760, %v7161_v49  ;;  %v10717_v36 = vand.u32 4294901760, %v7163_v54  ;;  %v10719_v28 = vand.u32 4294901760, %v7202_v35  ;;  %v10726_v49 = vld [vmem:[#allocation125_spill] sm:$0xff] }
 0x105   :  { %5424 = vmatpush1.bf16.msra.mxu0 %v7705_v22  ;;  %10706 = vst [vmem:[#allocation95_spill] sm:$0xff] %v7733_v62  ;;  %10709 = vst [vmem:[#allocation96_spill] sm:$0xff] %v7740_v31  ;;  %v7754_v40 = vpack.c.bf16 %v10714_v51, %v10713_v32  ;;  %v10720_v34 = vand.u32 4294901760, %v7204_v11  ;;  %v10722_v53 = vand.u32 4294901760, %v7145_v15  ;;  %v10723_v8 = vand.u32 4294901760, %v7147_v14  ;;  %v10733_v15 = vld [vmem:[#allocation139_spill] sm:$0xff] }
 0x106   :  { %5426 = vmatprep.subr.bf16.mxu0 %v7712_v3  ;;  %10712 = vst [vmem:[#allocation100_spill] sm:$0xff] %v7747_v45  ;;  %v7761_v1 = vpack.c.bf16 %v10717_v36, %v10716_v18  ;;  %v10725_v54 = vand.u32 4294901760, %v7177_v12  ;;  %v10727_v30 = vand.u32 4294901760, %v10726_v49  ;;  %v10729_v11 = vand.u32 4294901760, %v7235_v29  ;;  %v10736_v12 = vld [vmem:[#allocation130_spill] sm:$0xff]  ;;  %v10750_v36 = vld [vmem:[#allocation153_spill] sm:$0xff] }
 0x107   :  { %5040 = vmatpush1.bf16.msra.mxu1 %v7719_v57  ;;  %10715 = vst [vmem:[#allocation19_spill] sm:$0xff] %v7754_v40  ;;  %v7768_v60 = vpack.c.bf16 %v10720_v34, %v10719_v28  ;;  %v7775_v17 = vpack.c.bf16 %v10723_v8, %v10722_v53  ;;  %v10730_v35 = vand.u32 4294901760, %v7237_v56  ;;  %v10732_v14 = vand.u32 4294901760, %v7275_v19  ;;  %v10741_v29 = vld [vmem:[#allocation134_spill] sm:$0xff]  ;;  %v10797_v3 = vld [vmem:[#allocation44_spill] sm:$0xff]  ;;  %v10802_v9 = vld [vmem:[#allocation47_spill] sm:$0xff] }
 0x108   :  { %5042 = vmatprep.subr.bf16.mxu1 %v7726_v33  ;;  %10718 = vst [vmem:[#allocation104_spill] sm:$0xff] %v7761_v1  ;;  %v7782_v27 = vpack.c.bf16 %v10727_v30, %v10725_v54  ;;  %v10734_v5 = vand.u32 4294901760, %v10733_v15  ;;  %v10737_v0 = vand.u32 4294901760, %v10736_v12  ;;  %v10739_v63 = vand.u32 4294901760, %v10738_v42  ;;  %v10747_v32 = vld [vmem:[#allocation146_spill] sm:$0xff]  ;;  %v10757_v30 = vld [vmem:[#allocation143_spill] sm:$0xff] }
 0x109   :  { %5428 = vmatpush1.bf16.msra.mxu0 %v7733_v62  ;;  %10721 = vst [vmem:[#allocation171_spill] sm:$0xff] %v7768_v60  ;;  %10724 = vst [vmem:[#allocation172_spill] sm:$0xff] %v7775_v17  ;;  %v7789_v20 = vpack.c.bf16 %v10730_v35, %v10729_v11  ;;  %v10742_v56 = vand.u32 4294901760, %v10741_v29  ;;  %v10744_v47 = vand.u32 4294901760, %v10743_v38  ;;  %v10746_v19 = vand.u32 4294901760, %v7309_v24  ;;  %v10752_v34 = vld [vmem:[#allocation154_spill] sm:$0xff] }
 0x10a   :  { %5430 = vmatprep.subr.bf16.mxu0 %v7740_v31  ;;  %10728 = vst [vmem:[#allocation125_spill] sm:$0xff] %v7782_v27  ;;  %v7796_v26 = vpack.c.bf16 %v10734_v5, %v10732_v14  ;;  %v7803_v43 = vpack.c.bf16 %v10739_v63, %v10737_v0  ;;  %v10748_v51 = vand.u32 4294901760, %v10747_v32  ;;  %v10751_v28 = vand.u32 4294901760, %v10750_v36  ;;  %v10755_v54 = vld [vmem:[#allocation142_spill] sm:$0xff]  ;;  %v10760_v24 = vld [vmem:[#allocation148_spill] sm:$0xff]  ;;  %v10765_v0 = vld [vmem:[#allocation161_spill] sm:$0xff] }
 0x10b   :  { %5044 = vmatpush1.bf16.msra.mxu1 %v7747_v45  ;;  %10731 = vst [vmem:[#allocation173_spill] sm:$0xff] %v7789_v20  ;;  %v7810_v21 = vpack.c.bf16 %v10744_v47, %v10742_v56  ;;  %v10753_v53 = vand.u32 4294901760, %v10752_v34  ;;  %v10756_v49 = vand.u32 4294901760, %v10755_v54  ;;  %v10758_v11 = vand.u32 4294901760, %v10757_v30  ;;  %v10762_v15 = vld [vmem:[#allocation150_spill] sm:$0xff]  ;;  %v10773_v32 = vld [vmem:[#allocation157_spill] sm:$0xff] }
 0x10c   :  { %5046 = vmatprep.subr.bf16.mxu1 %v7754_v40  ;;  %10735 = vst [vmem:[#allocation139_spill] sm:$0xff] %v7796_v26  ;;  %10740 = vst [vmem:[#allocation130_spill] sm:$0xff] %v7803_v43  ;;  %v7817_v18 = vpack.c.bf16 %v10748_v51, %v10746_v19  ;;  %v10761_v14 = vand.u32 4294901760, %v10760_v24  ;;  %v10763_v5 = vand.u32 4294901760, %v10762_v15  ;;  %v10766_v42 = vand.u32 4294901760, %v10765_v0  ;;  %v10767_v63 = vld [vmem:[#allocation162_spill] sm:$0xff] }
 0x10d   :  { %5432 = vmatpush1.bf16.msra.mxu0 %v7761_v1  ;;  %10745 = vst [vmem:[#allocation131_spill] sm:$0xff] %v7810_v21  ;;  %v7824_v8 = vpack.c.bf16 %v10753_v53, %v10751_v28  ;;  %v7831_v35 = vpack.c.bf16 %v10758_v11, %v10756_v49  ;;  %v10768_v29 = vand.u32 4294901760, %v10767_v63  ;;  %v10770_v38 = vand.u32 4294901760, %v7441_v48  ;;  %v10775_v36 = vld [vmem:[#allocation158_spill] sm:$0xff]  ;;  %v7899_v0 = vld [vmem:[#allocation5 + $0x1b0] sm:$0xff] }
 0x10e   :  { %5434 = vmatprep.subr.bf16.mxu0 %v7768_v60  ;;  %10749 = vst [vmem:[#allocation134_spill] sm:$0xff] %v7817_v18  ;;  %v7838_v12 = vpack.c.bf16 %v10763_v5, %v10761_v14  ;;  %v10771_v47 = vand.u32 4294901760, %v7443_v13  ;;  %v10774_v51 = vand.u32 4294901760, %v10773_v32  ;;  %v10776_v28 = vand.u32 4294901760, %v10775_v36  ;;  %v7894_v15 = vld [vmem:[#allocation5 + $0x3b8] sm:$0xff]  ;;  %v7897_v5 = vld [vmem:[#allocation5 + $0x1a0] sm:$0xff] }
 0x10f   :  { %5048 = vmatpush1.bf16.msra.mxu1 %v7775_v17  ;;  %10754 = vst [vmem:[#allocation136_spill] sm:$0xff] %v7824_v8  ;;  %10759 = vst [vmem:[#allocation146_spill] sm:$0xff] %v7831_v35  ;;  %v7845_v56 = vpack.c.bf16 %v10768_v29, %v10766_v42  ;;  %v10778_v53 = vand.u32 4294901760, %v7408_v4  ;;  %v10779_v54 = vand.u32 4294901760, %v7425_v59  ;;  %v10781_v48 = vand.u32 4294901760, %v7487_v6  ;;  %v7886_v6 = vld [vmem:[#allocation5 + $0x1a8] sm:$0xff] }
 0x110   :  { %5050 = vmatprep.subr.bf16.mxu1 %v7782_v27  ;;  %10764 = vst [vmem:[#allocation153_spill] sm:$0xff] %v7838_v12  ;;  %v7852_v19 = vpack.c.bf16 %v10771_v47, %v10770_v38  ;;  %v7859_v34 = vpack.c.bf16 %v10776_v28, %v10774_v51  ;;  %v10782_v13 = vand.u32 4294901760, %v7489_v23  ;;  %v10784_v11 = vand.u32 4294901760, %v7464_v16  ;;  %v7888_v23 = vld [vmem:[#allocation5 + $0x1b8] sm:$0xff]  ;;  %v7890_v59 = vld [vmem:[#allocation5 + $0x3a8] sm:$0xff]  ;;  %v7904_v38 = vld [vmem:[#allocation5 + $0x3a0] sm:$0xff] }
 0x111   :  { %5436 = vmatpush1.bf16.msra.mxu0 %v7789_v20  ;;  %10769 = vst [vmem:[#allocation154_spill] sm:$0xff] %v7845_v56  ;;  %v7866_v49 = vpack.c.bf16 %v10779_v54, %v10778_v53  ;;  %v10785_v4 = vand.u32 4294901760, %v7466_v41  ;;  %v9889_v14 = vand.u32 4294901760, %v7886_v6  ;;  %v9888_v16 = vand.u32 4294901760, %v7888_v23  ;;  %v7906_v47 = vld [vmem:[#allocation5 + $0x3b0] sm:$0xff]  ;;  %v7928_v54 = vld [vmem:[#allocation5 + $0x1c8] sm:$0xff] }
 0x112   :  { %5438 = vmatprep.subr.bf16.mxu0 %v7796_v26  ;;  %10772 = vst [vmem:[#allocation142_spill] sm:$0xff] %v7852_v19  ;;  %10777 = vst [vmem:[#allocation143_spill] sm:$0xff] %v7859_v34  ;;  %v7873_v30 = vpack.c.bf16 %v10782_v13, %v10781_v48  ;;  %v9887_v41 = vand.u32 4294901760, %v7890_v59  ;;  %v9884_v42 = vand.u32 4294901760, %v7894_v15  ;;  %v9886_v63 = vand.u32 4294901760, %v7897_v5  ;;  %v7930_v48 = vld [vmem:[#allocation5 + $0x1d8] sm:$0xff] }
 0x113   :  { %5052 = vmatpush1.bf16.msra.mxu1 %v7803_v43  ;;  %10780 = vst [vmem:[#allocation148_spill] sm:$0xff] %v7866_v49  ;;  %v7881_v24 = vpack.c.bf16 %v10785_v4, %v10784_v11  ;;  %v9885_v29 = vand.u32 4294901760, %v7899_v0  ;;  %v7912_v32 = vpack.c.bf16 %v9888_v16, %v9889_v14  ;;  %v9899_v51 = vand.u32 4294901760, %v7904_v38  ;;  %v7932_v13 = vld [vmem:[#allocation5 + $0x3c8] sm:$0xff]  ;;  %v1768_v16 = vld [vmem:[#allocation5 + $0x1d0] sm:$0xff]  ;;  %v1837_v26 = vld [vmem:[#allocation5 + $0x3f8] sm:$0xff] }
 0x114   :  { %5054 = vmatprep.subr.bf16.mxu1 %v7810_v21  ;;  %10783 = vst [vmem:[#allocation150_spill] sm:$0xff] %v7873_v30  ;;  %v9898_v36 = vand.u32 4294901760, %v7906_v47  ;;  %v7920_v28 = vpack.c.bf16 %v9884_v42, %v9887_v41  ;;  %v1966_v4 = vand.u32 4294901760, %v7928_v54  ;;  %v1970_v42 = vand.u32 4294901760, %v7930_v48  ;;  %v1766_v41 = vld [vmem:[#allocation5 + $0x1c0] sm:$0xff]  ;;  %v1772_v21 = vld [vmem:[#allocation5 + $0x1f0] sm:$0xff] }
 0x115   :  { %5440 = vmatpush1.bf16.msra.mxu0 %v7817_v18  ;;  %10786 = vst [vmem:[#allocation161_spill] sm:$0xff] %v7881_v24  ;;  %10787 = vst [vmem:[#allocation162_spill] sm:$0xff] %v7912_v32  ;;  %v7926_v53 = vpack.c.bf16 %v9885_v29, %v9886_v63  ;;  %v1833_v29 = vld [vmem:[#allocation5 + $0x3d8] sm:$0xff]  ;;  %v3436_v63 = vand.u32 4294901760, %v7932_v13  ;;  %v3448_v43 = vand.u32 4294901760, %v1837_v26  ;;  %v1980_v1 = vand.u32 4294901760, %v1772_v21 }
 0x116   :  { %5442 = vmatprep.subr.bf16.mxu0 %v7824_v8  ;;  %10788 = vst [vmem:[#allocation157_spill] sm:$0xff] %v7920_v28  ;;  %v7939_v11 = vpack.c.bf16 %v9898_v36, %v9899_v51  ;;  %v3440_v14 = vand.u32 4294901760, %v1833_v29  ;;  %v7947_v36 = vpack.c.bf16 %v1970_v42, %v1966_v4  ;;  %v1771_v8 = vld [vmem:[#allocation5 + $0x1e8] sm:$0xff]  ;;  %v1773_v18 = vld [vmem:[#allocation5 + $0x1f8] sm:$0xff]  ;;  %v1834_v27 = vld [vmem:[#allocation5 + $0x3e0] sm:$0xff]  ;;  %v9979_v22 = vand.u32 4294901760, %v10797_v3 }
 0x117   :  { %5056 = vmatpush1.bf16.msra.mxu1 %v7831_v35  ;;  %10789 = vst [vmem:[#allocation158_spill] sm:$0xff] %v7926_v53  ;;  %v1978_v35 = vand.u32 4294901760, %v1773_v18  ;;  %v1836_v17 = vld [vmem:[#allocation5 + $0x3f0] sm:$0xff]  ;;  %v3446_v40 = vand.u32 4294901760, %v1834_v27  ;;  %v9981_v7 = vand.u32 4294901760, %v10802_v9  ;;  %v10803_v61 = vand.u32 4294901760, %v7886_v6 }
 0x118   :  { %5058 = vmatprep.subr.bf16.mxu1 %v7838_v12  ;;  %10790 = vst [vmem:[#allocation174_spill] sm:$0xff] %v7939_v11  ;;  %10791 = vst [vmem:[#allocation175_spill] sm:$0xff] %v7947_v36  ;;  %v1974_v12 = vand.u32 4294901760, %v1771_v8  ;;  %v10795_v31 = vld [vmem:[#allocation41_spill] sm:$0xff]  ;;  %v3450_v45 = vand.u32 4294901760, %v1836_v17  ;;  %v10805_v52 = vand.u32 4294901760, %v7888_v23 }
 0x119   :  { %5444 = vmatpush1.bf16.msra.mxu0 %v7845_v56  ;;  %v9974_v62 = vand.u32 4294901760, %v10795_v31  ;;  %v7981_v55 = vsub.f32 %v7886_v6, %v10803_v61  ;;  %v10811_v61 = vand.u32 4294901760, %v7897_v5 }
 0x11a   :  { %5446 = vmatprep.subr.bf16.mxu0 %v7852_v19  ;;  %v1832_v19 = vld [vmem:[#allocation5 + $0x3d0] sm:$0xff]  ;;  %v7971_v57 = vpack.c.bf16 %v3450_v45, %v3446_v40 }
 0x11b   :  { %5060 = vmatpush1.bf16.msra.mxu1 %v7859_v34  ;;  %v3442_v56 = vand.u32 4294901760, %v1832_v19  ;;  %10804 = vst [vmem:[#allocation183_spill] sm:$0xff] %v7981_v55  ;;  %v8002_v6 = vsub.f32 %v7897_v5, %v10811_v61  ;;  %v8021_v5 = vsub.f32 %v7928_v54, %v1966_v4  ;;  %v8024_v61 = vsub.f32 %v7930_v48, %v1970_v42 }
 0x11c   :  { %5062 = vmatprep.subr.bf16.mxu1 %v7866_v49  ;;  %v7949_v49 = vpack.c.bf16 %v3440_v14, %v3436_v63  ;;  %10800 = vst [vmem:[#allocation182_spill] sm:$0xff] %v7971_v57  ;;  %v8040_v54 = vsub.f32 %v1771_v8, %v1974_v12  ;;  %v8042_v4 = vsub.f32 %v1773_v18, %v1978_v35  ;;  %v10838_v18 = vld [vmem:[#allocation52_spill] sm:$0xff] }
 0x11d   :  { %5448 = vmatpush1.bf16.msra.mxu0 %v7873_v30  ;;  %v1968_v30 = vand.u32 4294901760, %v1766_v41  ;;  %10812 = vst [vmem:[#allocation187_spill] sm:$0xff] %v8002_v6  ;;  %10819 = vst [vmem:[#allocation191_spill] sm:$0xff] %v8021_v5  ;;  %v10850_v48 = vand.u32 4294901760, %v10838_v18 }
 0x11e   :  { %5450 = vmatprep.subr.bf16.mxu0 %v7920_v28  ;;  %10792 = vst [vmem:[#allocation176_spill] sm:$0xff] %v7949_v49  ;;  %v1835_v28 = vld [vmem:[#allocation5 + $0x3e8] sm:$0xff]  ;;  %10820 = vst [vmem:[#allocation192_spill] sm:$0xff] %v8024_v61 }
 0x11f   :  { %5064 = vmatpush1.bf16.msra.mxu1 %v7881_v24  ;;  %v1830_v24 = vld [vmem:[#allocation5 + $0x3c0] sm:$0xff]  ;;  %v3444_v20 = vand.u32 4294901760, %v1835_v28  ;;  %10827 = vst [vmem:[#allocation199_spill] sm:$0xff] %v8040_v54  ;;  %10828 = vst [vmem:[#allocation200_spill] sm:$0xff] %v8042_v4 }
 0x120   :  { %5066 = vmatprep.subr.bf16.mxu1 %v7912_v32  ;;  %v1972_v32 = vand.u32 4294901760, %v1768_v16  ;;  %v3438_v51 = vand.u32 4294901760, %v1830_v24 }
 0x121   :  { %5452 = vmatpush1.bf16.msra.mxu0 %v7939_v11  ;;  %v1770_v11 = vld [vmem:[#allocation5 + $0x1e0] sm:$0xff]  ;;  %v7963_v33 = vpack.c.bf16 %v3448_v43, %v3444_v20  ;;  %v8044_v42 = vsub.f32 %v1835_v28, %v3444_v20  ;;  %v3532_v20 = vsub.f32 %v10802_v9, %v9981_v7  ;;  %v10849_v7 = vld [vmem:[#allocation74_spill] sm:$0xff] }
 0x122   :  { %v7951_v34 = vpack.c.bf16 %v1972_v32, %v1968_v30  ;;  %5454 = vmatprep.subr.bf16.mxu0 %v7949_v49  ;;  %v1976_v60 = vand.u32 4294901760, %v1770_v11  ;;  %v10860_v50 = vand.u32 4294901760, %v10849_v7 }
 0x123   :  { %5068 = vmatpush1.bf16.msra.mxu1 %v7926_v53  ;;  %v7954_v53 = vpack.c.bf16 %v3442_v56, %v3438_v51  ;;  %10798 = vst [vmem:[#allocation180_spill] sm:$0xff] %v7963_v33  ;;  %10829 = vst [vmem:[#allocation201_spill] sm:$0xff] %v8044_v42 }
 0x124   :  { %10793 = vst [vmem:[#allocation177_spill] sm:$0xff] %v7951_v34  ;;  %5070 = vmatprep.subr.bf16.mxu1 %v7947_v36  ;;  %v7960_v36 = vpack.c.bf16 %v1978_v35, %v1974_v12  ;;  %v7965_v49 = vpack.c.bf16 %v1980_v1, %v1976_v60  ;;  %v10839_v12 = vld [vmem:[#allocation55_spill] sm:$0xff] }
 0x125   :  { %10794 = vst [vmem:[#allocation178_spill] sm:$0xff] %v7954_v53  ;;  %5456 = vmatpush1.bf16.msra.mxu0 %v7954_v53  ;;  %v2062_v53 = vsub.f32 %v10797_v3, %v9979_v22  ;;  %v10809_v22 = vand.u32 4294901760, %v7894_v15 }
 0x126   :  { %10796 = vst [vmem:[#allocation179_spill] sm:$0xff] %v7960_v36  ;;  %10799 = vst [vmem:[#allocation181_spill] sm:$0xff] %v7965_v49  ;;  %5458 = vmatprep.subr.bf16.mxu0 %v7963_v33 }
 0x127   :  { %5072 = vmatpush1.bf16.msra.mxu1 %v7951_v34  ;;  %v2050_v34 = vsub.f32 %v10795_v31, %v9974_v62  ;;  %v7986_v62 = vsub.f32 %v7888_v23, %v10805_v52  ;;  %v7996_v39 = vsub.f32 %v7894_v15, %v10809_v22  ;;  %v10813_v52 = vand.u32 4294901760, %v7899_v0 }
 0x128   :  { %5074 = vmatprep.subr.bf16.mxu1 %v7960_v36  ;;  %v10807_v36 = vand.u32 4294901760, %v7890_v59  ;;  %v10817_v22 = vand.u32 4294901760, %v7906_v47 }
 0x129   :  { %10806 = vst [vmem:[#allocation184_spill] sm:$0xff] %v7986_v62  ;;  %10810 = vst [vmem:[#allocation186_spill] sm:$0xff] %v7996_v39  ;;  %v8007_v23 = vsub.f32 %v7899_v0, %v10813_v52  ;;  %v8027_v0 = vsub.f32 %v7932_v13, %v3436_v63  ;;  %v8029_v52 = vsub.f32 %v1833_v29, %v3440_v14  ;;  %5460 = vmatpush1.bf16.msra.mxu0 %v7971_v57  ;;  %v10843_v13 = vld [vmem:[#allocation61_spill] sm:$0xff] }
 0x12a   :  { %v7991_v58 = vsub.f32 %v7890_v59, %v10807_v36  ;;  %v10815_v59 = vand.u32 4294901760, %v7904_v38  ;;  %v8017_v15 = vsub.f32 %v7906_v47, %v10817_v22  ;;  %v8036_v47 = vsub.f32 %v1830_v24, %v3438_v51  ;;  %v10841_v51 = vld [vmem:[#allocation58_spill] sm:$0xff] }
 0x12b   :  { %10814 = vst [vmem:[#allocation188_spill] sm:$0xff] %v8007_v23  ;;  %5076 = vmatpush1.bf16.msra.mxu1 %v7965_v49  ;;  %10821 = vst [vmem:[#allocation193_spill] sm:$0xff] %v8027_v0  ;;  %v8038_v22 = vsub.f32 %v1832_v19, %v3442_v56  ;;  %v8046_v63 = vsub.f32 %v1837_v26, %v3448_v43  ;;  %v8048_v14 = vsub.f32 %v1770_v11, %v1976_v60 }
 0x12c   :  { %10808 = vst [vmem:[#allocation185_spill] sm:$0xff] %v7991_v58  ;;  %v8012_v36 = vsub.f32 %v7904_v38, %v10815_v59  ;;  %10818 = vst [vmem:[#allocation190_spill] sm:$0xff] %v8017_v15  ;;  %v8032_v38 = vsub.f32 %v1766_v41, %v1968_v30  ;;  %v8034_v59 = vsub.f32 %v1768_v16, %v1972_v32  ;;  %v2051_v24 = vand.u32 4294901760, %v2050_v34  ;;  %v10840_v34 = vld [vmem:[#allocation56_spill] sm:$0xff] }
 0x12d   :  { %10822 = vst [vmem:[#allocation194_spill] sm:$0xff] %v8029_v52  ;;  %10825 = vst [vmem:[#allocation197_spill] sm:$0xff] %v8036_v47  ;;  %v8050_v29 = vsub.f32 %v1772_v21, %v1980_v1  ;;  %v8052_v30 = vsub.f32 %v1834_v27, %v3446_v40  ;;  %v8054_v16 = vsub.f32 %v1836_v17, %v3450_v45  ;;  %v2063_v41 = vand.u32 4294901760, %v2062_v53  ;;  %v10836_v40 = vld [vmem:[#allocation48_spill] sm:$0xff]  ;;  %v10837_v17 = vld [vmem:[#allocation51_spill] sm:$0xff] }
 0x12e   :  { %10816 = vst [vmem:[#allocation189_spill] sm:$0xff] %v8012_v36  ;;  %10823 = vst [vmem:[#allocation195_spill] sm:$0xff] %v8032_v38  ;;  %v10835_v56 = vand.u32 4294901760, %v10801_v10  ;;  %v3533_v60 = vand.u32 4294901760, %v3532_v20  ;;  %v9980_v27 = vand.u32 4294901760, %v10836_v40  ;;  %v9982_v21 = vand.u32 4294901760, %v10837_v17 }
 0x12f   :  { %10824 = vst [vmem:[#allocation196_spill] sm:$0xff] %v8034_v59  ;;  %10826 = vst [vmem:[#allocation198_spill] sm:$0xff] %v8038_v22  ;;  %v5077_v26 = vpack.c.bf16 %v2063_v41, %v2051_v24  ;;  %v9987_v32 = vand.u32 4294901760, %v10840_v34  ;;  %v10842_v53 = vld [vmem:[#allocation59_spill] sm:$0xff]  ;;  %v10844_v24 = vld [vmem:[#allocation64_spill] sm:$0xff]  ;;  %v3526_v11 = vsub.f32 %v10838_v18, %v10850_v48  ;;  %v10851_v41 = vand.u32 4294901760, %v10839_v12 }
 0x130   :  { %10830 = vst [vmem:[#allocation202_spill] sm:$0xff] %v8046_v63  ;;  %10831 = vst [vmem:[#allocation203_spill] sm:$0xff] %v8048_v14  ;;  %v3520_v8 = vsub.f32 %v10801_v10, %v10835_v56  ;;  %v2056_v45 = vsub.f32 %v10836_v40, %v9980_v27  ;;  %v10845_v56 = vld [vmem:[#allocation65_spill] sm:$0xff]  ;;  %v10846_v20 = vld [vmem:[#allocation68_spill] sm:$0xff]  ;;  %v2068_v28 = vsub.f32 %v10837_v17, %v9982_v21  ;;  %v10852_v27 = vand.u32 4294901760, %v10841_v51 }
 0x131   :  { %10832 = vst [vmem:[#allocation204_spill] sm:$0xff] %v8050_v29  ;;  %10833 = vst [vmem:[#allocation205_spill] sm:$0xff] %v8052_v30  ;;  %5078 = vmatprep.subr.bf16.mxu1 %v5077_v26  ;;  %v10853_v19 = vand.u32 4294901760, %v10842_v53  ;;  %v10854_v26 = vand.u32 4294901760, %v10843_v13  ;;  %v10855_v57 = vand.u32 4294901760, %v10844_v24  ;;  %v10856_v49 = vand.u32 4294901760, %v10845_v56 }
 0x132   :  { %10834 = vst [vmem:[#allocation206_spill] sm:$0xff] %v8054_v16  ;;  %v3521_v43 = vand.u32 4294901760, %v3520_v8  ;;  %v2057_v35 = vand.u32 4294901760, %v2056_v45  ;;  %v3538_v8 = vsub.f32 %v10839_v12, %v10851_v41  ;;  %v2086_v45 = vsub.f32 %v10841_v51, %v10852_v27 }
 0x133   :  { %v3544_v21 = vsub.f32 %v10842_v53, %v10853_v19  ;;  %v3556_v48 = vsub.f32 %v10843_v13, %v10854_v26  ;;  %v2080_v41 = vsub.f32 %v10844_v24, %v10855_v57  ;;  %v10857_v33 = vand.u32 4294901760, %v10846_v20  ;;  %v10861_v24 = vld [vmem:[#allocation76_spill] sm:$0xff] }
 0x134   :  { %v5461_v1 = vpack.c.bf16 %v3533_v60, %v3521_v43  ;;  %v10847_v43 = vld [vmem:[#allocation69_spill] sm:$0xff]  ;;  %v2074_v60 = vsub.f32 %v10840_v34, %v9987_v32  ;;  %v2092_v32 = vsub.f32 %v10845_v56, %v10856_v49  ;;  %v2110_v57 = vsub.f32 %v10849_v7, %v10860_v50  ;;  %v10863_v53 = vld [vmem:[#allocation80_spill] sm:$0xff] }
 0x135   :  { %v3550_v27 = vsub.f32 %v10846_v20, %v10857_v33  ;;  %v10858_v2 = vand.u32 4294901760, %v10847_v43  ;;  %v2069_v46 = vand.u32 4294901760, %v2068_v28  ;;  %v10014_v13 = vand.u32 4294901760, %v10861_v24  ;;  %v10862_v49 = vld [vmem:[#allocation77_spill] sm:$0xff] }
 0x136   :  { %5462 = vmatprep.subr.bf16.mxu0 %v5461_v1  ;;  %v10848_v1 = vld [vmem:[#allocation72_spill] sm:$0xff]  ;;  %v10013_v56 = vand.u32 4294901760, %v10862_v49  ;;  %v10012_v12 = vand.u32 4294901760, %v10863_v53  ;;  %v3527_v33 = vand.u32 4294901760, %v3526_v11  ;;  %v3539_v20 = vand.u32 4294901760, %v3538_v8 }
 0x137   :  { %v3562_v19 = vsub.f32 %v10847_v43, %v10858_v2  ;;  %v10859_v44 = vand.u32 4294901760, %v10848_v1  ;;  %v2075_v18 = vand.u32 4294901760, %v2074_v60  ;;  %v2087_v51 = vand.u32 4294901760, %v2086_v45 }
 0x138   :  { %v3545_v2 = vand.u32 4294901760, %v3544_v21  ;;  %v3557_v43 = vand.u32 4294901760, %v3556_v48  ;;  %v2081_v34 = vand.u32 4294901760, %v2080_v41  ;;  %v2093_v17 = vand.u32 4294901760, %v2092_v32  ;;  %v10864_v21 = vld [vmem:[#allocation81_spill] sm:$0xff]  ;;  %v10865_v32 = vld [vmem:[#allocation84_spill] sm:$0xff] }
 0x139   :  { %v2098_v26 = vsub.f32 %v10848_v1, %v10859_v44  ;;  %v3551_v44 = vand.u32 4294901760, %v3550_v27  ;;  %v3563_v1 = vand.u32 4294901760, %v3562_v19  ;;  %v2111_v9 = vand.u32 4294901760, %v2110_v57 }
 0x13a   :  { %v3568_v50 = vsub.f32 %v10861_v24, %v10014_v13  ;;  %v3580_v28 = vsub.f32 %v10862_v49, %v10013_v56  ;;  %v8130_v11 = vsub.f32 %v10863_v53, %v10012_v12  ;;  %v8134_v45 = vpack.c.bf16 %v2069_v46, %v2057_v35  ;;  %v10872_v12 = vld [vmem:[#allocation85_spill] sm:$0xff]  ;;  %v10885_v49 = vld [vmem:[#allocation31_spill] sm:$0xff] }
 0x13b   :  { %v2099_v40 = vand.u32 4294901760, %v2098_v26  ;;  %v8136_v48 = vpack.c.bf16 %v3539_v20, %v3527_v33  ;;  %v8138_v41 = vpack.c.bf16 %v2087_v51, %v2075_v18  ;;  %v8140_v27 = vpack.c.bf16 %v3557_v43, %v3545_v2  ;;  %v10876_v20 = vld [vmem:[#allocation90_spill] sm:$0xff]  ;;  %v10879_v2 = vld [vmem:[#allocation16_spill] sm:$0xff]  ;;  %v10883_v53 = vld [vmem:[#allocation97_spill] sm:$0xff] }
 0x13c   :  { %v8142_v19 = vpack.c.bf16 %v2093_v17, %v2081_v34  ;;  %v8144_v26 = vpack.c.bf16 %v3563_v1, %v3551_v44  ;;  %v3569_v13 = vand.u32 4294901760, %v3568_v50  ;;  %v3581_v8 = vand.u32 4294901760, %v3580_v28  ;;  %v10875_v17 = vld [vmem:[#allocation88_spill] sm:$0xff]  ;;  %v10878_v1 = vld [vmem:[#allocation15_spill] sm:$0xff]  ;;  %v10880_v50 = vld [vmem:[#allocation94_spill] sm:$0xff] }
 0x13d   :  { %10866 = vst [vmem:[#allocation207_spill] sm:$0xff] %v8136_v48  ;;  %10867 = vst [vmem:[#allocation208_spill] sm:$0xff] %v8138_v41  ;;  %v8146_v57 = vpack.c.bf16 %v2111_v9, %v2099_v40  ;;  %v2105_v60 = vand.u32 4294901760, %v8130_v11  ;;  %v10873_v46 = vand.u32 4294901760, %v10864_v21  ;;  %v10874_v18 = vand.u32 4294901760, %v10865_v32  ;;  %v10877_v9 = vld [vmem:[#allocation29_spill] sm:$0xff] }
 0x13e   :  { %10868 = vst [vmem:[#allocation209_spill] sm:$0xff] %v8140_v27  ;;  %10869 = vst [vmem:[#allocation210_spill] sm:$0xff] %v8142_v19  ;;  %v10881_v11 = vld [vmem:[#allocation18_spill] sm:$0xff]  ;;  %v8169_v24 = vpack.c.bf16 %v3581_v8, %v3569_v13  ;;  %v10887_v33 = vld [vmem:[#allocation20_spill] sm:$0xff]  ;;  %v10889_v56 = vand.u32 4294901760, %v10875_v17  ;;  %v10891_v34 = vand.u32 4294901760, %v10877_v9 }
 0x13f   :  { %10870 = vst [vmem:[#allocation211_spill] sm:$0xff] %v8144_v26  ;;  %10871 = vst [vmem:[#allocation212_spill] sm:$0xff] %v8146_v57  ;;  %v2116_v35 = vsub.f32 %v10864_v21, %v10873_v46  ;;  %v3574_v51 = vsub.f32 %v10865_v32, %v10874_v18  ;;  %v10882_v46 = vand.u32 4294901760, %v10872_v12  ;;  %v10884_v32 = vld [vmem:[#allocation17_spill] sm:$0xff]  ;;  %v10892_v13 = vand.u32 4294901760, %v10878_v1 }
 0x140   :  { %10886 = vst [vmem:[#allocation213_spill] sm:$0xff] %v8169_v24  ;;  %v10888_v44 = vld [vmem:[#allocation101_spill] sm:$0xff]  ;;  %v2122_v3 = vsub.f32 %v10875_v17, %v10889_v56  ;;  %v3592_v43 = vsub.f32 %v10877_v9, %v10891_v34  ;;  %v10894_v10 = vand.u32 4294901760, %v10880_v50  ;;  %v10895_v7 = vand.u32 4294901760, %v10881_v11 }
 0x141   :  { %v3586_v21 = vsub.f32 %v10872_v12, %v10882_v46  ;;  %v2117_v40 = vand.u32 4294901760, %v2116_v35  ;;  %v3575_v28 = vand.u32 4294901760, %v3574_v51  ;;  %v10890_v46 = vand.u32 4294901760, %v10876_v20 }
 0x142   :  { %v3604_v8 = vsub.f32 %v10878_v1, %v10892_v13  ;;  %v10893_v35 = vand.u32 4294901760, %v10879_v2  ;;  %v2140_v56 = vsub.f32 %v10880_v50, %v10894_v10  ;;  %v10896_v12 = vand.u32 4294901760, %v10883_v53 }
 0x143   :  { %v2134_v18 = vsub.f32 %v10876_v20, %v10890_v46  ;;  %v3598_v46 = vsub.f32 %v10881_v11, %v10895_v7  ;;  %v10897_v9 = vand.u32 4294901760, %v10884_v32  ;;  %v10898_v1 = vand.u32 4294901760, %v10885_v49 }
 0x144   :  { %v2128_v51 = vsub.f32 %v10879_v2, %v10893_v35  ;;  %v3610_v34 = vsub.f32 %v10883_v53, %v10896_v12  ;;  %v10899_v2 = vld [vmem:[#allocation22_spill] sm:$0xff]  ;;  %v3587_v17 = vand.u32 4294901760, %v3586_v21  ;;  %v10900_v10 = vand.u32 4294901760, %v10887_v33  ;;  %v10902_v12 = vld [vmem:[#allocation103_spill] sm:$0xff] }
 0x145   :  { %v2146_v13 = vsub.f32 %v10884_v32, %v10897_v9  ;;  %v2158_v35 = vsub.f32 %v10885_v49, %v10898_v1  ;;  %v10901_v7 = vand.u32 4294901760, %v10888_v44  ;;  %v10036_v53 = vand.u32 4294901760, %v10902_v12  ;;  %v10903_v32 = vld [vmem:[#allocation105_spill] sm:$0xff] }
 0x146   :  { %v3616_v50 = vsub.f32 %v10887_v33, %v10900_v10  ;;  %v2123_v31 = vand.u32 4294901760, %v2122_v3  ;;  %v2135_v24 = vand.u32 4294901760, %v2134_v18  ;;  %v3593_v9 = vand.u32 4294901760, %v3592_v43  ;;  %v10905_v43 = vld [vmem:[#allocation106_spill] sm:$0xff] }
 0x147   :  { %v3628_v11 = vsub.f32 %v10888_v44, %v10901_v7  ;;  %v3605_v57 = vand.u32 4294901760, %v3604_v8  ;;  %v2129_v1 = vand.u32 4294901760, %v2128_v51  ;;  %v2141_v49 = vand.u32 4294901760, %v2140_v56  ;;  %v10908_v56 = vld [vmem:[#allocation23_spill] sm:$0xff] }
 0x148   :  { %v3599_v20 = vand.u32 4294901760, %v3598_v46  ;;  %v3611_v21 = vand.u32 4294901760, %v3610_v34  ;;  %v2147_v27 = vand.u32 4294901760, %v2146_v13  ;;  %v2159_v19 = vand.u32 4294901760, %v2158_v35  ;;  %v10909_v34 = vld [vmem:[#allocation25_spill] sm:$0xff] }
 0x149   :  { %v10904_v10 = vand.u32 4294901760, %v10899_v2  ;;  %v3617_v48 = vand.u32 4294901760, %v3616_v50  ;;  %v3629_v7 = vand.u32 4294901760, %v3628_v11  ;;  %v2164_v3 = vsub.f32 %v10902_v12, %v10036_v53 }
 0x14a   :  { %v8219_v26 = vpack.c.bf16 %v2117_v40, %v2105_v60  ;;  %v10907_v8 = vand.u32 4294901760, %v10903_v32  ;;  %v8228_v35 = vpack.c.bf16 %v3587_v17, %v3575_v28  ;;  %v8230_v50 = vpack.c.bf16 %v2135_v24, %v2123_v31 }
 0x14b   :  { %v2152_v33 = vsub.f32 %v10899_v2, %v10904_v10  ;;  %v8232_v11 = vpack.c.bf16 %v3605_v57, %v3593_v9  ;;  %v10913_v10 = vld [vmem:[#allocation107_spill] sm:$0xff]  ;;  %v8235_v18 = vpack.c.bf16 %v2141_v49, %v2129_v1  ;;  %v8237_v60 = vpack.c.bf16 %v3611_v21, %v3599_v20  ;;  %v10924_v1 = vld [vmem:[#allocation28_spill] sm:$0xff]  ;;  %v10931_v9 = vld [vmem:[#allocation30_spill] sm:$0xff] }
 0x14c   :  { %10906 = vst [vmem:[#allocation214_spill] sm:$0xff] %v8219_v26  ;;  %v8224_v51 = vsub.f32 %v10903_v32, %v10907_v8  ;;  %10910 = vst [vmem:[#allocation215_spill] sm:$0xff] %v8228_v35  ;;  %v10043_v53 = vand.u32 4294901760, %v10913_v10  ;;  %v8239_v40 = vpack.c.bf16 %v2159_v19, %v2147_v27  ;;  %v10917_v8 = vld [vmem:[#allocation108_spill] sm:$0xff]  ;;  %v8242_v12 = vpack.c.bf16 %v3629_v7, %v3617_v48  ;;  %v10922_v19 = vld [vmem:[#allocation26_spill] sm:$0xff] }
 0x14d   :  { %10911 = vst [vmem:[#allocation216_spill] sm:$0xff] %v8230_v50  ;;  %10912 = vst [vmem:[#allocation217_spill] sm:$0xff] %v8232_v11  ;;  %v10046_v32 = vand.u32 4294901760, %v10917_v8  ;;  %v2153_v46 = vand.u32 4294901760, %v2152_v33  ;;  %v2165_v13 = vand.u32 4294901760, %v2164_v3  ;;  %v10919_v17 = vand.u32 4294901760, %v10905_v43 }
 0x14e   :  { %10914 = vst [vmem:[#allocation218_spill] sm:$0xff] %v8235_v18  ;;  %10915 = vst [vmem:[#allocation219_spill] sm:$0xff] %v8237_v60  ;;  %v3623_v24 = vand.u32 4294901760, %v8224_v51  ;;  %v10920_v57 = vand.u32 4294901760, %v10908_v56  ;;  %v10921_v20 = vand.u32 4294901760, %v10909_v34  ;;  %v3640_v48 = vsub.f32 %v10913_v10, %v10043_v53  ;;  %v10923_v33 = vld [vmem:[#allocation109_spill] sm:$0xff] }
 0x14f   :  { %10916 = vst [vmem:[#allocation220_spill] sm:$0xff] %v8239_v40  ;;  %10918 = vst [vmem:[#allocation221_spill] sm:$0xff] %v8242_v12  ;;  %v3634_v31 = vsub.f32 %v10905_v43, %v10919_v17  ;;  %v10925_v7 = vld [vmem:[#allocation110_spill] sm:$0xff]  ;;  %v3652_v51 = vsub.f32 %v10917_v8, %v10046_v32  ;;  %v10926_v17 = vld [vmem:[#allocation111_spill] sm:$0xff]  ;;  %v10932_v3 = vand.u32 4294901760, %v10922_v19 }
 0x150   :  { %v2170_v49 = vsub.f32 %v10908_v56, %v10920_v57  ;;  %v2182_v27 = vsub.f32 %v10909_v34, %v10921_v20  ;;  %v10927_v43 = vld [vmem:[#allocation112_spill] sm:$0xff]  ;;  %v10928_v34 = vld [vmem:[#allocation113_spill] sm:$0xff]  ;;  %v8267_v56 = vpack.c.bf16 %v2165_v13, %v2153_v46  ;;  %v10930_v53 = vld [vmem:[#allocation114_spill] sm:$0xff]  ;;  %v3641_v57 = vand.u32 4294901760, %v3640_v48 }
 0x151   :  { %v3635_v2 = vand.u32 4294901760, %v3634_v31  ;;  %v2176_v60 = vsub.f32 %v10922_v19, %v10932_v3  ;;  %v10933_v32 = vld [vmem:[#allocation115_spill] sm:$0xff]  ;;  %v10934_v20 = vand.u32 4294901760, %v10923_v33  ;;  %v10935_v46 = vand.u32 4294901760, %v10924_v1  ;;  %v10943_v19 = vld [vmem:[#allocation117_spill] sm:$0xff] }
 0x152   :  { %10929 = vst [vmem:[#allocation222_spill] sm:$0xff] %v8267_v56  ;;  %v2171_v21 = vand.u32 4294901760, %v2170_v49  ;;  %v2183_v12 = vand.u32 4294901760, %v2182_v27  ;;  %v10936_v31 = vand.u32 4294901760, %v10925_v7  ;;  %v3653_v27 = vand.u32 4294901760, %v3652_v51 }
 0x153   :  { %v2188_v28 = vsub.f32 %v10923_v33, %v10934_v20  ;;  %v3646_v13 = vsub.f32 %v10924_v1, %v10935_v46  ;;  %v10937_v44 = vand.u32 4294901760, %v10926_v17  ;;  %v10938_v8 = vand.u32 4294901760, %v10927_v43 }
 0x154   :  { %v3658_v49 = vsub.f32 %v10925_v7, %v10936_v31  ;;  %v10939_v10 = vand.u32 4294901760, %v10928_v34  ;;  %v10940_v33 = vand.u32 4294901760, %v10930_v53  ;;  %v10941_v1 = vand.u32 4294901760, %v10931_v9  ;;  %v10942_v31 = vld [vmem:[#allocation116_spill] sm:$0xff]  ;;  %v10948_v7 = vld [vmem:[#allocation119_spill] sm:$0xff] }
 0x155   :  { %v2194_v3 = vsub.f32 %v10926_v17, %v10937_v44  ;;  %v2206_v48 = vsub.f32 %v10927_v43, %v10938_v8  ;;  %v2177_v17 = vand.u32 4294901760, %v2176_v60  ;;  %v10944_v56 = vand.u32 4294901760, %v10933_v32  ;;  %v10945_v43 = vld [vmem:[#allocation118_spill] sm:$0xff] }
 0x156   :  { %v3664_v20 = vsub.f32 %v10928_v34, %v10939_v10  ;;  %v3676_v46 = vsub.f32 %v10930_v53, %v10940_v33  ;;  %v2200_v51 = vsub.f32 %v10931_v9, %v10941_v1  ;;  %v10946_v10 = vld [vmem:[#allocation24_spill] sm:$0xff]  ;;  %v2189_v18 = vand.u32 4294901760, %v2188_v28 }
 0x157   :  { %v2212_v8 = vsub.f32 %v10933_v32, %v10944_v56  ;;  %v10057_v34 = vand.u32 4294901760, %v10946_v10  ;;  %v3647_v11 = vand.u32 4294901760, %v3646_v13  ;;  %v3659_v33 = vand.u32 4294901760, %v3658_v49  ;;  %v10947_v53 = vld [vmem:[#allocation32_spill] sm:$0xff] }
 0x158   :  { %v10059_v35 = vand.u32 4294901760, %v10947_v53  ;;  %v2195_v50 = vand.u32 4294901760, %v2194_v3  ;;  %v2207_v1 = vand.u32 4294901760, %v2206_v48  ;;  %v3665_v9 = vand.u32 4294901760, %v3664_v20  ;;  %v10952_v20 = vld [vmem:[#allocation120_spill] sm:$0xff] }
 0x159   :  { %v3677_v44 = vand.u32 4294901760, %v3676_v46  ;;  %v2201_v60 = vand.u32 4294901760, %v2200_v51  ;;  %v10949_v41 = vand.u32 4294901760, %v10942_v31  ;;  %v10950_v40 = vand.u32 4294901760, %v10943_v19 }
 0x15a   :  { %v2213_v13 = vand.u32 4294901760, %v2212_v8  ;;  %v10951_v49 = vand.u32 4294901760, %v10945_v43  ;;  %v8326_v48 = vsub.f32 %v10946_v10, %v10057_v34  ;;  %v10060_v46 = vand.u32 4294901760, %v10952_v20 }
 0x15b   :  { %v8311_v56 = vsub.f32 %v10942_v31, %v10949_v41  ;;  %v8316_v28 = vsub.f32 %v10943_v19, %v10950_v40  ;;  %v8329_v41 = vpack.c.bf16 %v3635_v2, %v3623_v24  ;;  %v8331_v51 = vpack.c.bf16 %v2183_v12, %v2171_v21  ;;  %v10955_v2 = vld [vmem:[#allocation121_spill] sm:$0xff] }
 0x15c   :  { %v8321_v3 = vsub.f32 %v10945_v43, %v10951_v49  ;;  %v8333_v26 = vpack.c.bf16 %v3653_v27, %v3641_v57  ;;  %v8338_v40 = vsub.f32 %v10947_v53, %v10059_v35  ;;  %v8340_v8 = vpack.c.bf16 %v2189_v18, %v2177_v17  ;;  %v10959_v17 = vld [vmem:[#allocation122_spill] sm:$0xff]  ;;  %v10961_v18 = vld [vmem:[#allocation63_spill] sm:$0xff]  ;;  %v10962_v27 = vld [vmem:[#allocation124_spill] sm:$0xff] }
 0x15d   :  { %v8342_v49 = vpack.c.bf16 %v3659_v33, %v3647_v11  ;;  %v10954_v34 = vand.u32 4294901760, %v10948_v7  ;;  %v10063_v24 = vand.u32 4294901760, %v10955_v2  ;;  %v8350_v12 = vpack.c.bf16 %v2207_v1, %v2195_v50  ;;  %v10963_v1 = vld [vmem:[#allocation169_spill] sm:$0xff]  ;;  %v10964_v11 = vld [vmem:[#allocation50_spill] sm:$0xff] }
 0x15e   :  { %v8352_v21 = vpack.c.bf16 %v3677_v44, %v3665_v9  ;;  %v8356_v35 = vpack.c.bf16 %v2213_v13, %v2201_v60  ;;  %v10067_v44 = vand.u32 4294901760, %v7526_v37  ;;  %v10070_v33 = vand.u32 4294901760, %v7531_v25  ;;  %v10960_v13 = vld [vmem:[#allocation123_spill] sm:$0xff]  ;;  %v10965_v53 = vld [vmem:[#allocation170_spill] sm:$0xff] }
 0x15f   :  { %10953 = vst [vmem:[#allocation223_spill] sm:$0xff] %v8342_v49  ;;  %v8347_v19 = vsub.f32 %v10948_v7, %v10954_v34  ;;  %10956 = vst [vmem:[#allocation224_spill] sm:$0xff] %v8350_v12  ;;  %v8363_v34 = vsub.f32 %v10952_v20, %v10060_v46  ;;  %v8373_v60 = vsub.f32 %v10955_v2, %v10063_v24  ;;  %v10071_v46 = vand.u32 4294901760, %v10961_v18 }
 0x160   :  { %10957 = vst [vmem:[#allocation225_spill] sm:$0xff] %v8352_v21  ;;  %10958 = vst [vmem:[#allocation226_spill] sm:$0xff] %v8356_v35  ;;  %v3808_v50 = vsub.f32 %v7526_v37, %v10067_v44  ;;  %v3820_v9 = vsub.f32 %v7531_v25, %v10070_v33  ;;  %v10074_v20 = vand.u32 4294901760, %v10963_v1  ;;  %v10075_v2 = vand.u32 4294901760, %v10964_v11 }
 0x161   :  { %v2344_v24 = vsub.f32 %v10961_v18, %v10071_v46  ;;  %v10076_v57 = vand.u32 4294901760, %v10965_v53  ;;  %v10966_v31 = vand.u32 4294901760, %v10959_v17  ;;  %v10077_v35 = vand.u32 4294901760, %v7981_v55 }
 0x162   :  { %v3809_v10 = vand.u32 4294901760, %v3808_v50  ;;  %v3821_v43 = vand.u32 4294901760, %v3820_v9  ;;  %v2356_v33 = vsub.f32 %v10963_v1, %v10074_v20  ;;  %v3814_v46 = vsub.f32 %v10964_v11, %v10075_v2 }
 0x163   :  { %v8394_v44 = vsub.f32 %v10959_v17, %v10966_v31  ;;  %v2345_v7 = vand.u32 4294901760, %v2344_v24  ;;  %v3826_v32 = vsub.f32 %v10965_v53, %v10076_v57  ;;  %v10078_v50 = vand.u32 4294901760, %v7986_v62 }
 0x164   :  { %v8406_v21 = vpack.c.bf16 %v3821_v43, %v3809_v10  ;;  %v2357_v31 = vand.u32 4294901760, %v2356_v33  ;;  %v10079_v9 = vand.u32 4294901760, %v7991_v58  ;;  %v3815_v17 = vand.u32 4294901760, %v3814_v46 }
 0x165   :  { %v3827_v20 = vand.u32 4294901760, %v3826_v32  ;;  %v2362_v24 = vsub.f32 %v7981_v55, %v10077_v35  ;;  %v10080_v2 = vand.u32 4294901760, %v7996_v39  ;;  %v2374_v43 = vsub.f32 %v7986_v62, %v10078_v50 }
 0x166   :  { %10967 = vst [vmem:[#allocation227_spill] sm:$0xff] %v8406_v21  ;;  %v8414_v49 = vpack.c.bf16 %v2357_v31, %v2345_v7  ;;  %v3832_v10 = vsub.f32 %v7991_v58, %v10079_v9  ;;  %v10081_v33 = vand.u32 4294901760, %v8002_v6  ;;  %v10082_v7 = vand.u32 4294901760, %v8007_v23 }
 0x167   :  { %v8423_v46 = vpack.c.bf16 %v3827_v20, %v3815_v17  ;;  %v2363_v32 = vand.u32 4294901760, %v2362_v24  ;;  %v3844_v57 = vsub.f32 %v7996_v39, %v10080_v2  ;;  %v2375_v31 = vand.u32 4294901760, %v2374_v43 }
 0x168   :  { %10968 = vst [vmem:[#allocation228_spill] sm:$0xff] %v8414_v49  ;;  %v3833_v35 = vand.u32 4294901760, %v3832_v10  ;;  %v2368_v50 = vsub.f32 %v8002_v6, %v10081_v33  ;;  %v10083_v49 = vand.u32 4294901760, %v8012_v36  ;;  %v2380_v20 = vsub.f32 %v8007_v23, %v10082_v7 }
 0x169   :  { %10969 = vst [vmem:[#allocation229_spill] sm:$0xff] %v8423_v46  ;;  %v3845_v9 = vand.u32 4294901760, %v3844_v57  ;;  %v10084_v17 = vand.u32 4294901760, %v8017_v15  ;;  %v10085_v24 = vand.u32 4294901760, %v8021_v5  ;;  %v8438_v2 = vpack.c.bf16 %v2375_v31, %v2363_v32 }
 0x16a   :  { %v2369_v46 = vand.u32 4294901760, %v2368_v50  ;;  %v3838_v43 = vsub.f32 %v8012_v36, %v10083_v49  ;;  %v10086_v10 = vand.u32 4294901760, %v8024_v61  ;;  %v2381_v57 = vand.u32 4294901760, %v2380_v20  ;;  %v11095_v36 = vld [vmem:[#allocation224_spill] sm:$0xff] }
 0x16b   :  { %10970 = vst [vmem:[#allocation230_spill] sm:$0xff] %v8438_v2  ;;  %v8444_v33 = vpack.c.bf16 %v3845_v9, %v3833_v35  ;;  %v3850_v7 = vsub.f32 %v8017_v15, %v10084_v17  ;;  %v2386_v21 = vsub.f32 %v8021_v5, %v10085_v24  ;;  %v10087_v31 = vand.u32 4294901760, %v8027_v0 }
 0x16c   :  { %v3839_v32 = vand.u32 4294901760, %v3838_v43  ;;  %v2398_v50 = vsub.f32 %v8024_v61, %v10086_v10  ;;  %v10088_v49 = vand.u32 4294901760, %v8029_v52  ;;  %v8457_v35 = vpack.c.bf16 %v2381_v57, %v2369_v46 }
 0x16d   :  { %10971 = vst [vmem:[#allocation231_spill] sm:$0xff] %v8444_v33  ;;  %v3851_v9 = vand.u32 4294901760, %v3850_v7  ;;  %v2387_v20 = vand.u32 4294901760, %v2386_v21  ;;  %v10089_v33 = vand.u32 4294901760, %v8032_v38  ;;  %v3856_v24 = vsub.f32 %v8027_v0, %v10087_v31 }
 0x16e   :  { %10972 = vst [vmem:[#allocation232_spill] sm:$0xff] %v8457_v35  ;;  %v2399_v17 = vand.u32 4294901760, %v2398_v50  ;;  %v3868_v43 = vsub.f32 %v8029_v52, %v10088_v49  ;;  %v10090_v10 = vand.u32 4294901760, %v8034_v59  ;;  %v10091_v21 = vand.u32 4294901760, %v8036_v47 }
 0x16f   :  { %v8467_v2 = vpack.c.bf16 %v3851_v9, %v3839_v32  ;;  %v2392_v46 = vsub.f32 %v8032_v38, %v10089_v33  ;;  %v10092_v7 = vand.u32 4294901760, %v8038_v22  ;;  %v3857_v50 = vand.u32 4294901760, %v3856_v24  ;;  %v11107_v38 = vld [vmem:[#allocation226_spill] sm:$0xff] }
 0x170   :  { %v8474_v57 = vpack.c.bf16 %v2399_v17, %v2387_v20  ;;  %v3869_v31 = vand.u32 4294901760, %v3868_v43  ;;  %v2404_v49 = vsub.f32 %v8034_v59, %v10090_v10  ;;  %v3862_v32 = vsub.f32 %v8036_v47, %v10091_v21  ;;  %v11106_v59 = vld [vmem:[#allocation225_spill] sm:$0xff] }
 0x171   :  { %10973 = vst [vmem:[#allocation233_spill] sm:$0xff] %v8467_v2  ;;  %v2393_v35 = vand.u32 4294901760, %v2392_v46  ;;  %v3874_v9 = vsub.f32 %v8038_v22, %v10092_v7  ;;  %v10093_v33 = vand.u32 4294901760, %v8040_v54  ;;  %v10094_v24 = vand.u32 4294901760, %v8042_v4  ;;  %v11101_v22 = vld [vmem:[#allocation152_spill] sm:$0xff] }
 0x172   :  { %10974 = vst [vmem:[#allocation234_spill] sm:$0xff] %v8474_v57  ;;  %v8486_v2 = vpack.c.bf16 %v3869_v31, %v3857_v50  ;;  %v2405_v17 = vand.u32 4294901760, %v2404_v49  ;;  %v10095_v20 = vand.u32 4294901760, %v8044_v42  ;;  %v3863_v43 = vand.u32 4294901760, %v3862_v32 }
 0x173   :  { %v3875_v10 = vand.u32 4294901760, %v3874_v9  ;;  %v2410_v46 = vsub.f32 %v8040_v54, %v10093_v33  ;;  %v10096_v21 = vand.u32 4294901760, %v8046_v63  ;;  %v2422_v31 = vsub.f32 %v8042_v4, %v10094_v24 }
 0x174   :  { %10975 = vst [vmem:[#allocation235_spill] sm:$0xff] %v8486_v2  ;;  %v8494_v57 = vpack.c.bf16 %v2405_v17, %v2393_v35  ;;  %v3880_v49 = vsub.f32 %v8044_v42, %v10095_v20  ;;  %v10097_v50 = vand.u32 4294901760, %v8048_v14  ;;  %v10098_v35 = vand.u32 4294901760, %v8050_v29  ;;  %v10978_v20 = vld [vmem:[#allocation34_spill] sm:$0xff] }
 0x175   :  { %v8503_v32 = vpack.c.bf16 %v3875_v10, %v3863_v43  ;;  %v2411_v9 = vand.u32 4294901760, %v2410_v46  ;;  %v3892_v7 = vsub.f32 %v8046_v63, %v10096_v21  ;;  %v2423_v17 = vand.u32 4294901760, %v2422_v31 }
 0x176   :  { %10976 = vst [vmem:[#allocation236_spill] sm:$0xff] %v8494_v57  ;;  %v3881_v33 = vand.u32 4294901760, %v3880_v49  ;;  %v2416_v24 = vsub.f32 %v8048_v14, %v10097_v50  ;;  %v10099_v57 = vand.u32 4294901760, %v8052_v30  ;;  %v2428_v10 = vsub.f32 %v8050_v29, %v10098_v35 }
 0x177   :  { %10977 = vst [vmem:[#allocation237_spill] sm:$0xff] %v8503_v32  ;;  %v3893_v12 = vand.u32 4294901760, %v3892_v7  ;;  %v10100_v43 = vand.u32 4294901760, %v8054_v16  ;;  %v2237_v46 = vand.u32 4294901760, %v8373_v60  ;;  %v8519_v21 = vpack.c.bf16 %v2423_v17, %v2411_v9 }
 0x178   :  { %v2417_v31 = vand.u32 4294901760, %v2416_v24  ;;  %v3886_v49 = vsub.f32 %v8052_v30, %v10099_v57  ;;  %v10980_v50 = vand.u32 4294901760, %v10960_v13  ;;  %v2429_v32 = vand.u32 4294901760, %v2428_v10 }
 0x179   :  { %10979 = vst [vmem:[#allocation238_spill] sm:$0xff] %v8519_v21  ;;  %v8529_v7 = vpack.c.bf16 %v3893_v12, %v3881_v33  ;;  %v3898_v35 = vsub.f32 %v8054_v16, %v10100_v43  ;;  %v10982_v60 = vand.u32 4294901760, %v8311_v56  ;;  %v10983_v24 = vand.u32 4294901760, %v8316_v28  ;;  %v10989_v43 = vld [vmem:[#allocation126_spill] sm:$0xff]  ;;  %v10990_v56 = vld [vmem:[#allocation127_spill] sm:$0xff] }
 0x17a   :  { %v8527_v2 = vsub.f32 %v10960_v13, %v10980_v50  ;;  %v10985_v17 = vand.u32 4294901760, %v8321_v3  ;;  %v10986_v57 = vand.u32 4294901760, %v8326_v48  ;;  %v10988_v12 = vand.u32 4294901760, %v10962_v27 }
 0x17b   :  { %10981 = vst [vmem:[#allocation239_spill] sm:$0xff] %v8529_v7  ;;  %v8538_v9 = vpack.c.bf16 %v10983_v24, %v10982_v60  ;;  %v3887_v50 = vand.u32 4294901760, %v3886_v49  ;;  %v8553_v28 = vpack.c.bf16 %v2429_v32, %v2417_v31  ;;  %v3899_v60 = vand.u32 4294901760, %v3898_v35 }
 0x17c   :  { %v8544_v21 = vpack.c.bf16 %v10986_v57, %v10985_v17  ;;  %v8549_v33 = vsub.f32 %v10962_v27, %v10988_v12  ;;  %v10993_v48 = vand.u32 4294901760, %v8338_v40  ;;  %v10994_v57 = vand.u32 4294901760, %v8347_v19  ;;  %v11003_v12 = vld [vmem:[#allocation128_spill] sm:$0xff] }
 0x17d   :  { %10984 = vst [vmem:[#allocation240_spill] sm:$0xff] %v8538_v9  ;;  %10991 = vst [vmem:[#allocation242_spill] sm:$0xff] %v8553_v28  ;;  %v10996_v49 = vand.u32 4294901760, %v10978_v20  ;;  %v10998_v35 = vand.u32 4294901760, %v8363_v34  ;;  %v8576_v27 = vpack.c.bf16 %v3899_v60, %v3887_v50  ;;  %v11112_v15 = vand.u32 4294901760, %v11101_v22 }
 0x17e   :  { %10987 = vst [vmem:[#allocation241_spill] sm:$0xff] %v8544_v21  ;;  %v8561_v17 = vpack.c.bf16 %v10994_v57, %v10993_v48 }
 0x17f   :  { %v8567_v13 = vsub.f32 %v10978_v20, %v10996_v49  ;;  %v8573_v31 = vpack.c.bf16 %v2237_v46, %v10998_v35  ;;  %11000 = vst [vmem:[#allocation247_spill] sm:$0xff] %v8576_v27  ;;  %v11006_v35 = vand.u32 4294901760, %v10989_v43 }
 0x180   :  { %10995 = vst [vmem:[#allocation244_spill] sm:$0xff] %v8561_v17 }
 0x181   :  { %10999 = vst [vmem:[#allocation246_spill] sm:$0xff] %v8573_v31  ;;  %v8593_v50 = vsub.f32 %v10989_v43, %v11006_v35 }
 0x185   :  { %v11109_v52 = vld [vmem:[#allocation241_spill] sm:$0xff] }
 0x187   :  { %v11119_v0 = vld [vmem:[#allocation244_spill] sm:$0xff] }
 0x1b5   :  { %v890_v10 = vpop.f32.mrb[0].mxu0 }
 0x1b6   :  { %v8555_v24 = vand.u32 4294901760, %v890_v10  ;;  %v892_v3 = vpop.f32.mrb[1].mxu0 }
 0x1b7   :  { %v1684_v7 = vpop.f32.mrb[0].mxu1  ;;  %v8569_v32 = vand.u32 4294901760, %v892_v3 }
 0x1b8   :  { %10992 = vst [vmem:[#allocation243_spill] sm:$0xff] %v8555_v24  ;;  %v8579_v19 = vsub.f32 %v890_v10, %v8555_v24  ;;  %v8581_v48 = vand.u32 4294901760, %v1684_v7  ;;  %v1686_v57 = vpop.f32.mrb[1].mxu1  ;;  %v11007_v10 = vand.u32 4294901760, %v10990_v56  ;;  %v11010_v24 = vld [vmem:[#allocation129_spill] sm:$0xff] }
 0x1b9   :  { %10997 = vst [vmem:[#allocation245_spill] sm:$0xff] %v8569_v32  ;;  %v8586_v28 = vsub.f32 %v892_v3, %v8569_v32  ;;  %v8588_v34 = vand.u32 4294901760, %v1686_v57  ;;  %v897_v46 = vpop.f32.mrb[2].mxu0 }
 0x1ba   :  { %11001 = vst [vmem:[#allocation248_spill] sm:$0xff] %v8579_v19  ;;  %11002 = vst [vmem:[#allocation249_spill] sm:$0xff] %v8581_v48  ;;  %v8598_v60 = vsub.f32 %v10990_v56, %v11007_v10  ;;  %v10114_v49 = vand.u32 4294901760, %v8579_v19  ;;  %v8602_v20 = vsub.f32 %v1684_v7, %v8581_v48  ;;  %v8604_v3 = vand.u32 4294901760, %v897_v46  ;;  %v899_v40 = vpop.f32.mrb[3].mxu0  ;;  %v11013_v10 = vld [vmem:[#allocation132_spill] sm:$0xff] }
 0x1bb   :  { %11004 = vst [vmem:[#allocation128_spill] sm:$0xff] %v8586_v28  ;;  %11005 = vst [vmem:[#allocation250_spill] sm:$0xff] %v8588_v34  ;;  %v8609_v35 = vsub.f32 %v1686_v57, %v8588_v34  ;;  %v1691_v43 = vpop.f32.mrb[2].mxu1  ;;  %v8611_v17 = vand.u32 4294901760, %v899_v40  ;;  %v11018_v30 = vand.u32 4294901760, %v8586_v28 }
 0x1bc   :  { %11008 = vst [vmem:[#allocation251_spill] sm:$0xff] %v8602_v20  ;;  %11009 = vst [vmem:[#allocation252_spill] sm:$0xff] %v8604_v3  ;;  %v1991_v7 = vsub.f32 %v8579_v19, %v10114_v49  ;;  %v10129_v48 = vand.u32 4294901760, %v8602_v20  ;;  %v8619_v9 = vsub.f32 %v897_v46, %v8604_v3  ;;  %v8621_v27 = vand.u32 4294901760, %v1691_v43  ;;  %v1693_v31 = vpop.f32.mrb[3].mxu1 }
 0x1bd   :  { %11011 = vst [vmem:[#allocation129_spill] sm:$0xff] %v8609_v35  ;;  %11012 = vst [vmem:[#allocation253_spill] sm:$0xff] %v8611_v17  ;;  %v8625_v21 = vsub.f32 %v899_v40, %v8611_v17  ;;  %v8627_v16 = vand.u32 4294901760, %v1693_v31  ;;  %v904_v56 = vpop.f32.mrb[4].mxu0  ;;  %v1985_v49 = vsub.f32 %v8586_v28, %v11018_v30  ;;  %v11029_v28 = vand.u32 4294901760, %v8609_v35 }
 0x1be   :  { %11014 = vst [vmem:[#allocation132_spill] sm:$0xff] %v8619_v9  ;;  %11015 = vst [vmem:[#allocation254_spill] sm:$0xff] %v8621_v27  ;;  %v1992_v19 = vand.u32 4294901760, %v1991_v7  ;;  %v3461_v46 = vsub.f32 %v8602_v20, %v10129_v48  ;;  %v8637_v29 = vsub.f32 %v1691_v43, %v8621_v27  ;;  %v906_v57 = vpop.f32.mrb[5].mxu0  ;;  %v8643_v14 = vand.u32 4294901760, %v904_v56 }
 0x1bf   :  { %11016 = vst [vmem:[#allocation255_spill] sm:$0xff] %v8625_v21  ;;  %11017 = vst [vmem:[#allocation256_spill] sm:$0xff] %v8627_v16  ;;  %v8641_v17 = vsub.f32 %v1693_v31, %v8627_v16  ;;  %v1698_v63 = vpop.f32.mrb[4].mxu1  ;;  %v8645_v30 = vand.u32 4294901760, %v906_v57  ;;  %v1986_v20 = vand.u32 4294901760, %v1985_v49  ;;  %v3455_v49 = vsub.f32 %v8609_v35, %v11029_v28 }
 0x1c0   :  { %11019 = vst [vmem:[#allocation257_spill] sm:$0xff] %v8637_v29  ;;  %11021 = vst [vmem:[#allocation259_spill] sm:$0xff] %v8643_v14  ;;  %v3462_v7 = vand.u32 4294901760, %v3461_v46  ;;  %v8648_v48 = vand.u32 4294901760, %v1698_v63  ;;  %v1700_v3 = vpop.f32.mrb[5].mxu1  ;;  %v8652_v27 = vsub.f32 %v904_v56, %v8643_v14  ;;  %v11030_v56 = vand.u32 4294901760, %v8625_v21 }
 0x1c1   :  { %11020 = vst [vmem:[#allocation258_spill] sm:$0xff] %v8641_v17  ;;  %11022 = vst [vmem:[#allocation260_spill] sm:$0xff] %v8645_v30  ;;  %v8655_v31 = vsub.f32 %v906_v57, %v8645_v30  ;;  %v8657_v40 = vand.u32 4294901760, %v1700_v3  ;;  %v911_v16 = vpop.f32.mrb[6].mxu0  ;;  %1987 = vmatprep.mubr.f32.mxu1 %v1986_v20  ;;  %v3456_v54 = vand.u32 4294901760, %v3455_v49  ;;  %v11039_v49 = vand.u32 4294901760, %v8641_v17 }
 0x1c2   :  { %11023 = vst [vmem:[#allocation261_spill] sm:$0xff] %v8648_v48  ;;  %11024 = vst [vmem:[#allocation262_spill] sm:$0xff] %v8652_v27  ;;  %v8660_v42 = vsub.f32 %v1698_v63, %v8648_v48  ;;  %v8662_v46 = vand.u32 4294901760, %v911_v16  ;;  %v913_v43 = vpop.f32.mrb[7].mxu0  ;;  %v2001_v14 = vsub.f32 %v8625_v21, %v11030_v56  ;;  %1993 = vmatmul.mubr.f32.vlgmr.msra.gmra.mrb[8].mxu1 %v1992_v19  ;;  %v11037_v19 = vld [vmem:[#allocation208_spill] sm:$0xff]  ;;  %v11040_v57 = vand.u32 4294901760, %v8619_v9 }
 0x1c3   :  { %11025 = vst [vmem:[#allocation263_spill] sm:$0xff] %v8655_v31  ;;  %11026 = vst [vmem:[#allocation264_spill] sm:$0xff] %v8657_v40  ;;  %v8673_v4 = vsub.f32 %v1700_v3, %v8657_v40  ;;  %v1705_v63 = vpop.f32.mrb[6].mxu1  ;;  %v8675_v48 = vand.u32 4294901760, %v913_v43  ;;  %5080 = vmatpush1.bf16.msra.mxu1 %v8134_v45  ;;  %3457 = vmatprep.mubr.f32.mxu0 %v3456_v54  ;;  %v3471_v45 = vsub.f32 %v8641_v17, %v11039_v49  ;;  %v11044_v17 = vld [vmem:[#allocation207_spill] sm:$0xff] }
 0x1c4   :  { %11027 = vst [vmem:[#allocation265_spill] sm:$0xff] %v8660_v42  ;;  %11028 = vst [vmem:[#allocation266_spill] sm:$0xff] %v8662_v46  ;;  %v8679_v28 = vsub.f32 %v911_v16, %v8662_v46  ;;  %v8681_v35 = vand.u32 4294901760, %v1705_v63  ;;  %v1707_v56 = vpop.f32.mrb[7].mxu1  ;;  %v2002_v21 = vand.u32 4294901760, %v2001_v14  ;;  %5082 = vmatprep.subr.bf16.mxu1 %v11037_v19  ;;  %3463 = vmatmul.mubr.f32.vlgmr.msra.gmra.mrb[8].mxu0 %v3462_v7  ;;  %v11042_v19 = vand.u32 4294901760, %v8637_v29 }
 0x1c5   :  { %11031 = vst [vmem:[#allocation267_spill] sm:$0xff] %v8673_v4  ;;  %11032 = vst [vmem:[#allocation268_spill] sm:$0xff] %v8675_v48  ;;  %v8686_v3 = vsub.f32 %v913_v43, %v8675_v48  ;;  %v8688_v30 = vand.u32 4294901760, %v1707_v56  ;;  %v2007_v43 = vsub.f32 %v8619_v9, %v11040_v57  ;;  %v11043_v54 = vand.u32 4294901760, %v8655_v31  ;;  %5464 = vmatpush1.bf16.msra.mxu0 %v11044_v17  ;;  %v11045_v46 = vld [vmem:[#allocation210_spill] sm:$0xff] }
 0x1c6   :  { %11033 = vst [vmem:[#allocation269_spill] sm:$0xff] %v8679_v28  ;;  %11034 = vst [vmem:[#allocation270_spill] sm:$0xff] %v8681_v35  ;;  %v8693_v16 = vsub.f32 %v1705_v63, %v8681_v35  ;;  %2003 = vmatprep.mubr.f32.mxu1 %v2002_v21  ;;  %v3477_v63 = vsub.f32 %v8637_v29, %v11042_v19  ;;  %v3472_v57 = vand.u32 4294901760, %v3471_v45  ;;  %v11047_v35 = vld [vmem:[#allocation209_spill] sm:$0xff] }
 0x1c7   :  { %11035 = vst [vmem:[#allocation271_spill] sm:$0xff] %v8686_v3  ;;  %11036 = vst [vmem:[#allocation272_spill] sm:$0xff] %v8688_v30  ;;  %v8703_v14 = vsub.f32 %v1707_v56, %v8688_v30  ;;  %v2017_v20 = vsub.f32 %v8655_v31, %v11043_v54  ;;  %v2008_v9 = vand.u32 4294901760, %v2007_v43  ;;  %5084 = vmatpush1.bf16.msra.mxu1 %v11045_v46  ;;  %v11046_v56 = vand.u32 4294901760, %v8673_v4  ;;  %v11048_v30 = vld [vmem:[#allocation212_spill] sm:$0xff] }
 0x1c8   :  { %11038 = vst [vmem:[#allocation208_spill] sm:$0xff] %v8693_v16  ;;  %5466 = vmatprep.subr.bf16.mxu0 %v11047_v35  ;;  %v3478_v19 = vand.u32 4294901760, %v3477_v63  ;;  %5086 = vmatprep.subr.bf16.mxu1 %v11048_v30  ;;  %v11049_v54 = vand.u32 4294901760, %v8652_v27  ;;  %v11050_v46 = vand.u32 4294901760, %v8660_v42  ;;  %v11052_v35 = vld [vmem:[#allocation133_spill] sm:$0xff] }
 0x1c9   :  { %11041 = vst [vmem:[#allocation273_spill] sm:$0xff] %v8703_v14  ;;  %v3487_v21 = vsub.f32 %v8673_v4, %v11046_v56  ;;  %v10172_v7 = vand.u32 4294901760, %v8703_v14  ;;  %v2018_v29 = vand.u32 4294901760, %v2017_v20  ;;  %3473 = vmatprep.mubr.f32.mxu0 %v3472_v57  ;;  %2009 = vmatmul.mubr.f32.gmra.mrb[10].mxu1 %v2008_v9  ;;  %v11051_v56 = vand.u32 4294901760, %v8686_v3  ;;  %v11053_v20 = vld [vmem:[#allocation27_spill] sm:$0xff] }
 0x1ca   :  { %v2023_v17 = vsub.f32 %v8652_v27, %v11049_v54  ;;  %v3493_v43 = vsub.f32 %v8660_v42, %v11050_v46  ;;  %3479 = vmatmul.mubr.f32.gmra.mrb[10].mxu0 %v3478_v19  ;;  %v11054_v9 = vld [vmem:[#allocation135_spill] sm:$0xff]  ;;  %v11055_v54 = vld [vmem:[#allocation137_spill] sm:$0xff] }
 0x1cb   :  { %v3488_v45 = vand.u32 4294901760, %v3487_v21  ;;  %v2033_v49 = vsub.f32 %v8686_v3, %v11051_v56  ;;  %2019 = vmatprep.mubr.f32.mxu1 %v2018_v29  ;;  %v3503_v30 = vsub.f32 %v8703_v14, %v10172_v7  ;;  %v11056_v4 = vld [vmem:[#allocation211_spill] sm:$0xff]  ;;  %v11057_v56 = vand.u32 4294901760, %v8679_v28  ;;  %v11058_v29 = vld [vmem:[#allocation138_spill] sm:$0xff]  ;;  %v11059_v3 = vld [vmem:[#allocation213_spill] sm:$0xff] }
 0x1cc   :  { %5468 = vmatpush1.bf16.msra.mxu0 %v11056_v4  ;;  %v2024_v46 = vand.u32 4294901760, %v2023_v17  ;;  %v11060_v7 = vld [vmem:[#allocation214_spill] sm:$0xff]  ;;  %v3494_v57 = vand.u32 4294901760, %v3493_v43  ;;  %v11061_v21 = vand.u32 4294901760, %v8693_v16  ;;  %v11062_v4 = vld [vmem:[#allocation140_spill] sm:$0xff]  ;;  %v11064_v17 = vand.u32 4294901760, %v8394_v44 }
 0x1cd   :  { %3489 = vmatprep.mubr.f32.mxu0 %v3488_v45  ;;  %v2034_v42 = vand.u32 4294901760, %v2033_v49  ;;  %v2039_v19 = vsub.f32 %v8679_v28, %v11057_v56  ;;  %5470 = vmatprep.subr.bf16.mxu0 %v11059_v3  ;;  %v3504_v14 = vand.u32 4294901760, %v3503_v30  ;;  %v10183_v45 = vand.u32 4294901760, %v11062_v4  ;;  %v11063_v49 = vld [vmem:[#allocation216_spill] sm:$0xff] }
 0x1ce   :  { %5088 = vmatpush1.bf16.msra.mxu1 %v11060_v7  ;;  %v3509_v27 = vsub.f32 %v8693_v16, %v11061_v21  ;;  %v11065_v56 = vand.u32 4294901760, %v8527_v2  ;;  %v2255_v3 = vand.u32 4294901760, %v8567_v13  ;;  %v3713_v7 = vand.u32 4294901760, %v8593_v50  ;;  %3495 = vmatmul.mubr.f32.gmra.mrb[12].mxu0 %v3494_v57  ;;  %v11077_v16 = vld [vmem:[#allocation141_spill] sm:$0xff] }
 0x1cf   :  { %2025 = vmatmul.mubr.f32.gmra.mrb[12].mxu1 %v2024_v46  ;;  %5090 = vmatprep.subr.bf16.mxu1 %v11063_v49  ;;  %v11066_v43 = vand.u32 4294901760, %v11003_v12  ;;  %v3725_v21 = vand.u32 4294901760, %v8598_v60  ;;  %v11067_v46 = vand.u32 4294901760, %v11010_v24  ;;  %v11068_v2 = vand.u32 4294901760, %v11013_v10 }
 0x1d0   :  { %v8752_v63 = vpack.c.bf16 %v11065_v56, %v11064_v17  ;;  %2035 = vmatprep.mubr.f32.mxu1 %v2034_v42  ;;  %v11069_v50 = vand.u32 4294901760, %v11052_v35  ;;  %v11070_v17 = vld [vmem:[#allocation215_spill] sm:$0xff]  ;;  %3505 = vmatprep.mubr.f32.mxu0 %v3504_v14  ;;  %v2040_v42 = vand.u32 4294901760, %v2039_v19  ;;  %v11071_v60 = vand.u32 4294901760, %v11053_v20 }
 0x1d1   :  { %v8759_v30 = vsub.f32 %v11003_v12, %v11066_v43  ;;  %v8765_v44 = vsub.f32 %v11010_v24, %v11067_v46  ;;  %v8770_v13 = vsub.f32 %v11013_v10, %v11068_v2  ;;  %5472 = vmatpush1.bf16.msra.mxu0 %v11070_v17  ;;  %v11072_v56 = vand.u32 4294901760, %v11054_v9  ;;  %v11075_v17 = vld [vmem:[#allocation218_spill] sm:$0xff] }
 0x1d2   :  { %v8775_v49 = vsub.f32 %v11052_v35, %v11069_v50  ;;  %v8781_v57 = vsub.f32 %v11053_v20, %v11071_v60  ;;  %v11073_v46 = vand.u32 4294901760, %v11055_v54  ;;  %v11074_v50 = vld [vmem:[#allocation217_spill] sm:$0xff]  ;;  %5092 = vmatpush1.bf16.msra.mxu1 %v11075_v17  ;;  %v3510_v14 = vand.u32 4294901760, %v3509_v27  ;;  %v11080_v17 = vld [vmem:[#allocation147_spill] sm:$0xff] }
 0x1d3   :  { %v8786_v43 = vsub.f32 %v11054_v9, %v11072_v56  ;;  %5474 = vmatprep.subr.bf16.mxu0 %v11074_v50  ;;  %v11076_v19 = vand.u32 4294901760, %v11058_v29  ;;  %v8803_v56 = vsub.f32 %v11062_v4, %v10183_v45  ;;  %2041 = vmatmul.mubr.f32.gmra.mrb[14].mxu1 %v2040_v42  ;;  %v11079_v50 = vand.u32 4294901760, %v8549_v33  ;;  %v11082_v33 = vld [vmem:[#allocation219_spill] sm:$0xff] }
 0x1d4   :  { %v8791_v2 = vsub.f32 %v11055_v54, %v11073_v46  ;;  %v11078_v46 = vld [vmem:[#allocation220_spill] sm:$0xff]  ;;  %v2249_v27 = vand.u32 4294901760, %v8759_v30  ;;  %3511 = vmatmul.mubr.f32.gmra.mrb[14].mxu0 %v3510_v14  ;;  %2432 = vmatprep.mubr.f32.mxu1 %v8569_v32  ;;  %v8815_v45 = vpack.c.bf16 %v3725_v21, %v3713_v7  ;;  %v2261_v28 = vand.u32 4294901760, %v8765_v44  ;;  %v11084_v7 = vld [vmem:[#allocation221_spill] sm:$0xff]  ;;  %v11085_v21 = vld [vmem:[#allocation222_spill] sm:$0xff] }
 0x1d5   :  { %v8798_v60 = vsub.f32 %v11058_v29, %v11076_v19  ;;  %5094 = vmatprep.subr.bf16.mxu1 %v11078_v46  ;;  %v8809_v31 = vpack.c.bf16 %v2255_v3, %v11079_v50  ;;  %v11081_v19 = vld [vmem:[#allocation149_spill] sm:$0xff]  ;;  %v3719_v42 = vand.u32 4294901760, %v8770_v13  ;;  %v3731_v46 = vand.u32 4294901760, %v8775_v49  ;;  %5476 = vmatpush1.bf16.msra.mxu0 %v11082_v33  ;;  %v11083_v50 = vld [vmem:[#allocation144_spill] sm:$0xff]  ;;  %v11103_v32 = vld [vmem:[#allocation223_spill] sm:$0xff] }
 0x1d6   :  { %3902 = vmatprep.mubr.f32.mxu0 %v8588_v34  ;;  %v2267_v3 = vand.u32 4294901760, %v8781_v57  ;;  %v2279_v30 = vand.u32 4294901760, %v8786_v43  ;;  %v3737_v14 = vand.u32 4294901760, %v8791_v2  ;;  %5478 = vmatprep.subr.bf16.mxu0 %v11084_v7  ;;  %v2273_v13 = vand.u32 4294901760, %v8803_v56  ;;  %v11087_v54 = vld [vmem:[#allocation145_spill] sm:$0xff]  ;;  %v11090_v57 = vld [vmem:[#allocation151_spill] sm:$0xff] }
 0x1d7   :  { %5096 = vmatpush1.bf16.msra.mxu1 %v11085_v21  ;;  %v3749_v44 = vand.u32 4294901760, %v8798_v60  ;;  %v11086_v49 = vand.u32 4294901760, %v11077_v16  ;;  %v11088_v43 = vand.u32 4294901760, %v11080_v17  ;;  %v11089_v7 = vand.u32 4294901760, %v11081_v19  ;;  %v11102_v60 = vld [vmem:[#allocation155_spill] sm:$0xff]  ;;  %v11105_v56 = vld [vmem:[#allocation156_spill] sm:$0xff] }
 0x1d8   :  { %5098 = vmatprep.subr.bf16.mxu1 %v8331_v51  ;;  %v11096_v51 = vand.u32 4294901760, %v11083_v50  ;;  %v5495_v47 = vpack.c.bf16 %v3731_v46, %v3719_v42  ;;  %v11108_v42 = vand.u32 4294901760, %v11090_v57  ;;  %v11110_v29 = vld [vmem:[#allocation164_spill] sm:$0xff] }
 0x1d9   :  { %v2284_v33 = vsub.f32 %v11077_v16, %v11086_v49  ;;  %v2290_v2 = vsub.f32 %v11080_v17, %v11088_v43  ;;  %v2302_v21 = vsub.f32 %v11081_v19, %v11089_v7  ;;  %5480 = vmatpush1.bf16.msra.mxu0 %v8329_v41  ;;  %v5111_v41 = vpack.c.bf16 %v2261_v28, %v2249_v27  ;;  %v11116_v43 = vld [vmem:[#allocation240_spill] sm:$0xff] }
 0x1da   :  { %5482 = vmatprep.subr.bf16.mxu0 %v8333_v26  ;;  %v3742_v26 = vsub.f32 %v11083_v50, %v11096_v51  ;;  %v5113_v28 = vpack.c.bf16 %v2279_v30, %v2267_v3  ;;  %v5497_v27 = vpack.c.bf16 %v3749_v44, %v3737_v14  ;;  %v3760_v46 = vsub.f32 %v11090_v57, %v11108_v42  ;;  %v11114_v30 = vld [vmem:[#allocation159_spill] sm:$0xff]  ;;  %v11115_v44 = vld [vmem:[#allocation160_spill] sm:$0xff]  ;;  %v11123_v42 = vld [vmem:[#allocation165_spill] sm:$0xff] }
 0x1db   :  { %5100 = vmatpush1.bf16.msra.mxu1 %v8340_v8  ;;  %v2285_v49 = vand.u32 4294901760, %v2284_v33  ;;  %v2291_v34 = vand.u32 4294901760, %v2290_v2  ;;  %v2303_v51 = vand.u32 4294901760, %v2302_v21  ;;  %v11111_v2 = vld [vmem:[#allocation36_spill] sm:$0xff]  ;;  %v11118_v21 = vld [vmem:[#allocation37_spill] sm:$0xff]  ;;  %v11122_v14 = vld [vmem:[#allocation39_spill] sm:$0xff] }
 0x1dc   :  { %5102 = vmatprep.subr.bf16.mxu1 %v11095_v36  ;;  %v11104_v36 = vand.u32 4294901760, %v11087_v54  ;;  %v3743_v7 = vand.u32 4294901760, %v3742_v26  ;;  %v3761_v8 = vand.u32 4294901760, %v3760_v46  ;;  %v11128_v61 = vand.u32 4294901760, %v11114_v30  ;;  %v11132_v46 = vld [vmem:[#allocation166_spill] sm:$0xff] }
 0x1dd   :  { %5484 = vmatpush1.bf16.msra.mxu0 %v11103_v32  ;;  %v5115_v32 = vpack.c.bf16 %v2285_v49, %v2273_v13  ;;  %v5117_v13 = vpack.c.bf16 %v2303_v51, %v2291_v34  ;;  %v11117_v49 = vand.u32 4294901760, %v11105_v56  ;;  %v11124_v34 = vand.u32 4294901760, %v11110_v29 }
 0x1de   :  { %v3754_v33 = vsub.f32 %v11087_v54, %v11104_v36  ;;  %5486 = vmatprep.subr.bf16.mxu0 %v11106_v59  ;;  %v3772_v59 = vsub.f32 %v11101_v22, %v11112_v15  ;;  %v11120_v15 = vld [vmem:[#allocation246_spill] sm:$0xff]  ;;  %v3766_v6 = vsub.f32 %v11114_v30, %v11128_v61  ;;  %v11130_v58 = vand.u32 4294901760, %v11118_v21 }
 0x1df   :  { %5104 = vmatpush1.bf16.msra.mxu1 %v11107_v38  ;;  %v11113_v38 = vand.u32 4294901760, %v11102_v60  ;;  %v2308_v26 = vsub.f32 %v11105_v56, %v11117_v49  ;;  %v11131_v49 = vld [vmem:[#allocation46_spill] sm:$0xff] }
 0x1e0   :  { %5106 = vmatprep.subr.bf16.mxu1 %v11109_v52  ;;  %v3755_v52 = vand.u32 4294901760, %v3754_v33  ;;  %v11125_v33 = vand.u32 4294901760, %v11111_v2  ;;  %v3773_v36 = vand.u32 4294901760, %v3772_v59  ;;  %v3767_v62 = vand.u32 4294901760, %v3766_v6 }
 0x1e1   :  { %v2296_v3 = vsub.f32 %v11102_v60, %v11113_v38  ;;  %5488 = vmatpush1.bf16.msra.mxu0 %v11116_v43  ;;  %v11121_v38 = vld [vmem:[#allocation33_spill] sm:$0xff]  ;;  %v2314_v43 = vsub.f32 %v11110_v29, %v11124_v34  ;;  %v2309_v34 = vand.u32 4294901760, %v2308_v26  ;;  %v11135_v26 = vand.u32 4294901760, %v11123_v42 }
 0x1e2   :  { %5490 = vmatprep.subr.bf16.mxu0 %v11119_v0  ;;  %v2326_v51 = vsub.f32 %v11111_v2, %v11125_v33  ;;  %v11126_v0 = vld [vmem:[#allocation42_spill] sm:$0xff]  ;;  %v3784_v33 = vsub.f32 %v11118_v21, %v11130_v58  ;;  %v11133_v61 = vand.u32 4294901760, %v11121_v38  ;;  %v5501_v55 = vpack.c.bf16 %v3773_v36, %v3761_v8 }
 0x1e3   :  { %5108 = vmatpush1.bf16.msra.mxu1 %v11120_v15  ;;  %v11127_v15 = vld [vmem:[#allocation54_spill] sm:$0xff]  ;;  %v2297_v5 = vand.u32 4294901760, %v2296_v3  ;;  %v2332_v11 = vsub.f32 %v11123_v42, %v11135_v26  ;;  %v2315_v58 = vand.u32 4294901760, %v2314_v43  ;;  %v11136_v59 = vand.u32 4294901760, %v11126_v0 }
 0x1e4   :  { %5110 = vmatprep.subr.bf16.mxu1 %v8809_v31  ;;  %v11129_v31 = vand.u32 4294901760, %v11115_v44  ;;  %v3796_v3 = vsub.f32 %v11121_v38, %v11133_v61  ;;  %v2327_v39 = vand.u32 4294901760, %v2326_v51  ;;  %v5499_v61 = vpack.c.bf16 %v3755_v52, %v3743_v7 }
 0x1e5   :  { %5492 = vmatpush1.bf16.msra.mxu0 %v8752_v63  ;;  %v11138_v1 = vand.u32 4294901760, %v11131_v49  ;;  %v11139_v43 = vand.u32 4294901760, %v11132_v46 }
 0x1e6   :  { %v3778_v23 = vsub.f32 %v11115_v44, %v11129_v31  ;;  %5494 = vmatprep.subr.bf16.mxu0 %v8815_v45  ;;  %v11134_v31 = vand.u32 4294901760, %v11122_v14  ;;  %v2338_v45 = vsub.f32 %v11126_v0, %v11136_v59  ;;  %v3785_v59 = vand.u32 4294901760, %v3784_v33  ;;  %v11150_v33 = vld [vmem:[#allocation238_spill] sm:$0xff] }
 0x1e7   :  { %5112 = vmatpush1.bf16.msra.mxu1 %v5111_v41  ;;  %v11137_v41 = vand.u32 4294901760, %v11127_v15  ;;  %v3802_v51 = vsub.f32 %v11132_v46, %v11139_v43  ;;  %v3797_v26 = vand.u32 4294901760, %v3796_v3  ;;  %v5121_v7 = vpack.c.bf16 %v2327_v39, %v2315_v58  ;;  %v11141_v39 = vld [vmem:[#allocation228_spill] sm:$0xff]  ;;  %v11151_v3 = vld [vmem:[#allocation41_spill] sm:$0xff]  ;;  %v11157_v43 = vld [vmem:[#allocation47_spill] sm:$0xff] }
 0x1e8   :  { %v2320_v63 = vsub.f32 %v11122_v14, %v11134_v31  ;;  %5114 = vmatprep.subr.bf16.mxu1 %v5113_v28  ;;  %v5119_v31 = vpack.c.bf16 %v2309_v34, %v2297_v5  ;;  %v3779_v18 = vand.u32 4294901760, %v3778_v23  ;;  %v3790_v28 = vsub.f32 %v11131_v49, %v11138_v1  ;;  %v11149_v34 = vld [vmem:[#allocation236_spill] sm:$0xff] }
 0x1e9   :  { %v2350_v53 = vsub.f32 %v11127_v15, %v11137_v41  ;;  %5496 = vmatpush1.bf16.msra.mxu0 %v5495_v47  ;;  %v2333_v41 = vand.u32 4294901760, %v2332_v11  ;;  %v2339_v6 = vand.u32 4294901760, %v2338_v45  ;;  %v3803_v8 = vand.u32 4294901760, %v3802_v51  ;;  %v11140_v11 = vld [vmem:[#allocation227_spill] sm:$0xff]  ;;  %v11153_v45 = vld [vmem:[#allocation237_spill] sm:$0xff] }
 0x1ea   :  { %5498 = vmatprep.subr.bf16.mxu0 %v5497_v27  ;;  %v2321_v37 = vand.u32 4294901760, %v2320_v63  ;;  %v5503_v23 = vpack.c.bf16 %v3779_v18, %v3767_v62  ;;  %v3791_v5 = vand.u32 4294901760, %v3790_v28  ;;  %v5505_v1 = vpack.c.bf16 %v3797_v26, %v3785_v59  ;;  %v11143_v62 = vld [vmem:[#allocation229_spill] sm:$0xff]  ;;  %v11145_v18 = vld [vmem:[#allocation232_spill] sm:$0xff]  ;;  %v11159_v26 = vld [vmem:[#allocation51_spill] sm:$0xff] }
 0x1eb   :  { %5116 = vmatpush1.bf16.msra.mxu1 %v5115_v32  ;;  %v2351_v47 = vand.u32 4294901760, %v2350_v53  ;;  %v11142_v53 = vld [vmem:[#allocation230_spill] sm:$0xff]  ;;  %v11147_v32 = vld [vmem:[#allocation233_spill] sm:$0xff]  ;;  %v11152_v63 = vld [vmem:[#allocation44_spill] sm:$0xff] }
 0x1ec   :  { %5118 = vmatprep.subr.bf16.mxu1 %v5117_v13  ;;  %v5123_v36 = vpack.c.bf16 %v2333_v41, %v2321_v37  ;;  %v5507_v27 = vpack.c.bf16 %v3803_v8, %v3791_v5  ;;  %v11146_v37 = vld [vmem:[#allocation234_spill] sm:$0xff]  ;;  %v11148_v13 = vld [vmem:[#allocation235_spill] sm:$0xff]  ;;  %v5141_v58 = vpack.c.bf16 %v11152_v63, %v11151_v3  ;;  %v11156_v28 = vld [vmem:[#allocation45_spill] sm:$0xff] }
 0x1ed   :  { %5500 = vmatpush1.bf16.msra.mxu0 %v5499_v61  ;;  %v5125_v52 = vpack.c.bf16 %v2351_v47, %v2339_v6  ;;  %v11154_v61 = vld [vmem:[#allocation239_spill] sm:$0xff]  ;;  %v5525_v51 = vpack.c.bf16 %v11157_v43, %v11156_v28  ;;  %v11158_v59 = vld [vmem:[#allocation48_spill] sm:$0xff]  ;;  %v11161_v6 = vld [vmem:[#allocation58_spill] sm:$0xff] }
 0x1ee   :  { %5502 = vmatprep.subr.bf16.mxu0 %v5501_v55  ;;  %v11144_v55 = vld [vmem:[#allocation231_spill] sm:$0xff]  ;;  %v5143_v41 = vpack.c.bf16 %v11159_v26, %v11158_v59  ;;  %v11164_v8 = vld [vmem:[#allocation52_spill] sm:$0xff] }
 0x1ef   :  { %5120 = vmatpush1.bf16.msra.mxu1 %v5119_v31  ;;  %v11155_v31 = vld [vmem:[#allocation242_spill] sm:$0xff]  ;;  %v11163_v5 = vld [vmem:[#allocation243_spill] sm:$0xff] }
 0x1f0   :  { %5122 = vmatprep.subr.bf16.mxu1 %v5121_v7  ;;  %v11160_v7 = vld [vmem:[#allocation56_spill] sm:$0xff] }
 0x1f1   :  { %5504 = vmatpush1.bf16.msra.mxu0 %v5503_v23  ;;  %v5145_v47 = vpack.c.bf16 %v11161_v6, %v11160_v7  ;;  %v11162_v23 = vld [vmem:[#allocation247_spill] sm:$0xff] }
 0x1f2   :  { %5506 = vmatprep.subr.bf16.mxu0 %v5505_v1  ;;  %v11165_v1 = vld [vmem:[#allocation55_spill] sm:$0xff] }
 0x1f3   :  { %5124 = vmatpush1.bf16.msra.mxu1 %v5123_v36  ;;  %v5527_v36 = vpack.c.bf16 %v11165_v1, %v11164_v8 }
 0x1f4   :  { %5126 = vmatprep.subr.bf16.mxu1 %v5125_v52  ;;  %v11166_v52 = vld [vmem:[#allocation253_spill] sm:$0xff] }
 0x1f5   :  { %5508 = vmatpush1.bf16.msra.mxu0 %v5507_v27  ;;  %v11167_v27 = vld [vmem:[#allocation59_spill] sm:$0xff] }
 0x1f6   :  { %5510 = vmatprep.subr.bf16.mxu0 %v11140_v11  ;;  %v11168_v11 = vld [vmem:[#allocation61_spill] sm:$0xff] }
 0x1f7   :  { %5128 = vmatpush1.bf16.msra.mxu1 %v11141_v39  ;;  %v5529_v39 = vpack.c.bf16 %v11168_v11, %v11167_v27 }
 0x1f8   :  { %5130 = vmatprep.subr.bf16.mxu1 %v11142_v53  ;;  %v11169_v53 = vld [vmem:[#allocation64_spill] sm:$0xff] }
 0x1f9   :  { %5512 = vmatpush1.bf16.msra.mxu0 %v11143_v62  ;;  %v11170_v62 = vld [vmem:[#allocation65_spill] sm:$0xff] }
 0x1fa   :  { %5514 = vmatprep.subr.bf16.mxu0 %v11144_v55  ;;  %v5147_v55 = vpack.c.bf16 %v11170_v62, %v11169_v53  ;;  %v11220_v62 = vld [vmem:[#allocation114_spill] sm:$0xff] }
 0x1fb   :  { %5132 = vmatpush1.bf16.msra.mxu1 %v11145_v18  ;;  %v11171_v18 = vld [vmem:[#allocation249_spill] sm:$0xff] }
 0x1fc   :  { %5134 = vmatprep.subr.bf16.mxu1 %v11146_v37  ;;  %v11172_v37 = vld [vmem:[#allocation72_spill] sm:$0xff] }
 0x1fd   :  { %5516 = vmatpush1.bf16.msra.mxu0 %v11147_v32  ;;  %v11173_v32 = vld [vmem:[#allocation74_spill] sm:$0xff] }
 0x1fe   :  { %5518 = vmatprep.subr.bf16.mxu0 %v11148_v13  ;;  %v5149_v13 = vpack.c.bf16 %v11173_v32, %v11172_v37  ;;  %v11219_v37 = vld [vmem:[#allocation113_spill] sm:$0xff] }
 0x1ff   :  { %5136 = vmatpush1.bf16.msra.mxu1 %v11149_v34  ;;  %v11174_v34 = vld [vmem:[#allocation256_spill] sm:$0xff] }
 0x200   :  { %5138 = vmatprep.subr.bf16.mxu1 %v11150_v33  ;;  %v11175_v33 = vld [vmem:[#allocation68_spill] sm:$0xff] }
 0x201   :  { %5520 = vmatpush1.bf16.msra.mxu0 %v11153_v45 }
 0x202   :  { %5522 = vmatprep.subr.bf16.mxu0 %v11154_v61  ;;  %v11177_v61 = vld [vmem:[#allocation252_spill] sm:$0xff] }
 0x203   :  { %5140 = vmatpush1.bf16.msra.mxu1 %v11155_v31  ;;  %v11178_v31 = vld [vmem:[#allocation76_spill] sm:$0xff] }
 0x204   :  { %5142 = vmatprep.subr.bf16.mxu1 %v5141_v58  ;;  %v11176_v58 = vld [vmem:[#allocation69_spill] sm:$0xff] }
 0x205   :  { %5524 = vmatpush1.bf16.msra.mxu0 %v11162_v23  ;;  %v5531_v45 = vpack.c.bf16 %v11176_v58, %v11175_v33  ;;  %v11180_v23 = vld [vmem:[#allocation260_spill] sm:$0xff]  ;;  %v11188_v33 = vld [vmem:[#allocation259_spill] sm:$0xff] }
 0x206   :  { %2434 = vmatmul.mubr.f32.vlgmr.msra.gmra.mrb[8].mxu1 %v11163_v5  ;;  %5526 = vmatprep.subr.bf16.mxu0 %v5525_v51  ;;  %v11179_v51 = vld [vmem:[#allocation77_spill] sm:$0xff]  ;;  %v11183_v5 = vld [vmem:[#allocation254_spill] sm:$0xff] }
 0x207   :  { %2440 = vmatprep.mubr.f32.mxu1 %v11166_v52  ;;  %5144 = vmatpush1.bf16.msra.mxu1 %v5143_v41  ;;  %v5533_v41 = vpack.c.bf16 %v11179_v51, %v11178_v31  ;;  %v11214_v31 = vld [vmem:[#allocation109_spill] sm:$0xff] }
 0x208   :  { %3904 = vmatmul.mubr.f32.vlgmr.msra.gmra.mrb[8].mxu0 %v11171_v18  ;;  %5146 = vmatprep.subr.bf16.mxu1 %v5145_v47  ;;  %v11181_v18 = vld [vmem:[#allocation80_spill] sm:$0xff]  ;;  %v11182_v47 = vld [vmem:[#allocation81_spill] sm:$0xff] }
 0x209   :  { %3910 = vmatprep.mubr.f32.mxu0 %v11174_v34  ;;  %5528 = vmatpush1.bf16.msra.mxu0 %v5527_v36  ;;  %v5151_v52 = vpack.c.bf16 %v11182_v47, %v11181_v18  ;;  %v11184_v34 = vld [vmem:[#allocation88_spill] sm:$0xff]  ;;  %v11185_v36 = vld [vmem:[#allocation90_spill] sm:$0xff]  ;;  %v11193_v18 = vld [vmem:[#allocation261_spill] sm:$0xff] }
 0x20a   :  { %2442 = vmatmul.mubr.f32.gmra.mrb[10].mxu1 %v11177_v61  ;;  %5530 = vmatprep.subr.bf16.mxu0 %v5529_v39  ;;  %v5153_v32 = vpack.c.bf16 %v11185_v36, %v11184_v34  ;;  %v11186_v61 = vld [vmem:[#allocation84_spill] sm:$0xff]  ;;  %v11187_v39 = vld [vmem:[#allocation85_spill] sm:$0xff] }
 0x20b   :  { %2448 = vmatprep.mubr.f32.mxu1 %v11180_v23  ;;  %5148 = vmatpush1.bf16.msra.mxu1 %v5147_v55  ;;  %v5535_v58 = vpack.c.bf16 %v11187_v39, %v11186_v61  ;;  %v11189_v23 = vld [vmem:[#allocation29_spill] sm:$0xff]  ;;  %v11190_v55 = vld [vmem:[#allocation15_spill] sm:$0xff]  ;;  %v11196_v34 = vld [vmem:[#allocation272_spill] sm:$0xff] }
 0x20c   :  { %3912 = vmatmul.mubr.f32.gmra.mrb[10].mxu0 %v11183_v5  ;;  %5150 = vmatprep.subr.bf16.mxu1 %v5149_v13  ;;  %v5537_v51 = vpack.c.bf16 %v11190_v55, %v11189_v23  ;;  %v11191_v5 = vld [vmem:[#allocation16_spill] sm:$0xff]  ;;  %v11192_v13 = vld [vmem:[#allocation94_spill] sm:$0xff] }
 0x20d   :  { %3918 = vmatprep.mubr.f32.mxu0 %v8657_v40  ;;  %5532 = vmatpush1.bf16.msra.mxu0 %v5531_v45  ;;  %v5155_v47 = vpack.c.bf16 %v11192_v13, %v11191_v5  ;;  %v11194_v40 = vld [vmem:[#allocation17_spill] sm:$0xff]  ;;  %v11195_v45 = vld [vmem:[#allocation31_spill] sm:$0xff]  ;;  %v11199_v61 = vld [vmem:[#allocation266_spill] sm:$0xff] }
 0x20e   :  { %2450 = vmatmul.mubr.f32.gmra.mrb[12].mxu1 %v11188_v33  ;;  %5534 = vmatprep.subr.bf16.mxu0 %v5533_v41  ;;  %v5157_v36 = vpack.c.bf16 %v11195_v45, %v11194_v40  ;;  %v11197_v33 = vld [vmem:[#allocation18_spill] sm:$0xff]  ;;  %v11198_v41 = vld [vmem:[#allocation97_spill] sm:$0xff]  ;;  %v11202_v13 = vld [vmem:[#allocation128_spill] sm:$0xff] }
 0x20f   :  { %2456 = vmatprep.mubr.f32.mxu1 %v8675_v48  ;;  %5152 = vmatpush1.bf16.msra.mxu1 %v5151_v52  ;;  %v5539_v39 = vpack.c.bf16 %v11198_v41, %v11197_v33  ;;  %v11200_v48 = vld [vmem:[#allocation20_spill] sm:$0xff]  ;;  %v11201_v52 = vld [vmem:[#allocation101_spill] sm:$0xff]  ;;  %v11205_v23 = vld [vmem:[#allocation270_spill] sm:$0xff] }
 0x210   :  { %3920 = vmatmul.mubr.f32.gmra.mrb[12].mxu0 %v11193_v18  ;;  %5154 = vmatprep.subr.bf16.mxu1 %v5153_v32  ;;  %v5541_v55 = vpack.c.bf16 %v11201_v52, %v11200_v48  ;;  %v11203_v18 = vld [vmem:[#allocation22_spill] sm:$0xff]  ;;  %v11204_v32 = vld [vmem:[#allocation103_spill] sm:$0xff]  ;;  %v11208_v41 = vld [vmem:[#allocation129_spill] sm:$0xff] }
 0x211   :  { %3926 = vmatprep.mubr.f32.mxu0 %v11196_v34  ;;  %5536 = vmatpush1.bf16.msra.mxu0 %v5535_v58  ;;  %v5159_v5 = vpack.c.bf16 %v11204_v32, %v11203_v18  ;;  %v11206_v34 = vld [vmem:[#allocation23_spill] sm:$0xff]  ;;  %v11207_v58 = vld [vmem:[#allocation25_spill] sm:$0xff]  ;;  %v11213_v40 = vld [vmem:[#allocation26_spill] sm:$0xff] }
 0x212   :  { %2458 = vmatmul.mubr.f32.gmra.mrb[14].mxu1 %v11199_v61  ;;  %5538 = vmatprep.subr.bf16.mxu0 %v5537_v51  ;;  %v5161_v45 = vpack.c.bf16 %v11207_v58, %v11206_v34  ;;  %v11209_v61 = vld [vmem:[#allocation105_spill] sm:$0xff]  ;;  %v11210_v51 = vld [vmem:[#allocation106_spill] sm:$0xff]  ;;  %v11211_v52 = vld [vmem:[#allocation107_spill] sm:$0xff]  ;;  %v5163_v32 = vpack.c.bf16 %v11214_v31, %v11213_v40 }
 0x213   :  { %5156 = vmatpush1.bf16.msra.mxu1 %v5155_v47  ;;  %2658 = vmatprep.mubr.f32.mxu1 %v11202_v13  ;;  %v5543_v33 = vpack.c.bf16 %v11210_v51, %v11209_v61  ;;  %v11212_v47 = vld [vmem:[#allocation108_spill] sm:$0xff]  ;;  %v5549_v51 = vpack.c.bf16 %v11220_v62, %v11219_v37  ;;  %v11222_v61 = vld [vmem:[#allocation115_spill] sm:$0xff]  ;;  %v11226_v40 = vld [vmem:[#allocation117_spill] sm:$0xff] }
 0x214   :  { %3928 = vmatmul.mubr.f32.gmra.mrb[14].mxu0 %v11205_v23  ;;  %5158 = vmatprep.subr.bf16.mxu1 %v5157_v36  ;;  %v5545_v48 = vpack.c.bf16 %v11212_v47, %v11211_v52  ;;  %v11215_v23 = vld [vmem:[#allocation111_spill] sm:$0xff]  ;;  %v11216_v36 = vld [vmem:[#allocation112_spill] sm:$0xff]  ;;  %v11232_v37 = vld [vmem:[#allocation34_spill] sm:$0xff] }
 0x215   :  { %5540 = vmatpush1.bf16.msra.mxu0 %v5539_v39  ;;  %4128 = vmatprep.mubr.f32.mxu0 %v11208_v41  ;;  %v5165_v18 = vpack.c.bf16 %v11216_v36, %v11215_v23  ;;  %v11217_v58 = vld [vmem:[#allocation28_spill] sm:$0xff]  ;;  %v11218_v39 = vld [vmem:[#allocation110_spill] sm:$0xff]  ;;  %v11228_v23 = vld [vmem:[#allocation119_spill] sm:$0xff] }
 0x216   :  { %5542 = vmatprep.subr.bf16.mxu0 %v5541_v55  ;;  %v5547_v34 = vpack.c.bf16 %v11218_v39, %v11217_v58  ;;  %v11221_v55 = vld [vmem:[#allocation30_spill] sm:$0xff]  ;;  %v11224_v52 = vld [vmem:[#allocation24_spill] sm:$0xff]  ;;  %v11230_v58 = vld [vmem:[#allocation121_spill] sm:$0xff] }
 0x217   :  { %5160 = vmatpush1.bf16.msra.mxu1 %v5159_v5  ;;  %v5167_v47 = vpack.c.bf16 %v11222_v61, %v11221_v55  ;;  %v11223_v5 = vld [vmem:[#allocation118_spill] sm:$0xff]  ;;  %v11234_v55 = vld [vmem:[#allocation123_spill] sm:$0xff] }
 0x218   :  { %5162 = vmatprep.subr.bf16.mxu1 %v5161_v45  ;;  %v5169_v31 = vpack.c.bf16 %v11224_v52, %v11223_v5  ;;  %v11225_v45 = vld [vmem:[#allocation116_spill] sm:$0xff]  ;;  %v11236_v5 = vld [vmem:[#allocation127_spill] sm:$0xff] }
 0x219   :  { %5544 = vmatpush1.bf16.msra.mxu0 %v5543_v33  ;;  %v5551_v36 = vpack.c.bf16 %v11226_v40, %v11225_v45  ;;  %v11227_v33 = vld [vmem:[#allocation32_spill] sm:$0xff] }
 0x21a   :  { %5546 = vmatprep.subr.bf16.mxu0 %v5545_v48  ;;  %v5553_v39 = vpack.c.bf16 %v11228_v23, %v11227_v33  ;;  %v11229_v48 = vld [vmem:[#allocation120_spill] sm:$0xff] }
 0x21b   :  { %5164 = vmatpush1.bf16.msra.mxu1 %v5163_v32  ;;  %v5171_v62 = vpack.c.bf16 %v11230_v58, %v11229_v48  ;;  %v11231_v32 = vld [vmem:[#allocation124_spill] sm:$0xff] }
 0x21c   :  { %5166 = vmatprep.subr.bf16.mxu1 %v5165_v18  ;;  %v5173_v61 = vpack.c.bf16 %v11232_v37, %v11231_v32  ;;  %v11233_v18 = vld [vmem:[#allocation122_spill] sm:$0xff] }
 0x21d   :  { %5548 = vmatpush1.bf16.msra.mxu0 %v5547_v34  ;;  %v5555_v52 = vpack.c.bf16 %v11234_v55, %v11233_v18  ;;  %v11235_v34 = vld [vmem:[#allocation126_spill] sm:$0xff] }
 0x21e   :  { %5550 = vmatprep.subr.bf16.mxu0 %v5549_v51  ;;  %v5557_v40 = vpack.c.bf16 %v11236_v5, %v11235_v34  ;;  %v5175_v51 = vpack.c.bf16 %v11010_v24, %v11003_v12  ;;  %v11238_v37 = vld [vmem:[#allocation138_spill] sm:$0xff] }
 0x21f   :  { %5168 = vmatpush1.bf16.msra.mxu1 %v5167_v47  ;;  %v5177_v47 = vpack.c.bf16 %v11054_v9, %v11053_v20 }
 0x220   :  { %5170 = vmatprep.subr.bf16.mxu1 %v5169_v31  ;;  %v5559_v31 = vpack.c.bf16 %v11052_v35, %v11013_v10 }
 0x221   :  { %5552 = vmatpush1.bf16.msra.mxu0 %v5551_v36  ;;  %v11237_v36 = vld [vmem:[#allocation137_spill] sm:$0xff] }
 0x222   :  { %5554 = vmatprep.subr.bf16.mxu0 %v5553_v39  ;;  %v5561_v55 = vpack.c.bf16 %v11238_v37, %v11237_v36  ;;  %v5179_v39 = vpack.c.bf16 %v11077_v16, %v11062_v4 }
 0x223   :  { %5172 = vmatpush1.bf16.msra.mxu1 %v5171_v62  ;;  %v5181_v62 = vpack.c.bf16 %v11081_v19, %v11080_v17 }
 0x224   :  { %5174 = vmatprep.subr.bf16.mxu1 %v5173_v61  ;;  %v5563_v61 = vpack.c.bf16 %v11087_v54, %v11083_v50 }
 0x225   :  { %5556 = vmatpush1.bf16.msra.mxu0 %v5555_v52  ;;  %v5565_v52 = vpack.c.bf16 %v11101_v22, %v11090_v57 }
 0x226   :  { %5558 = vmatprep.subr.bf16.mxu0 %v5557_v40  ;;  %v5183_v40 = vpack.c.bf16 %v11105_v56, %v11102_v60  ;;  %v11318_v56 = vld [vmem:[#allocation92_spill] sm:$0xff]  ;;  %v11365_v60 = vld [vmem:[#allocation181_spill] sm:$0xff] }
 0x227   :  { %5176 = vmatpush1.bf16.msra.mxu1 %v5175_v51  ;;  %v5185_v51 = vpack.c.bf16 %v11111_v2, %v11110_v29  ;;  %v11314_v2 = vld [vmem:[#allocation79_spill] sm:$0xff]  ;;  %v11316_v29 = vld [vmem:[#allocation66_spill] sm:$0xff] }
 0x228   :  { %5178 = vmatprep.subr.bf16.mxu1 %v5177_v47  ;;  %v5567_v47 = vpack.c.bf16 %v11115_v44, %v11114_v30  ;;  %v11309_v44 = vld [vmem:[#allocation70_spill] sm:$0xff]  ;;  %v11312_v30 = vld [vmem:[#allocation208_spill] sm:$0xff] }
 0x229   :  { %5560 = vmatpush1.bf16.msra.mxu0 %v5559_v31  ;;  %v5569_v31 = vpack.c.bf16 %v11121_v38, %v11118_v21  ;;  %v11242_v38 = vld [vmem:[#allocation63_spill] sm:$0xff] }
 0x22a   :  { %5562 = vmatprep.subr.bf16.mxu0 %v5561_v55  ;;  %v5187_v55 = vpack.c.bf16 %v11123_v42, %v11122_v14  ;;  %v11245_v42 = vld [vmem:[#allocation183_spill] sm:$0xff] }
 0x22b   :  { %5180 = vmatpush1.bf16.msra.mxu1 %v5179_v39  ;;  %v5189_v39 = vpack.c.bf16 %v11127_v15, %v11126_v0  ;;  %v11248_v15 = vld [vmem:[#allocation50_spill] sm:$0xff] }
 0x22c   :  { %5182 = vmatprep.subr.bf16.mxu1 %v5181_v62  ;;  %v5571_v62 = vpack.c.bf16 %v11132_v46, %v11131_v49  ;;  %v11254_v46 = vld [vmem:[#allocation187_spill] sm:$0xff]  ;;  %v11307_v49 = vld [vmem:[#allocation60_spill] sm:$0xff] }
 0x22d   :  { %5564 = vmatpush1.bf16.msra.mxu0 %v5563_v61  ;;  %v11239_v61 = vld [vmem:[#allocation167_spill] sm:$0xff] }
 0x22e   :  { %5566 = vmatprep.subr.bf16.mxu0 %v5565_v52  ;;  %v11240_v52 = vpack.c.bf16 %v7531_v25, %v11239_v61  ;;  %v11257_v61 = vld [vmem:[#allocation191_spill] sm:$0xff] }
 0x22f   :  { %5184 = vmatpush1.bf16.msra.mxu1 %v5183_v40  ;;  %v11241_v40 = vld [vmem:[#allocation169_spill] sm:$0xff] }
 0x230   :  { %5186 = vmatprep.subr.bf16.mxu1 %v5185_v51  ;;  %v11243_v21 = vpack.c.bf16 %v11241_v40, %v11242_v38  ;;  %v11244_v51 = vld [vmem:[#allocation184_spill] sm:$0xff]  ;;  %v11260_v38 = vld [vmem:[#allocation189_spill] sm:$0xff] }
 0x231   :  { %5568 = vmatpush1.bf16.msra.mxu0 %v5567_v47  ;;  %v11246_v14 = vpack.c.bf16 %v11244_v51, %v11245_v42  ;;  %v11247_v47 = vld [vmem:[#allocation170_spill] sm:$0xff]  ;;  %v11263_v42 = vld [vmem:[#allocation193_spill] sm:$0xff] }
 0x232   :  { %5570 = vmatprep.subr.bf16.mxu0 %v5569_v31  ;;  %v11249_v0 = vpack.c.bf16 %v11247_v47, %v11248_v15  ;;  %v11250_v31 = vld [vmem:[#allocation186_spill] sm:$0xff]  ;;  %v11266_v15 = vld [vmem:[#allocation195_spill] sm:$0xff] }
 0x233   :  { %5188 = vmatpush1.bf16.msra.mxu1 %v5187_v55  ;;  %v11251_v55 = vld [vmem:[#allocation185_spill] sm:$0xff] }
 0x234   :  { %5190 = vmatprep.subr.bf16.mxu1 %v5189_v39  ;;  %v11252_v39 = vpack.c.bf16 %v11250_v31, %v11251_v55  ;;  %v11269_v55 = vld [vmem:[#allocation199_spill] sm:$0xff] }
 0x235   :  { %5572 = vmatpush1.bf16.msra.mxu0 %v5571_v62  ;;  %v11253_v62 = vld [vmem:[#allocation188_spill] sm:$0xff] }
 0x236   :  { %5574 = vmatprep.subr.bf16.mxu0 %v11240_v52  ;;  %v11255_v25 = vpack.c.bf16 %v11253_v62, %v11254_v46  ;;  %v11256_v52 = vld [vmem:[#allocation192_spill] sm:$0xff]  ;;  %v11272_v46 = vld [vmem:[#allocation197_spill] sm:$0xff] }
 0x237   :  { %5192 = vmatpush1.bf16.msra.mxu1 %v11243_v21  ;;  %v11258_v40 = vpack.c.bf16 %v11256_v52, %v11257_v61  ;;  %v11259_v21 = vld [vmem:[#allocation190_spill] sm:$0xff]  ;;  %v11275_v61 = vld [vmem:[#allocation201_spill] sm:$0xff] }
 0x238   :  { %5194 = vmatprep.subr.bf16.mxu1 %v11246_v14  ;;  %v11261_v51 = vpack.c.bf16 %v11259_v21, %v11260_v38  ;;  %v11262_v14 = vld [vmem:[#allocation194_spill] sm:$0xff]  ;;  %v11278_v38 = vld [vmem:[#allocation203_spill] sm:$0xff] }
 0x239   :  { %5576 = vmatpush1.bf16.msra.mxu0 %v11249_v0  ;;  %v11264_v47 = vpack.c.bf16 %v11262_v14, %v11263_v42  ;;  %v11265_v0 = vld [vmem:[#allocation196_spill] sm:$0xff]  ;;  %v11305_v42 = vld [vmem:[#allocation78_spill] sm:$0xff] }
 0x23a   :  { %5578 = vmatprep.subr.bf16.mxu0 %v11252_v39  ;;  %v11267_v31 = vpack.c.bf16 %v11265_v0, %v11266_v15  ;;  %v11268_v39 = vld [vmem:[#allocation200_spill] sm:$0xff]  ;;  %v11281_v0 = vld [vmem:[#allocation206_spill] sm:$0xff] }
 0x23b   :  { %5196 = vmatpush1.bf16.msra.mxu1 %v11255_v25  ;;  %v11270_v62 = vpack.c.bf16 %v11268_v39, %v11269_v55  ;;  %v11271_v25 = vld [vmem:[#allocation198_spill] sm:$0xff]  ;;  %v11284_v39 = vld [vmem:[#allocation248_spill] sm:$0xff]  ;;  %v11303_v55 = vld [vmem:[#allocation71_spill] sm:$0xff] }
 0x23c   :  { %5198 = vmatprep.subr.bf16.mxu1 %v11258_v40  ;;  %v11273_v52 = vpack.c.bf16 %v11271_v25, %v11272_v46  ;;  %v11274_v40 = vld [vmem:[#allocation202_spill] sm:$0xff]  ;;  %v11286_v25 = vld [vmem:[#allocation255_spill] sm:$0xff] }
 0x23d   :  { %5580 = vmatpush1.bf16.msra.mxu0 %v11261_v51  ;;  %v11276_v21 = vpack.c.bf16 %v11274_v40, %v11275_v61  ;;  %v11277_v51 = vld [vmem:[#allocation204_spill] sm:$0xff]  ;;  %v11288_v40 = vld [vmem:[#allocation251_spill] sm:$0xff]  ;;  %v11299_v61 = vld [vmem:[#allocation53_spill] sm:$0xff] }
 0x23e   :  { %5582 = vmatprep.subr.bf16.mxu0 %v11264_v47  ;;  %v11279_v14 = vpack.c.bf16 %v11277_v51, %v11278_v38  ;;  %v11280_v47 = vld [vmem:[#allocation35_spill] sm:$0xff]  ;;  %v11290_v51 = vld [vmem:[#allocation258_spill] sm:$0xff]  ;;  %v11297_v38 = vld [vmem:[#allocation57_spill] sm:$0xff] }
 0x23f   :  { %5200 = vmatpush1.bf16.msra.mxu1 %v11267_v31  ;;  %v11282_v31 = vld [vmem:[#allocation205_spill] sm:$0xff]  ;;  %v11301_v46 = vld [vmem:[#allocation62_spill] sm:$0xff] }
 0x240   :  { %5202 = vmatprep.subr.bf16.mxu1 %v11270_v62  ;;  %v11283_v15 = vpack.c.bf16 %v11281_v0, %v11282_v31  ;;  %v11285_v62 = vld [vmem:[#allocation163_spill] sm:$0xff]  ;;  %v11295_v31 = vld [vmem:[#allocation49_spill] sm:$0xff] }
 0x241   :  { %5584 = vmatpush1.bf16.msra.mxu0 %v11273_v52  ;;  %v11287_v52 = vld [vmem:[#allocation21_spill] sm:$0xff]  ;;  %v11293_v0 = vld [vmem:[#allocation43_spill] sm:$0xff] }
 0x242   :  { %5586 = vmatprep.subr.bf16.mxu0 %v11276_v21  ;;  %v11289_v21 = vld [vmem:[#allocation40_spill] sm:$0xff] }
 0x243   :  { %5204 = vmatpush1.bf16.msra.mxu1 %v11279_v14  ;;  %v11291_v14 = vld [vmem:[#allocation38_spill] sm:$0xff] }
 0x244   :  { %5206 = vmatprep.subr.bf16.mxu1 %v11280_v47  ;;  %v11292_v47 = vld [vmem:[#allocation132_spill] sm:$0xff] }
 0x245   :  { %5588 = vmatpush1.bf16.msra.mxu0 %v11283_v15  ;;  %v11294_v15 = vld [vmem:[#allocation263_spill] sm:$0xff] }
 0x246   :  { %2661 = vmatmul.mubr.f32.vlgmr.msra.gmra.mrb[8].mxu1 %v11284_v39  ;;  %5590 = vmatprep.subr.bf16.mxu0 %v11285_v62  ;;  %v11296_v62 = vld [vmem:[#allocation257_spill] sm:$0xff] }
 0x247   :  { %2668 = vmatprep.mubr.f32.mxu1 %v11286_v25  ;;  %5208 = vmatpush1.bf16.msra.mxu1 %v11287_v52  ;;  %v11298_v52 = vld [vmem:[#allocation267_spill] sm:$0xff] }
 0x248   :  { %4131 = vmatmul.mubr.f32.vlgmr.msra.gmra.mrb[8].mxu0 %v11288_v40  ;;  %5210 = vmatprep.subr.bf16.mxu1 %v11289_v21  ;;  %v11300_v21 = vld [vmem:[#allocation262_spill] sm:$0xff] }
 0x249   :  { %4138 = vmatprep.mubr.f32.mxu0 %v11290_v51  ;;  %5592 = vmatpush1.bf16.msra.mxu0 %v11291_v14  ;;  %v11302_v14 = vld [vmem:[#allocation271_spill] sm:$0xff] }
 0x24a   :  { %2671 = vmatmul.mubr.f32.gmra.mrb[10].mxu1 %v11292_v47  ;;  %5594 = vmatprep.subr.bf16.mxu0 %v11293_v0  ;;  %v11304_v0 = vld [vmem:[#allocation265_spill] sm:$0xff] }
 0x24b   :  { %2678 = vmatprep.mubr.f32.mxu1 %v11294_v15  ;;  %5212 = vmatpush1.bf16.msra.mxu1 %v11295_v31  ;;  %v11306_v31 = vld [vmem:[#allocation273_spill] sm:$0xff] }
 0x24c   :  { %4141 = vmatmul.mubr.f32.gmra.mrb[10].mxu0 %v11296_v62  ;;  %5214 = vmatprep.subr.bf16.mxu1 %v11297_v38  ;;  %v11308_v38 = vld [vmem:[#allocation269_spill] sm:$0xff] }
 0x24d   :  { %4148 = vmatprep.mubr.f32.mxu0 %v11298_v52  ;;  %5596 = vmatpush1.bf16.msra.mxu0 %v11299_v61  ;;  %v11310_v61 = vld [vmem:[#allocation67_spill] sm:$0xff] }
 0x24e   :  { %2681 = vmatmul.mubr.f32.gmra.mrb[12].mxu1 %v11300_v21  ;;  %5598 = vmatprep.subr.bf16.mxu0 %v11301_v46  ;;  %v11311_v46 = vand.u32 4294901760, %v11202_v13  ;;  %v11322_v13 = vld [vmem:[#allocation89_spill] sm:$0xff] }
 0x24f   :  { %2688 = vmatprep.mubr.f32.mxu1 %v11302_v14  ;;  %5216 = vmatpush1.bf16.msra.mxu1 %v11303_v55  ;;  %v11313_v55 = vld [vmem:[#allocation73_spill] sm:$0xff] }
 0x250   :  { %4151 = vmatmul.mubr.f32.gmra.mrb[12].mxu0 %v11304_v0  ;;  %5218 = vmatprep.subr.bf16.mxu1 %v11305_v42  ;;  %v11315_v42 = vand.u32 4294901760, %v11208_v41  ;;  %v11325_v41 = vld [vmem:[#allocation99_spill] sm:$0xff] }
 0x251   :  { %4158 = vmatprep.mubr.f32.mxu0 %v11306_v31  ;;  %5600 = vmatpush1.bf16.msra.mxu0 %v11307_v49  ;;  %v11317_v49 = vld [vmem:[#allocation87_spill] sm:$0xff] }
 0x252   :  { %2691 = vmatmul.mubr.f32.gmra.mrb[14].mxu1 %v11308_v38  ;;  %5602 = vmatprep.subr.bf16.mxu0 %v11309_v44  ;;  %v11319_v44 = vld [vmem:[#allocation75_spill] sm:$0xff] }
 0x253   :  { %5220 = vmatpush1.bf16.msra.mxu1 %v11310_v61  ;;  %2828 = vmatprep.mubr.f32.mxu1 %v11311_v46  ;;  %v11320_v61 = vld [vmem:[#allocation86_spill] sm:$0xff]  ;;  %v11321_v46 = vld [vmem:[#allocation83_spill] sm:$0xff] }
 0x254   :  { %4161 = vmatmul.mubr.f32.gmra.mrb[14].mxu0 %v11312_v30  ;;  %5222 = vmatprep.subr.bf16.mxu1 %v11313_v55  ;;  %v11323_v55 = vld [vmem:[#allocation93_spill] sm:$0xff] }
 0x255   :  { %5604 = vmatpush1.bf16.msra.mxu0 %v11314_v2  ;;  %4298 = vmatprep.mubr.f32.mxu0 %v11315_v42  ;;  %v11324_v2 = vld [vmem:[#allocation82_spill] sm:$0xff] }
 0x256   :  { %5606 = vmatprep.subr.bf16.mxu0 %v11316_v29  ;;  %v11326_v42 = vld [vmem:[#allocation102_spill] sm:$0xff]  ;;  %v11327_v29 = vld [vmem:[#allocation91_spill] sm:$0xff] }
 0x257   :  { %5224 = vmatpush1.bf16.msra.mxu1 %v11317_v49  ;;  %v11328_v49 = vld [vmem:[#allocation98_spill] sm:$0xff] }
 0x258   :  { %5226 = vmatprep.subr.bf16.mxu1 %v11318_v56  ;;  %v11329_v56 = vld [vmem:[#allocation100_spill] sm:$0xff] }
 0x259   :  { %5608 = vmatpush1.bf16.msra.mxu0 %v11319_v44  ;;  %v11330_v44 = vld [vmem:[#allocation19_spill] sm:$0xff] }
 0x25a   :  { %5610 = vmatprep.subr.bf16.mxu0 %v11320_v61  ;;  %v11331_v61 = vld [vmem:[#allocation95_spill] sm:$0xff] }
 0x25b   :  { %5228 = vmatpush1.bf16.msra.mxu1 %v11321_v46  ;;  %v11332_v46 = vld [vmem:[#allocation96_spill] sm:$0xff] }
 0x25c   :  { %5230 = vmatprep.subr.bf16.mxu1 %v11322_v13  ;;  %v11333_v13 = vld [vmem:[#allocation172_spill] sm:$0xff] }
 0x25d   :  { %5612 = vmatpush1.bf16.msra.mxu0 %v11323_v55  ;;  %v11334_v55 = vld [vmem:[#allocation125_spill] sm:$0xff] }
 0x25e   :  { %5614 = vmatprep.subr.bf16.mxu0 %v11324_v2  ;;  %v11335_v2 = vld [vmem:[#allocation104_spill] sm:$0xff] }
 0x25f   :  { %5232 = vmatpush1.bf16.msra.mxu1 %v11325_v41  ;;  %v11336_v41 = vld [vmem:[#allocation171_spill] sm:$0xff] }
 0x260   :  { %5234 = vmatprep.subr.bf16.mxu1 %v11326_v42  ;;  %v11337_v42 = vld [vmem:[#allocation130_spill] sm:$0xff] }
 0x261   :  { %5616 = vmatpush1.bf16.msra.mxu0 %v11327_v29  ;;  %v11338_v29 = vld [vmem:[#allocation131_spill] sm:$0xff] }
 0x262   :  { %5618 = vmatprep.subr.bf16.mxu0 %v11328_v49  ;;  %v11339_v49 = vld [vmem:[#allocation173_spill] sm:$0xff] }
 0x263   :  { %5236 = vmatpush1.bf16.msra.mxu1 %v11329_v56  ;;  %v11340_v56 = vld [vmem:[#allocation139_spill] sm:$0xff] }
 0x264   :  { %5238 = vmatprep.subr.bf16.mxu1 %v11330_v44  ;;  %v11341_v44 = vld [vmem:[#allocation146_spill] sm:$0xff] }
 0x265   :  { %5620 = vmatpush1.bf16.msra.mxu0 %v11331_v61  ;;  %v11342_v61 = vld [vmem:[#allocation153_spill] sm:$0xff] }
 0x266   :  { %5622 = vmatprep.subr.bf16.mxu0 %v11332_v46  ;;  %v11343_v46 = vld [vmem:[#allocation134_spill] sm:$0xff] }
 0x267   :  { %5240 = vmatpush1.bf16.msra.mxu1 %v11333_v13  ;;  %v11344_v13 = vld [vmem:[#allocation136_spill] sm:$0xff] }
 0x268   :  { %5242 = vmatprep.subr.bf16.mxu1 %v11334_v55  ;;  %v11345_v55 = vld [vmem:[#allocation143_spill] sm:$0xff] }
 0x269   :  { %5624 = vmatpush1.bf16.msra.mxu0 %v11335_v2  ;;  %v11346_v2 = vld [vmem:[#allocation148_spill] sm:$0xff] }
 0x26a   :  { %5626 = vmatprep.subr.bf16.mxu0 %v11336_v41  ;;  %v11347_v41 = vld [vmem:[#allocation154_spill] sm:$0xff] }
 0x26b   :  { %5244 = vmatpush1.bf16.msra.mxu1 %v11337_v42  ;;  %v11348_v42 = vld [vmem:[#allocation142_spill] sm:$0xff] }
 0x26c   :  { %5246 = vmatprep.subr.bf16.mxu1 %v11338_v29  ;;  %v11349_v29 = vld [vmem:[#allocation161_spill] sm:$0xff] }
 0x26d   :  { %5628 = vmatpush1.bf16.msra.mxu0 %v11339_v49  ;;  %v11350_v49 = vld [vmem:[#allocation162_spill] sm:$0xff] }
 0x26e   :  { %5630 = vmatprep.subr.bf16.mxu0 %v11340_v56  ;;  %v11351_v56 = vld [vmem:[#allocation150_spill] sm:$0xff] }
 0x26f   :  { %5248 = vmatpush1.bf16.msra.mxu1 %v11341_v44  ;;  %v11352_v44 = vld [vmem:[#allocation157_spill] sm:$0xff] }
 0x270   :  { %5250 = vmatprep.subr.bf16.mxu1 %v11342_v61  ;;  %v11353_v61 = vld [vmem:[#allocation158_spill] sm:$0xff] }
 0x271   :  { %5632 = vmatpush1.bf16.msra.mxu0 %v11343_v46  ;;  %v11354_v46 = vld [vmem:[#allocation175_spill] sm:$0xff] }
 0x272   :  { %5634 = vmatprep.subr.bf16.mxu0 %v11344_v13  ;;  %v11355_v13 = vld [vmem:[#allocation174_spill] sm:$0xff] }
 0x273   :  { %5252 = vmatpush1.bf16.msra.mxu1 %v11345_v55  ;;  %v11356_v55 = vld [vmem:[#allocation176_spill] sm:$0xff] }
 0x274   :  { %5254 = vmatprep.subr.bf16.mxu1 %v11346_v2  ;;  %v11357_v2 = vld [vmem:[#allocation177_spill] sm:$0xff] }
 0x275   :  { %5636 = vmatpush1.bf16.msra.mxu0 %v11347_v41  ;;  %v11358_v41 = vld [vmem:[#allocation179_spill] sm:$0xff] }
 0x276   :  { %5638 = vmatprep.subr.bf16.mxu0 %v11348_v42 }
 0x277   :  { %5256 = vmatpush1.bf16.msra.mxu1 %v11349_v29  ;;  %v11359_v29 = vand.u32 4294901760, %v11151_v3  ;;  %v11368_v3 = vand.u32 4294901760, %v11160_v7  ;;  %v11376_v7 = vand.u32 4294901760, %v11286_v25  ;;  %v11386_v25 = vld [vmem:[#allocation68_spill] sm:$0xff] }
 0x278   :  { %5258 = vmatprep.subr.bf16.mxu1 %v11350_v49  ;;  %v11360_v49 = vand.u32 4294901760, %v11152_v63  ;;  %v11370_v63 = vld [vmem:[#allocation182_spill] sm:$0xff] }
 0x279   :  { %5640 = vmatpush1.bf16.msra.mxu0 %v11351_v56  ;;  %v11361_v56 = vld [vmem:[#allocation178_spill] sm:$0xff] }
 0x27a   :  { %5642 = vmatprep.subr.bf16.mxu0 %v11352_v44  ;;  %v5269_v42 = vpack.c.bf16 %v11360_v49, %v11359_v29  ;;  %v11362_v44 = vld [vmem:[#allocation180_spill] sm:$0xff]  ;;  %v11369_v29 = vand.u32 4294901760, %v11161_v6  ;;  %v11377_v6 = vand.u32 4294901760, %v11169_v53 }
 0x27b   :  { %5260 = vmatpush1.bf16.msra.mxu1 %v11353_v61  ;;  %v11363_v61 = vand.u32 4294901760, %v11156_v28  ;;  %v11371_v28 = vand.u32 4294901760, %v11164_v8 }
 0x27c   :  { %5262 = vmatprep.subr.bf16.mxu1 %v11354_v46  ;;  %v11364_v46 = vand.u32 4294901760, %v11157_v43  ;;  %v5273_v49 = vpack.c.bf16 %v11369_v29, %v11368_v3  ;;  %v11372_v43 = vand.u32 4294901760, %v11165_v1  ;;  %v11380_v1 = vand.u32 4294901760, %v11288_v40  ;;  %v11383_v3 = vld [vmem:[#allocation74_spill] sm:$0xff]  ;;  %v11391_v40 = vld [vmem:[#allocation76_spill] sm:$0xff] }
 0x27d   :  { %5644 = vmatpush1.bf16.msra.mxu0 %v11355_v13 }
 0x27e   :  { %5646 = vmatprep.subr.bf16.mxu0 %v11356_v55  ;;  %v5653_v13 = vpack.c.bf16 %v11364_v46, %v11363_v61  ;;  %v5655_v61 = vpack.c.bf16 %v11372_v43, %v11371_v28  ;;  %v11373_v46 = vand.u32 4294901760, %v11284_v39  ;;  %v11381_v39 = vld [vmem:[#allocation72_spill] sm:$0xff]  ;;  %v11388_v28 = vld [vmem:[#allocation69_spill] sm:$0xff] }
 0x27f   :  { %5264 = vmatpush1.bf16.msra.mxu1 %v11357_v2  ;;  %v11366_v2 = vand.u32 4294901760, %v11158_v59  ;;  %v11374_v59 = vand.u32 4294901760, %v11167_v27  ;;  %v11384_v27 = vand.u32 4294901760, %v11383_v3  ;;  %v11389_v53 = vand.u32 4294901760, %v11388_v28 }
 0x280   :  { %5266 = vmatprep.subr.bf16.mxu1 %v11358_v41  ;;  %v11367_v41 = vand.u32 4294901760, %v11159_v26 }
 0x281   :  { %5648 = vmatpush1.bf16.msra.mxu0 %v11361_v56 }
 0x282   :  { %5650 = vmatprep.subr.bf16.mxu0 %v11362_v44  ;;  %v5271_v55 = vpack.c.bf16 %v11367_v41, %v11366_v2  ;;  %v11375_v2 = vand.u32 4294901760, %v11168_v11  ;;  %v11378_v41 = vld [vmem:[#allocation65_spill] sm:$0xff]  ;;  %v11385_v11 = vand.u32 4294901760, %v11290_v51  ;;  %v11396_v51 = vld [vmem:[#allocation80_spill] sm:$0xff] }
 0x283   :  { %5268 = vmatpush1.bf16.msra.mxu1 %v11365_v60  ;;  %v11379_v8 = vand.u32 4294901760, %v11378_v41  ;;  %v11398_v41 = vld [vmem:[#allocation81_spill] sm:$0xff] }
 0x284   :  { %5270 = vmatprep.subr.bf16.mxu1 %v5269_v42  ;;  %v5657_v26 = vpack.c.bf16 %v11375_v2, %v11374_v59  ;;  %v11393_v59 = vld [vmem:[#allocation77_spill] sm:$0xff] }
 0x285   :  { %5652 = vmatpush1.bf16.msra.mxu0 %v11370_v63  ;;  %v5275_v42 = vpack.c.bf16 %v11379_v8, %v11377_v6  ;;  %v11394_v2 = vand.u32 4294901760, %v11393_v59  ;;  %v11395_v6 = vand.u32 4294901760, %v11294_v15  ;;  %v11399_v8 = vand.u32 4294901760, %v11398_v41  ;;  %v11406_v15 = vld [vmem:[#allocation84_spill] sm:$0xff]  ;;  %v11423_v41 = vld [vmem:[#allocation31_spill] sm:$0xff] }
 0x286   :  { %2832 = vmatmul.mubr.f32.vlgmr.msra.gmra.mrb[8].mxu1 %v11373_v46  ;;  %5654 = vmatprep.subr.bf16.mxu0 %v5653_v13  ;;  %v11382_v13 = vand.u32 4294901760, %v11381_v39  ;;  %v11390_v46 = vand.u32 4294901760, %v11292_v47  ;;  %v11400_v39 = vand.u32 4294901760, %v11296_v62  ;;  %v11401_v47 = vld [vmem:[#allocation88_spill] sm:$0xff]  ;;  %v11411_v62 = vld [vmem:[#allocation29_spill] sm:$0xff]  ;;  %v11415_v59 = vand.u32 4294901760, %v11302_v14 }
 0x287   :  { %2840 = vmatprep.mubr.f32.mxu1 %v11376_v7  ;;  %5272 = vmatpush1.bf16.msra.mxu1 %v5271_v55  ;;  %v11387_v55 = vand.u32 4294901760, %v11386_v25  ;;  %v11408_v25 = vld [vmem:[#allocation85_spill] sm:$0xff]  ;;  %v11426_v14 = vld [vmem:[#allocation18_spill] sm:$0xff] }
 0x288   :  { %4302 = vmatmul.mubr.f32.vlgmr.msra.gmra.mrb[8].mxu0 %v11380_v1  ;;  %5274 = vmatprep.subr.bf16.mxu1 %v5273_v49  ;;  %v5277_v29 = vpack.c.bf16 %v11384_v27, %v11382_v13  ;;  %v11392_v49 = vand.u32 4294901760, %v11391_v40  ;;  %v11403_v13 = vld [vmem:[#allocation90_spill] sm:$0xff] }
 0x289   :  { %4310 = vmatprep.mubr.f32.mxu0 %v11385_v11  ;;  %5656 = vmatpush1.bf16.msra.mxu0 %v5655_v61  ;;  %v5659_v43 = vpack.c.bf16 %v11389_v53, %v11387_v55  ;;  %v11397_v61 = vand.u32 4294901760, %v11396_v51  ;;  %v11404_v3 = vand.u32 4294901760, %v11403_v13  ;;  %v11405_v11 = vand.u32 4294901760, %v11298_v52  ;;  %v11416_v52 = vld [vmem:[#allocation16_spill] sm:$0xff] }
 0x28a   :  { %2844 = vmatmul.mubr.f32.gmra.mrb[10].mxu1 %v11390_v46  ;;  %5658 = vmatprep.subr.bf16.mxu0 %v5657_v26  ;;  %v5661_v7 = vpack.c.bf16 %v11394_v2, %v11392_v49  ;;  %v11402_v26 = vand.u32 4294901760, %v11401_v47  ;;  %v11409_v55 = vand.u32 4294901760, %v11408_v25  ;;  %v11410_v53 = vand.u32 4294901760, %v11300_v21  ;;  %v11413_v46 = vld [vmem:[#allocation15_spill] sm:$0xff]  ;;  %v11418_v2 = vld [vmem:[#allocation94_spill] sm:$0xff]  ;;  %v11421_v21 = vld [vmem:[#allocation17_spill] sm:$0xff] }
 0x28b   :  { %2852 = vmatprep.mubr.f32.mxu1 %v11395_v6  ;;  %5276 = vmatpush1.bf16.msra.mxu1 %v5275_v42  ;;  %v5279_v1 = vpack.c.bf16 %v11399_v8, %v11397_v61  ;;  %v11407_v42 = vand.u32 4294901760, %v11406_v15  ;;  %v11414_v40 = vand.u32 4294901760, %v11413_v46  ;;  %v11419_v6 = vand.u32 4294901760, %v11418_v2  ;;  %v11433_v15 = vld [vmem:[#allocation101_spill] sm:$0xff] }
 0x28c   :  { %4314 = vmatmul.mubr.f32.gmra.mrb[10].mxu0 %v11400_v39  ;;  %5278 = vmatprep.subr.bf16.mxu1 %v5277_v29  ;;  %v5281_v27 = vpack.c.bf16 %v11404_v3, %v11402_v26  ;;  %v11412_v29 = vand.u32 4294901760, %v11411_v62  ;;  %v11420_v61 = vand.u32 4294901760, %v11304_v0  ;;  %v11424_v8 = vand.u32 4294901760, %v11423_v41  ;;  %v11428_v26 = vld [vmem:[#allocation97_spill] sm:$0xff]  ;;  %v11431_v0 = vld [vmem:[#allocation20_spill] sm:$0xff] }
 0x28d   :  { %4322 = vmatprep.mubr.f32.mxu0 %v11405_v11  ;;  %5660 = vmatpush1.bf16.msra.mxu0 %v5659_v43  ;;  %v5663_v28 = vpack.c.bf16 %v11409_v55, %v11407_v42  ;;  %v11417_v43 = vand.u32 4294901760, %v11416_v52  ;;  %v11425_v47 = vand.u32 4294901760, %v11306_v31  ;;  %v11429_v13 = vand.u32 4294901760, %v11428_v26  ;;  %v11435_v55 = vld [vmem:[#allocation245_spill] sm:$0xff]  ;;  %v11436_v31 = vld [vmem:[#allocation22_spill] sm:$0xff] }
 0x28e   :  { %2856 = vmatmul.mubr.f32.gmra.mrb[12].mxu1 %v11410_v53  ;;  %5662 = vmatprep.subr.bf16.mxu0 %v5661_v7  ;;  %v5665_v49 = vpack.c.bf16 %v11414_v40, %v11412_v29  ;;  %v11422_v7 = vand.u32 4294901760, %v11421_v21  ;;  %v11430_v11 = vand.u32 4294901760, %v11308_v38  ;;  %v11434_v42 = vand.u32 4294901760, %v11433_v15  ;;  %v11441_v38 = vld [vmem:[#allocation23_spill] sm:$0xff]  ;;  %v11446_v2 = vld [vmem:[#allocation105_spill] sm:$0xff] }
 0x28f   :  { %2864 = vmatprep.mubr.f32.mxu1 %v11415_v59  ;;  %5280 = vmatpush1.bf16.msra.mxu1 %v5279_v1  ;;  %v5283_v51 = vpack.c.bf16 %v11419_v6, %v11417_v43  ;;  %v11427_v1 = vand.u32 4294901760, %v11426_v14  ;;  %v11437_v53 = vand.u32 4294901760, %v11436_v31  ;;  %v11440_v46 = vand.u32 4294901760, %v11312_v30  ;;  %v11445_v43 = vld [vmem:[#allocation250_spill] sm:$0xff] }
 0x290   :  { %4326 = vmatmul.mubr.f32.gmra.mrb[12].mxu0 %v11420_v61  ;;  %5282 = vmatprep.subr.bf16.mxu1 %v5281_v27  ;;  %v5285_v39 = vpack.c.bf16 %v11424_v8, %v11422_v7  ;;  %v11432_v27 = vand.u32 4294901760, %v11431_v0  ;;  %v11442_v40 = vand.u32 4294901760, %v11441_v38  ;;  %v11447_v6 = vand.u32 4294901760, %v11446_v2  ;;  %v11450_v7 = vld [vmem:[#allocation107_spill] sm:$0xff]  ;;  %v11452_v8 = vld [vmem:[#allocation108_spill] sm:$0xff]  ;;  %v11464_v31 = vld [vmem:[#allocation110_spill] sm:$0xff] }
 0x291   :  { %4334 = vmatprep.mubr.f32.mxu0 %v11425_v47  ;;  %5664 = vmatpush1.bf16.msra.mxu0 %v5663_v28  ;;  %v5667_v3 = vpack.c.bf16 %v11429_v13, %v11427_v1  ;;  %v11438_v28 = vld [vmem:[#allocation103_spill] sm:$0xff]  ;;  %v11451_v41 = vand.u32 4294901760, %v11450_v7  ;;  %v11453_v30 = vand.u32 4294901760, %v11452_v8  ;;  %v11456_v1 = vld [vmem:[#allocation109_spill] sm:$0xff]  ;;  %v11460_v0 = vld [vmem:[#allocation112_spill] sm:$0xff]  ;;  %v11478_v8 = vand.u32 4294901760, %v11225_v45 }
 0x292   :  { %2868 = vmatmul.mubr.f32.gmra.mrb[14].mxu1 %v11430_v11  ;;  %5666 = vmatprep.subr.bf16.mxu0 %v5665_v49  ;;  %v5669_v25 = vpack.c.bf16 %v11434_v42, %v11432_v27  ;;  %v11439_v62 = vand.u32 4294901760, %v11438_v28  ;;  %v11443_v49 = vld [vmem:[#allocation25_spill] sm:$0xff]  ;;  %v11457_v26 = vand.u32 4294901760, %v11456_v1  ;;  %v11461_v27 = vand.u32 4294901760, %v11460_v0  ;;  %v11462_v42 = vld [vmem:[#allocation28_spill] sm:$0xff] }
 0x293   :  { %5284 = vmatpush1.bf16.msra.mxu1 %v5283_v51  ;;  %3131 = vmatprep.mubr.f32.mxu1 %v11435_v55  ;;  %v11444_v59 = vand.u32 4294901760, %v11443_v49  ;;  %v11448_v51 = vld [vmem:[#allocation106_spill] sm:$0xff]  ;;  %v5673_v47 = vpack.c.bf16 %v11453_v30, %v11451_v41  ;;  %v11479_v30 = vld [vmem:[#allocation117_spill] sm:$0xff]  ;;  %v11482_v1 = vand.u32 4294901760, %v11228_v23  ;;  %v11485_v0 = vand.u32 4294901760, %v11231_v32 }
 0x294   :  { %v5287_v29 = vpack.c.bf16 %v11439_v62, %v11437_v53  ;;  %4338 = vmatmul.mubr.f32.gmra.mrb[14].mxu0 %v11440_v46  ;;  %5286 = vmatprep.subr.bf16.mxu1 %v5285_v39  ;;  %v11449_v61 = vand.u32 4294901760, %v11448_v51  ;;  %v11454_v39 = vld [vmem:[#allocation26_spill] sm:$0xff]  ;;  %v11465_v53 = vand.u32 4294901760, %v11464_v31  ;;  %v11466_v62 = vld [vmem:[#allocation113_spill] sm:$0xff]  ;;  %v11491_v23 = vand.u32 4294901760, %v11235_v34 }
 0x295   :  { %v5289_v52 = vpack.c.bf16 %v11444_v59, %v11442_v40  ;;  %5668 = vmatpush1.bf16.msra.mxu0 %v5667_v3  ;;  %4601 = vmatprep.mubr.f32.mxu0 %v11445_v43  ;;  %v11455_v14 = vand.u32 4294901760, %v11454_v39  ;;  %v11458_v3 = vld [vmem:[#allocation111_spill] sm:$0xff]  ;;  %v11468_v46 = vld [vmem:[#allocation114_spill] sm:$0xff]  ;;  %v11494_v32 = vand.u32 4294901760, %v11010_v24  ;;  %v11498_v34 = vand.u32 4294901760, %v11052_v35 }
 0x296   :  { %v5671_v21 = vpack.c.bf16 %v11449_v61, %v11447_v6  ;;  %5670 = vmatprep.subr.bf16.mxu0 %v5669_v25  ;;  %v11459_v11 = vand.u32 4294901760, %v11458_v3  ;;  %v11463_v25 = vand.u32 4294901760, %v11462_v42  ;;  %v11469_v38 = vand.u32 4294901760, %v11468_v46  ;;  %v11470_v49 = vld [vmem:[#allocation30_spill] sm:$0xff] }
 0x297   :  { %5288 = vmatpush1.bf16.msra.mxu1 %v5287_v29  ;;  %v5291_v13 = vpack.c.bf16 %v11457_v26, %v11455_v14  ;;  %v11467_v29 = vand.u32 4294901760, %v11466_v62  ;;  %v11471_v59 = vand.u32 4294901760, %v11470_v49  ;;  %v11474_v51 = vld [vmem:[#allocation118_spill] sm:$0xff]  ;;  %v11481_v14 = vand.u32 4294901760, %v11227_v33 }
 0x298   :  { %5290 = vmatprep.subr.bf16.mxu1 %v5289_v52  ;;  %v5293_v15 = vpack.c.bf16 %v11461_v27, %v11459_v11  ;;  %v5675_v28 = vpack.c.bf16 %v11465_v53, %v11463_v25  ;;  %v11472_v52 = vld [vmem:[#allocation115_spill] sm:$0xff]  ;;  %v11475_v61 = vand.u32 4294901760, %v11474_v51  ;;  %v11484_v3 = vand.u32 4294901760, %v11230_v58  ;;  %v11486_v27 = vld [vmem:[#allocation34_spill] sm:$0xff]  ;;  %v11511_v51 = vld [vmem:[#allocation156_spill] sm:$0xff] }
 0x299   :  { %5672 = vmatpush1.bf16.msra.mxu0 %v5671_v21  ;;  %v5677_v40 = vpack.c.bf16 %v11469_v38, %v11467_v29  ;;  %v11473_v2 = vand.u32 4294901760, %v11472_v52  ;;  %v11476_v21 = vld [vmem:[#allocation24_spill] sm:$0xff]  ;;  %v5681_v26 = vpack.c.bf16 %v11482_v1, %v11481_v14  ;;  %v11487_v45 = vand.u32 4294901760, %v11486_v27  ;;  %v11489_v25 = vld [vmem:[#allocation123_spill] sm:$0xff]  ;;  %v11523_v14 = vld [vmem:[#allocation33_spill] sm:$0xff] }
 0x29a   :  { %5674 = vmatprep.subr.bf16.mxu0 %v5673_v47  ;;  %v11477_v7 = vand.u32 4294901760, %v11476_v21  ;;  %v11480_v47 = vand.u32 4294901760, %v11479_v30  ;;  %v11488_v42 = vand.u32 4294901760, %v11233_v18  ;;  %v11490_v33 = vand.u32 4294901760, %v11489_v25  ;;  %v11519_v30 = vld [vmem:[#allocation160_spill] sm:$0xff] }
 0x29b   :  { %5292 = vmatpush1.bf16.msra.mxu1 %v5291_v13  ;;  %v5295_v6 = vpack.c.bf16 %v11473_v2, %v11471_v59  ;;  %v11483_v13 = vand.u32 4294901760, %v11229_v48  ;;  %v11492_v48 = vand.u32 4294901760, %v11236_v5  ;;  %v11493_v58 = vand.u32 4294901760, %v11003_v12 }
 0x29c   :  { %5294 = vmatprep.subr.bf16.mxu1 %v5293_v15  ;;  %v5297_v41 = vpack.c.bf16 %v11477_v7, %v11475_v61  ;;  %v5679_v39 = vpack.c.bf16 %v11480_v47, %v11478_v8  ;;  %v5301_v15 = vpack.c.bf16 %v11487_v45, %v11485_v0  ;;  %v5683_v31 = vpack.c.bf16 %v11490_v33, %v11488_v42  ;;  %v11515_v7 = vld [vmem:[#allocation36_spill] sm:$0xff]  ;;  %v11529_v45 = vld [vmem:[#allocation42_spill] sm:$0xff] }
 0x29d   :  { %5676 = vmatpush1.bf16.msra.mxu0 %v5675_v28  ;;  %v5299_v11 = vpack.c.bf16 %v11484_v3, %v11483_v13  ;;  %v5685_v53 = vpack.c.bf16 %v11492_v48, %v11491_v23  ;;  %v5303_v28 = vpack.c.bf16 %v11494_v32, %v11493_v58  ;;  %v11495_v62 = vand.u32 4294901760, %v11053_v20  ;;  %v11525_v13 = vld [vmem:[#allocation39_spill] sm:$0xff]  ;;  %v11531_v42 = vld [vmem:[#allocation54_spill] sm:$0xff] }
 0x29e   :  { %5678 = vmatprep.subr.bf16.mxu0 %v5677_v40  ;;  %v11496_v18 = vand.u32 4294901760, %v11054_v9  ;;  %v11497_v46 = vand.u32 4294901760, %v11013_v10  ;;  %v11499_v5 = vand.u32 4294901760, %v11237_v36  ;;  %v11500_v12 = vand.u32 4294901760, %v11238_v37  ;;  %v11535_v48 = vld [vmem:[#allocation166_spill] sm:$0xff]  ;;  %v11537_v32 = vld [vmem:[#allocation167_spill] sm:$0xff] }
 0x29f   :  { %5296 = vmatpush1.bf16.msra.mxu1 %v5295_v6  ;;  %v11501_v24 = vand.u32 4294901760, %v11062_v4  ;;  %v11502_v20 = vand.u32 4294901760, %v11077_v16  ;;  %v11503_v9 = vand.u32 4294901760, %v11080_v17  ;;  %v11504_v10 = vand.u32 4294901760, %v11081_v19  ;;  %v11509_v16 = vld [vmem:[#allocation155_spill] sm:$0xff]  ;;  %v11513_v19 = vld [vmem:[#allocation164_spill] sm:$0xff] }
 0x2a0   :  { %5298 = vmatprep.subr.bf16.mxu1 %v5297_v41  ;;  %v5305_v29 = vpack.c.bf16 %v11496_v18, %v11495_v62  ;;  %v5687_v38 = vpack.c.bf16 %v11498_v34, %v11497_v46  ;;  %v5689_v40 = vpack.c.bf16 %v11500_v12, %v11499_v5  ;;  %v11505_v35 = vand.u32 4294901760, %v11083_v50  ;;  %v11539_v62 = vld [vmem:[#allocation168_spill] sm:$0xff]  ;;  %v11541_v46 = vld [vmem:[#allocation63_spill] sm:$0xff] }
 0x2a1   :  { %5680 = vmatpush1.bf16.msra.mxu0 %v5679_v39  ;;  %v5307_v49 = vpack.c.bf16 %v11502_v20, %v11501_v24  ;;  %v5309_v59 = vpack.c.bf16 %v11504_v10, %v11503_v9  ;;  %v11506_v36 = vand.u32 4294901760, %v11087_v54  ;;  %v11507_v37 = vand.u32 4294901760, %v11090_v57  ;;  %v11517_v54 = vld [vmem:[#allocation159_spill] sm:$0xff]  ;;  %v11547_v20 = vld [vmem:[#allocation184_spill] sm:$0xff]  ;;  %v11549_v10 = vld [vmem:[#allocation50_spill] sm:$0xff] }
 0x2a2   :  { %5682 = vmatprep.subr.bf16.mxu0 %v5681_v26  ;;  %v11508_v4 = vand.u32 4294901760, %v11101_v22  ;;  %v11510_v6 = vand.u32 4294901760, %v11509_v16  ;;  %v11512_v17 = vand.u32 4294901760, %v11511_v51  ;;  %v11514_v21 = vand.u32 4294901760, %v11513_v19  ;;  %v11521_v22 = vld [vmem:[#allocation37_spill] sm:$0xff]  ;;  %v11557_v51 = vld [vmem:[#allocation187_spill] sm:$0xff] }
 0x2a3   :  { %5300 = vmatpush1.bf16.msra.mxu1 %v5299_v11  ;;  %v5691_v52 = vpack.c.bf16 %v11506_v36, %v11505_v35  ;;  %v11516_v50 = vand.u32 4294901760, %v11515_v7  ;;  %v11518_v8 = vand.u32 4294901760, %v11517_v54  ;;  %v11520_v57 = vand.u32 4294901760, %v11519_v30  ;;  %v11527_v11 = vld [vmem:[#allocation165_spill] sm:$0xff]  ;;  %v11551_v35 = vld [vmem:[#allocation170_spill] sm:$0xff]  ;;  %v11561_v7 = vld [vmem:[#allocation191_spill] sm:$0xff] }
 0x2a4   :  { %5302 = vmatprep.subr.bf16.mxu1 %v5301_v15  ;;  %v5693_v2 = vpack.c.bf16 %v11508_v4, %v11507_v37  ;;  %v5311_v61 = vpack.c.bf16 %v11512_v17, %v11510_v6  ;;  %v11522_v39 = vand.u32 4294901760, %v11521_v22  ;;  %v11524_v1 = vand.u32 4294901760, %v11523_v14  ;;  %v11553_v37 = vld [vmem:[#allocation185_spill] sm:$0xff] }
 0x2a5   :  { %5684 = vmatpush1.bf16.msra.mxu0 %v5683_v31  ;;  %v5313_v41 = vpack.c.bf16 %v11516_v50, %v11514_v21  ;;  %v5695_v47 = vpack.c.bf16 %v11520_v57, %v11518_v8  ;;  %v11526_v3 = vand.u32 4294901760, %v11525_v13  ;;  %v11528_v0 = vand.u32 4294901760, %v11527_v11  ;;  %v11533_v31 = vld [vmem:[#allocation46_spill] sm:$0xff]  ;;  %v11565_v30 = vld [vmem:[#allocation189_spill] sm:$0xff]  ;;  %v11573_v11 = vld [vmem:[#allocation195_spill] sm:$0xff] }
 0x2a6   :  { %5686 = vmatprep.subr.bf16.mxu0 %v5685_v53  ;;  %v5697_v26 = vpack.c.bf16 %v11524_v1, %v11522_v39  ;;  %v11530_v15 = vand.u32 4294901760, %v11529_v45  ;;  %v11532_v25 = vand.u32 4294901760, %v11531_v42  ;;  %v11534_v23 = vand.u32 4294901760, %v11533_v31  ;;  %v11569_v14 = vld [vmem:[#allocation193_spill] sm:$0xff]  ;;  %v11577_v42 = vld [vmem:[#allocation199_spill] sm:$0xff] }
 0x2a7   :  { %5304 = vmatpush1.bf16.msra.mxu1 %v5303_v28  ;;  %v5315_v27 = vpack.c.bf16 %v11528_v0, %v11526_v3  ;;  %v11536_v53 = vand.u32 4294901760, %v11535_v48  ;;  %v11538_v28 = vand.u32 4294901760, %v11537_v32  ;;  %v11540_v18 = vand.u32 4294901760, %v11539_v62  ;;  %v11581_v48 = vld [vmem:[#allocation197_spill] sm:$0xff] }
 0x2a8   :  { %5306 = vmatprep.subr.bf16.mxu1 %v5305_v29  ;;  %v5317_v33 = vpack.c.bf16 %v11532_v25, %v11530_v15  ;;  %v11542_v34 = vand.u32 4294901760, %v11541_v46  ;;  %v11552_v36 = vand.u32 4294901760, %v11551_v35  ;;  %v11554_v4 = vand.u32 4294901760, %v11553_v37  ;;  %v11585_v62 = vld [vmem:[#allocation201_spill] sm:$0xff]  ;;  %v11597_v35 = vld [vmem:[#allocation35_spill] sm:$0xff] }
 0x2a9   :  { %5688 = vmatpush1.bf16.msra.mxu0 %v5687_v38  ;;  %v5699_v58 = vpack.c.bf16 %v11536_v53, %v11534_v23  ;;  %v5701_v29 = vpack.c.bf16 %v11540_v18, %v11538_v28  ;;  %v11543_v38 = vld [vmem:[#allocation169_spill] sm:$0xff]  ;;  %v11558_v17 = vand.u32 4294901760, %v11557_v51  ;;  %v11562_v50 = vand.u32 4294901760, %v11561_v7  ;;  %v11605_v51 = vld [vmem:[#allocation38_spill] sm:$0xff] }
 0x2aa   :  { %5690 = vmatprep.subr.bf16.mxu0 %v5689_v40  ;;  %v11544_v5 = vand.u32 4294901760, %v11543_v38  ;;  %v11545_v40 = vld [vmem:[#allocation183_spill] sm:$0xff]  ;;  %v11566_v57 = vand.u32 4294901760, %v11565_v30  ;;  %v11570_v1 = vand.u32 4294901760, %v11569_v14  ;;  %v11574_v0 = vand.u32 4294901760, %v11573_v11  ;;  %v11600_v37 = vld [vmem:[#allocation253_spill] sm:$0xff] }
 0x2ab   :  { %5308 = vmatpush1.bf16.msra.mxu1 %v5307_v49  ;;  %v11546_v24 = vand.u32 4294901760, %v11545_v40  ;;  %v11548_v49 = vand.u32 4294901760, %v11547_v20  ;;  %v11578_v25 = vand.u32 4294901760, %v11577_v42  ;;  %v11582_v53 = vand.u32 4294901760, %v11581_v48  ;;  %v11589_v38 = vld [vmem:[#allocation203_spill] sm:$0xff]  ;;  %v11593_v20 = vld [vmem:[#allocation205_spill] sm:$0xff] }
 0x2ac   :  { %5310 = vmatprep.subr.bf16.mxu1 %v5309_v59  ;;  %v5319_v12 = vpack.c.bf16 %v11544_v5, %v11542_v34  ;;  %v11550_v59 = vand.u32 4294901760, %v11549_v10  ;;  %v11586_v18 = vand.u32 4294901760, %v11585_v62  ;;  %v11590_v5 = vand.u32 4294901760, %v11589_v38  ;;  %v11610_v7 = vld [vmem:[#allocation254_spill] sm:$0xff]  ;;  %v11620_v14 = vld [vmem:[#allocation272_spill] sm:$0xff]  ;;  %v11642_v62 = vld [vmem:[#allocation19_spill] sm:$0xff] }
 0x2ad   :  { %5692 = vmatpush1.bf16.msra.mxu0 %v5691_v52  ;;  %v5321_v9 = vpack.c.bf16 %v11548_v49, %v11546_v24  ;;  %v11594_v49 = vand.u32 4294901760, %v11593_v20  ;;  %v11615_v30 = vld [vmem:[#allocation62_spill] sm:$0xff]  ;;  %v11630_v42 = vld [vmem:[#allocation92_spill] sm:$0xff]  ;;  %v11652_v20 = vld [vmem:[#allocation139_spill] sm:$0xff] }
 0x2ae   :  { %5694 = vmatprep.subr.bf16.mxu0 %v5693_v2  ;;  %v5703_v52 = vpack.c.bf16 %v11552_v36, %v11550_v59  ;;  %v11555_v2 = vld [vmem:[#allocation186_spill] sm:$0xff]  ;;  %v11598_v36 = vld [vmem:[#allocation243_spill] sm:$0xff]  ;;  %v11647_v38 = vld [vmem:[#allocation104_spill] sm:$0xff] }
 0x2af   :  { %5312 = vmatpush1.bf16.msra.mxu1 %v5311_v61  ;;  %v11556_v16 = vand.u32 4294901760, %v11555_v2  ;;  %v11559_v61 = vld [vmem:[#allocation188_spill] sm:$0xff]  ;;  %v11602_v2 = vld [vmem:[#allocation249_spill] sm:$0xff]  ;;  %v11625_v11 = vld [vmem:[#allocation270_spill] sm:$0xff] }
 0x2b0   :  { %5314 = vmatprep.subr.bf16.mxu1 %v5313_v41  ;;  %v11560_v19 = vand.u32 4294901760, %v11559_v61  ;;  %v11563_v41 = vld [vmem:[#allocation192_spill] sm:$0xff]  ;;  %v11607_v61 = vld [vmem:[#allocation43_spill] sm:$0xff]  ;;  %v11636_v48 = vld [vmem:[#allocation82_spill] sm:$0xff] }
 0x2b1   :  { %5696 = vmatpush1.bf16.msra.mxu0 %v5695_v47  ;;  %v5705_v6 = vpack.c.bf16 %v11556_v16, %v11554_v4  ;;  %v11564_v54 = vand.u32 4294901760, %v11563_v41  ;;  %v11567_v47 = vld [vmem:[#allocation190_spill] sm:$0xff]  ;;  %v11601_v4 = vld [vmem:[#allocation21_spill] sm:$0xff]  ;;  %v11603_v16 = vld [vmem:[#allocation40_spill] sm:$0xff] }
 0x2b2   :  { %5698 = vmatprep.subr.bf16.mxu0 %v5697_v26  ;;  %v5323_v21 = vpack.c.bf16 %v11560_v19, %v11558_v17  ;;  %v11568_v22 = vand.u32 4294901760, %v11567_v47  ;;  %v11571_v26 = vld [vmem:[#allocation194_spill] sm:$0xff]  ;;  %v11606_v17 = vld [vmem:[#allocation252_spill] sm:$0xff]  ;;  %v11617_v47 = vld [vmem:[#allocation71_spill] sm:$0xff] }
 0x2b3   :  { %5316 = vmatpush1.bf16.msra.mxu1 %v5315_v27  ;;  %v5325_v8 = vpack.c.bf16 %v11564_v54, %v11562_v50  ;;  %v11572_v13 = vand.u32 4294901760, %v11571_v26  ;;  %v11575_v27 = vld [vmem:[#allocation196_spill] sm:$0xff]  ;;  %v11611_v50 = vld [vmem:[#allocation57_spill] sm:$0xff]  ;;  %v11622_v26 = vld [vmem:[#allocation266_spill] sm:$0xff] }
 0x2b4   :  { %5318 = vmatprep.subr.bf16.mxu1 %v5317_v33  ;;  %v5707_v39 = vpack.c.bf16 %v11568_v22, %v11566_v57  ;;  %v11576_v45 = vand.u32 4294901760, %v11575_v27  ;;  %v11579_v33 = vld [vmem:[#allocation200_spill] sm:$0xff]  ;;  %v11613_v54 = vld [vmem:[#allocation53_spill] sm:$0xff]  ;;  %v11627_v27 = vld [vmem:[#allocation79_spill] sm:$0xff] }
 0x2b5   :  { %5700 = vmatpush1.bf16.msra.mxu0 %v5699_v58  ;;  %v5709_v3 = vpack.c.bf16 %v11572_v13, %v11570_v1  ;;  %v11580_v31 = vand.u32 4294901760, %v11579_v33  ;;  %v11583_v58 = vld [vmem:[#allocation198_spill] sm:$0xff]  ;;  %v11608_v19 = vld [vmem:[#allocation260_spill] sm:$0xff]  ;;  %v11618_v22 = vld [vmem:[#allocation261_spill] sm:$0xff] }
 0x2b6   :  { %5702 = vmatprep.subr.bf16.mxu0 %v5701_v29  ;;  %v5327_v15 = vpack.c.bf16 %v11576_v45, %v11574_v0  ;;  %v11584_v32 = vand.u32 4294901760, %v11583_v58  ;;  %v11587_v29 = vld [vmem:[#allocation202_spill] sm:$0xff]  ;;  %v11612_v41 = vld [vmem:[#allocation264_spill] sm:$0xff]  ;;  %v11626_v0 = vld [vmem:[#allocation73_spill] sm:$0xff] }
 0x2b7   :  { %5320 = vmatpush1.bf16.msra.mxu1 %v5319_v12  ;;  %v5329_v23 = vpack.c.bf16 %v11580_v31, %v11578_v25  ;;  %v11588_v46 = vand.u32 4294901760, %v11587_v29  ;;  %v11591_v12 = vld [vmem:[#allocation204_spill] sm:$0xff]  ;;  %v11623_v13 = vld [vmem:[#allocation70_spill] sm:$0xff]  ;;  %v11631_v25 = vld [vmem:[#allocation75_spill] sm:$0xff] }
 0x2b8   :  { %5322 = vmatprep.subr.bf16.mxu1 %v5321_v9  ;;  %v5711_v28 = vpack.c.bf16 %v11584_v32, %v11582_v53  ;;  %v11592_v40 = vand.u32 4294901760, %v11591_v12  ;;  %v11595_v9 = vld [vmem:[#allocation206_spill] sm:$0xff]  ;;  %v11616_v57 = vld [vmem:[#allocation268_spill] sm:$0xff]  ;;  %v11633_v31 = vld [vmem:[#allocation83_spill] sm:$0xff] }
 0x2b9   :  { %5704 = vmatpush1.bf16.msra.mxu0 %v5703_v52  ;;  %v5713_v34 = vpack.c.bf16 %v11588_v46, %v11586_v18  ;;  %v11596_v10 = vand.u32 4294901760, %v11595_v9  ;;  %v11599_v52 = vld [vmem:[#allocation163_spill] sm:$0xff]  ;;  %v11621_v1 = vld [vmem:[#allocation60_spill] sm:$0xff]  ;;  %v11628_v45 = vld [vmem:[#allocation66_spill] sm:$0xff] }
 0x2ba   :  { %5706 = vmatprep.subr.bf16.mxu0 %v5705_v6  ;;  %v5331_v24 = vpack.c.bf16 %v11592_v40, %v11590_v5  ;;  %v11604_v6 = vld [vmem:[#allocation256_spill] sm:$0xff]  ;;  %v11632_v33 = vld [vmem:[#allocation86_spill] sm:$0xff]  ;;  %v11637_v53 = vld [vmem:[#allocation99_spill] sm:$0xff] }
 0x2bb   :  { %5324 = vmatpush1.bf16.msra.mxu1 %v5323_v21  ;;  %v5715_v59 = vpack.c.bf16 %v11596_v10, %v11594_v49  ;;  %v11609_v21 = vld [vmem:[#allocation49_spill] sm:$0xff]  ;;  %v11639_v58 = vld [vmem:[#allocation91_spill] sm:$0xff]  ;;  %v11640_v32 = vld [vmem:[#allocation98_spill] sm:$0xff] }
 0x2bc   :  { %5326 = vmatprep.subr.bf16.mxu1 %v5325_v8  ;;  %v11614_v8 = vld [vmem:[#allocation259_spill] sm:$0xff]  ;;  %v11644_v29 = vld [vmem:[#allocation96_spill] sm:$0xff]  ;;  %v11649_v12 = vld [vmem:[#allocation130_spill] sm:$0xff] }
 0x2bd   :  { %5708 = vmatpush1.bf16.msra.mxu0 %v5707_v39  ;;  %v11619_v39 = vld [vmem:[#allocation78_spill] sm:$0xff]  ;;  %v11643_v18 = vld [vmem:[#allocation95_spill] sm:$0xff]  ;;  %v11645_v46 = vld [vmem:[#allocation172_spill] sm:$0xff] }
 0x2be   :  { %5710 = vmatprep.subr.bf16.mxu0 %v5709_v3  ;;  %v11624_v3 = vld [vmem:[#allocation67_spill] sm:$0xff]  ;;  %v11653_v49 = vld [vmem:[#allocation146_spill] sm:$0xff]  ;;  %v11654_v9 = vld [vmem:[#allocation153_spill] sm:$0xff] }
 0x2bf   :  { %5328 = vmatpush1.bf16.msra.mxu1 %v5327_v15  ;;  %v11629_v15 = vld [vmem:[#allocation87_spill] sm:$0xff]  ;;  %v11655_v10 = vld [vmem:[#allocation134_spill] sm:$0xff] }
 0x2c0   :  { %5330 = vmatprep.subr.bf16.mxu1 %v5329_v23  ;;  %v11635_v23 = vld [vmem:[#allocation93_spill] sm:$0xff]  ;;  %v11648_v5 = vld [vmem:[#allocation171_spill] sm:$0xff] }
 0x2c1   :  { %5712 = vmatpush1.bf16.msra.mxu0 %v5711_v28  ;;  %v11641_v28 = vld [vmem:[#allocation100_spill] sm:$0xff]  ;;  %v11650_v40 = vld [vmem:[#allocation131_spill] sm:$0xff] }
 0x2c2   :  { %5714 = vmatprep.subr.bf16.mxu0 %v5713_v34  ;;  %v11646_v34 = vld [vmem:[#allocation125_spill] sm:$0xff] }
 0x2c3   :  { %5332 = vmatpush1.bf16.msra.mxu1 %v5331_v24  ;;  %v11651_v24 = vld [vmem:[#allocation173_spill] sm:$0xff] }
 0x2c4   :  { %5334 = vmatprep.subr.bf16.mxu1 %v11597_v35  ;;  %v11657_v35 = vld [vmem:[#allocation143_spill] sm:$0xff] }
 0x2c5   :  { %5716 = vmatpush1.bf16.msra.mxu0 %v5715_v59  ;;  %v11656_v59 = vld [vmem:[#allocation136_spill] sm:$0xff] }
 0x2c6   :  { %3133 = vmatmul.mubr.f32.vlgmr.msra.gmra.mrb[8].mxu1 %v11598_v36  ;;  %5718 = vmatprep.subr.bf16.mxu0 %v11599_v52  ;;  %v11658_v52 = vld [vmem:[#allocation148_spill] sm:$0xff] }
 0x2c7   :  { %3139 = vmatprep.mubr.f32.mxu1 %v11600_v37  ;;  %5336 = vmatpush1.bf16.msra.mxu1 %v11601_v4  ;;  %v11659_v4 = vld [vmem:[#allocation154_spill] sm:$0xff] }
 0x2c8   :  { %4603 = vmatmul.mubr.f32.vlgmr.msra.gmra.mrb[8].mxu0 %v11602_v2  ;;  %5338 = vmatprep.subr.bf16.mxu1 %v11603_v16  ;;  %v11660_v16 = vld [vmem:[#allocation142_spill] sm:$0xff] }
 0x2c9   :  { %4609 = vmatprep.mubr.f32.mxu0 %v11604_v6  ;;  %5720 = vmatpush1.bf16.msra.mxu0 %v11605_v51  ;;  %v11661_v51 = vld [vmem:[#allocation161_spill] sm:$0xff] }
 0x2ca   :  { %3141 = vmatmul.mubr.f32.gmra.mrb[10].mxu1 %v11606_v17  ;;  %5722 = vmatprep.subr.bf16.mxu0 %v11607_v61  ;;  %v11662_v61 = vld [vmem:[#allocation162_spill] sm:$0xff] }
 0x2cb   :  { %3147 = vmatprep.mubr.f32.mxu1 %v11608_v19  ;;  %5340 = vmatpush1.bf16.msra.mxu1 %v11609_v21  ;;  %v11663_v21 = vld [vmem:[#allocation150_spill] sm:$0xff] }
 0x2cc   :  { %4611 = vmatmul.mubr.f32.gmra.mrb[10].mxu0 %v11610_v7  ;;  %5342 = vmatprep.subr.bf16.mxu1 %v11611_v50  ;;  %v11664_v50 = vld [vmem:[#allocation157_spill] sm:$0xff] }
 0x2cd   :  { %4617 = vmatprep.mubr.f32.mxu0 %v11612_v41  ;;  %5724 = vmatpush1.bf16.msra.mxu0 %v11613_v54  ;;  %v11665_v54 = vld [vmem:[#allocation158_spill] sm:$0xff] }
 0x2ce   :  { %3149 = vmatmul.mubr.f32.gmra.mrb[12].mxu1 %v11614_v8  ;;  %5726 = vmatprep.subr.bf16.mxu0 %v11615_v30  ;;  %v11666_v30 = vld [vmem:[#allocation175_spill] sm:$0xff] }
 0x2cf   :  { %3155 = vmatprep.mubr.f32.mxu1 %v11616_v57  ;;  %5344 = vmatpush1.bf16.msra.mxu1 %v11617_v47  ;;  %v11667_v47 = vld [vmem:[#allocation174_spill] sm:$0xff] }
 0x2d0   :  { %4619 = vmatmul.mubr.f32.gmra.mrb[12].mxu0 %v11618_v22  ;;  %5346 = vmatprep.subr.bf16.mxu1 %v11619_v39  ;;  %v11668_v39 = vld [vmem:[#allocation176_spill] sm:$0xff] }
 0x2d1   :  { %4625 = vmatprep.mubr.f32.mxu0 %v11620_v14  ;;  %5728 = vmatpush1.bf16.msra.mxu0 %v11621_v1  ;;  %v11669_v1 = vld [vmem:[#allocation177_spill] sm:$0xff] }
 0x2d2   :  { %3157 = vmatmul.mubr.f32.gmra.mrb[14].mxu1 %v11622_v26  ;;  %5730 = vmatprep.subr.bf16.mxu0 %v11623_v13  ;;  %v11670_v13 = vld [vmem:[#allocation179_spill] sm:$0xff] }
 0x2d3   :  { %5348 = vmatpush1.bf16.msra.mxu1 %v11624_v3  ;;  %3292 = vmatprep.mubr.f32.mxu1 %v11435_v55  ;;  %v11634_v55 = vld [vmem:[#allocation89_spill] sm:$0xff]  ;;  %v1843_v3 = vld [vmem:[#allocation8 + $0x28] sm:$0xff] }
 0x2d4   :  { %4627 = vmatmul.mubr.f32.gmra.mrb[14].mxu0 %v11625_v11  ;;  %5350 = vmatprep.subr.bf16.mxu1 %v11626_v0 }
 0x2d5   :  { %5732 = vmatpush1.bf16.msra.mxu0 %v11627_v27  ;;  %4762 = vmatprep.mubr.f32.mxu0 %v11445_v43  ;;  %v11638_v43 = vld [vmem:[#allocation102_spill] sm:$0xff] }
 0x2d6   :  { %5734 = vmatprep.subr.bf16.mxu0 %v11628_v45 }
 0x2d7   :  { %5352 = vmatpush1.bf16.msra.mxu1 %v11629_v15 }
 0x2d8   :  { %5354 = vmatprep.subr.bf16.mxu1 %v11630_v42 }
 0x2d9   :  { %5736 = vmatpush1.bf16.msra.mxu0 %v11631_v25  ;;  %v1851_v25 = vmul.f32 0.2, %v1843_v3 }
 0x2da   :  { %5738 = vmatprep.subr.bf16.mxu0 %v11632_v33  ;;  %v1844_v33 = vld [vmem:[#allocation8 + $0x30] sm:$0xff] }
 0x2db   :  { %5356 = vmatpush1.bf16.msra.mxu1 %v11633_v31 }
 0x2dc   :  { %5358 = vmatprep.subr.bf16.mxu1 %v11634_v55 }
 0x2dd   :  { %5740 = vmatpush1.bf16.msra.mxu0 %v11635_v23  ;;  %v1845_v23 = vld [vmem:[#allocation8 + $0x38] sm:$0xff] }
 0x2de   :  { %5742 = vmatprep.subr.bf16.mxu0 %v11636_v48 }
 0x2df   :  { %5360 = vmatpush1.bf16.msra.mxu1 %v11637_v53 }
 0x2e0   :  { %5362 = vmatprep.subr.bf16.mxu1 %v11638_v43 }
 0x2e1   :  { %5744 = vmatpush1.bf16.msra.mxu0 %v11639_v58 }
 0x2e2   :  { %5746 = vmatprep.subr.bf16.mxu0 %v11640_v32  ;;  %v1852_v32 = vmul.f32 0.2, %v1844_v33 }
 0x2e3   :  { %5364 = vmatpush1.bf16.msra.mxu1 %v11641_v28 }
 0x2e4   :  { %5366 = vmatprep.subr.bf16.mxu1 %v11642_v62 }
 0x2e5   :  { %5748 = vmatpush1.bf16.msra.mxu0 %v11643_v18  ;;  %v1853_v18 = vmul.f32 0.2, %v1845_v23 }
 0x2e6   :  { %5750 = vmatprep.subr.bf16.mxu0 %v11644_v29 }
 0x2e7   :  { %5368 = vmatpush1.bf16.msra.mxu1 %v11645_v46 }
 0x2e8   :  { %5370 = vmatprep.subr.bf16.mxu1 %v11646_v34 }
 0x2e9   :  { %5752 = vmatpush1.bf16.msra.mxu0 %v11647_v38 }
 0x2ea   :  { %5754 = vmatprep.subr.bf16.mxu0 %v11648_v5 }
 0x2eb   :  { %5372 = vmatpush1.bf16.msra.mxu1 %v11649_v12 }
 0x2ec   :  { %5374 = vmatprep.subr.bf16.mxu1 %v11650_v40 }
 0x2ed   :  { %5756 = vmatpush1.bf16.msra.mxu0 %v11651_v24 }
 0x2ee   :  { %5758 = vmatprep.subr.bf16.mxu0 %v11652_v20 }
 0x2ef   :  { %5376 = vmatpush1.bf16.msra.mxu1 %v11653_v49 }
 0x2f0   :  { %5378 = vmatprep.subr.bf16.mxu1 %v11654_v9 }
 0x2f1   :  { %5760 = vmatpush1.bf16.msra.mxu0 %v11655_v10 }
 0x2f2   :  { %5762 = vmatprep.subr.bf16.mxu0 %v11656_v59 }
 0x2f3   :  { %5380 = vmatpush1.bf16.msra.mxu1 %v11657_v35 }
 0x2f4   :  { %5382 = vmatprep.subr.bf16.mxu1 %v11658_v52 }
 0x2f5   :  { %5764 = vmatpush1.bf16.msra.mxu0 %v11659_v4 }
 0x2f6   :  { %5766 = vmatprep.subr.bf16.mxu0 %v11660_v16 }
 0x2f7   :  { %5384 = vmatpush1.bf16.msra.mxu1 %v11661_v51 }
 0x2f8   :  { %5386 = vmatprep.subr.bf16.mxu1 %v11662_v61 }
 0x2f9   :  { %5768 = vmatpush1.bf16.msra.mxu0 %v11663_v21 }
 0x2fa   :  { %5770 = vmatprep.subr.bf16.mxu0 %v11664_v50 }
 0x2fb   :  { %5388 = vmatpush1.bf16.msra.mxu1 %v11665_v54 }
 0x2fc   :  { %5390 = vmatprep.subr.bf16.mxu1 %v11666_v30 }
 0x2fd   :  { %5772 = vmatpush1.bf16.msra.mxu0 %v11667_v47 }
 0x2fe   :  { %5774 = vmatprep.subr.bf16.mxu0 %v11668_v39 }
 0x2ff   :  { %5392 = vmatpush1.bf16.msra.mxu1 %v11669_v1 }
 0x300   :  { %5394 = vmatprep.subr.bf16.mxu1 %v11670_v13 }
 0x301   :  { %5776 = vmatpush1.bf16.msra.mxu0 %v11361_v56  ;;  %v1839_v56 = vld [vmem:[#allocation8 + $0x8] sm:$0xff] }
 0x302   :  { %5778 = vmatprep.subr.bf16.mxu0 %v11362_v44 }
 0x303   :  { %5396 = vmatpush1.bf16.msra.mxu1 %v11365_v60  ;;  %v1838_v60 = vld [vmem:[#allocation8] sm:$0xff] }
 0x304   :  { %v1846_v44 = vmul.f32 0.2, %v1838_v60 }
 0x305   :  { %5780 = vmatpush1.bf16.msra.mxu0 %v11370_v63  ;;  %v1847_v63 = vmul.f32 0.2, %v1839_v56 }
 0x306   :  { %3294 = vmatmul.mubr.f32.vlgmr.msra.gmra.mrb[8].mxu1 %v11598_v36  ;;  %v1840_v36 = vld [vmem:[#allocation8 + $0x10] sm:$0xff] }
 0x307   :  { %3300 = vmatprep.mubr.f32.mxu1 %v11600_v37  ;;  %v1841_v37 = vld [vmem:[#allocation8 + $0x18] sm:$0xff] }
 0x308   :  { %4764 = vmatmul.mubr.f32.vlgmr.msra.gmra.mrb[8].mxu0 %v11602_v2 }
 0x309   :  { %4770 = vmatprep.mubr.f32.mxu0 %v11604_v6 }
 0x30a   :  { %3302 = vmatmul.mubr.f32.gmra.mrb[10].mxu1 %v11606_v17 }
 0x30b   :  { %3308 = vmatprep.mubr.f32.mxu1 %v11608_v19  ;;  %v1848_v19 = vmul.f32 0.2, %v1840_v36 }
 0x30c   :  { %4772 = vmatmul.mubr.f32.gmra.mrb[10].mxu0 %v11610_v7 }
 0x30d   :  { %4778 = vmatprep.mubr.f32.mxu0 %v11612_v41 }
 0x30e   :  { %3310 = vmatmul.mubr.f32.gmra.mrb[12].mxu1 %v11614_v8  ;;  %v1849_v8 = vmul.f32 0.2, %v1841_v37 }
 0x30f   :  { %3316 = vmatprep.mubr.f32.mxu1 %v11616_v57  ;;  %v1842_v57 = vld [vmem:[#allocation8 + $0x20] sm:$0xff] }
 0x310   :  { %4780 = vmatmul.mubr.f32.gmra.mrb[12].mxu0 %v11618_v22  ;;  %v1850_v45 = vmul.f32 0.2, %v1842_v57 }
 0x311   :  { %4786 = vmatprep.mubr.f32.mxu0 %v11620_v14 }
 0x312   :  { %3318 = vmatmul.mubr.f32.gmra.mrb[14].mxu1 %v11622_v26 }
 0x314   :  { %4788 = vmatmul.mubr.f32.gmra.mrb[14].mxu0 %v11625_v11 }
 0x3d9   :  { %v3295_v2 = vpop.f32.mrb[8].mxu1 }
 0x3da   :  { %v5781_v6 = vadd.f32 %v3295_v2, %v1846_v44  ;;  %v3297_v17 = vpop.f32.mrb[9].mxu1 }
 0x3db   :  { %v4765_v7 = vpop.f32.mrb[8].mxu0  ;;  %v5783_v41 = vadd.f32 %v3297_v17, %v1847_v63 }
 0x3dc   :  { %v5782_v22 = vadd.f32 %v5781_v6, %v4765_v7  ;;  %v4767_v14 = vpop.f32.mrb[9].mxu0 }
 0x3dd   :  { %v5784_v26 = vadd.f32 %v5783_v41, %v4767_v14  ;;  %v3303_v0 = vpop.f32.mrb[10].mxu1 }
 0x3de   :  { %4794 = vst [vmem:[#allocation10] sm:$0xff] %v5782_v22  ;;  %v5785_v11 = vadd.f32 %v3303_v0, %v1848_v19  ;;  %v3305_v27 = vpop.f32.mrb[11].mxu1 }
 0x3df   :  { %4795 = vst [vmem:[#allocation10 + $0x8] sm:$0xff] %v5784_v26  ;;  %v4773_v15 = vpop.f32.mrb[10].mxu0  ;;  %v5787_v42 = vadd.f32 %v3305_v27, %v1849_v8 }
 0x3e0   :  { %v5786_v31 = vadd.f32 %v5785_v11, %v4773_v15  ;;  %v4775_v55 = vpop.f32.mrb[11].mxu0 }
 0x3e1   :  { %v5788_v48 = vadd.f32 %v5787_v42, %v4775_v55  ;;  %v3311_v53 = vpop.f32.mrb[12].mxu1 }
 0x3e2   :  { %4796 = vst [vmem:[#allocation10 + $0x10] sm:$0xff] %v5786_v31  ;;  %v5789_v43 = vadd.f32 %v3311_v53, %v1850_v45  ;;  %v3313_v58 = vpop.f32.mrb[13].mxu1 }
 0x3e3   :  { %4797 = vst [vmem:[#allocation10 + $0x18] sm:$0xff] %v5788_v48  ;;  %v4781_v28 = vpop.f32.mrb[12].mxu0  ;;  %v5791_v62 = vadd.f32 %v3313_v58, %v1851_v25 }
 0x3e4   :  { %v5790_v29 = vadd.f32 %v5789_v43, %v4781_v28  ;;  %v4783_v46 = vpop.f32.mrb[13].mxu0 }
 0x3e5   :  { %v5792_v34 = vadd.f32 %v5791_v62, %v4783_v46  ;;  %v3319_v38 = vpop.f32.mrb[14].mxu1 }
 0x3e6   :  { %4798 = vst [vmem:[#allocation10 + $0x20] sm:$0xff] %v5790_v29  ;;  %v5793_v5 = vadd.f32 %v3319_v38, %v1852_v32  ;;  %v3321_v12 = vpop.f32.mrb[15].mxu1 }
 0x3e7   :  { %4799 = vst [vmem:[#allocation10 + $0x28] sm:$0xff] %v5792_v34  ;;  %v4789_v40 = vpop.f32.mrb[14].mxu0  ;;  %v5795_v24 = vadd.f32 %v3321_v12, %v1853_v18 }
 0x3e8   :  { %v5794_v20 = vadd.f32 %v5793_v5, %v4789_v40  ;;  %v4791_v49 = vpop.f32.mrb[15].mxu0 }
 0x3e9   :  { %v5796_v9 = vadd.f32 %v5795_v24, %v4791_v49 }
 0x3ea   :  { %4800 = vst [vmem:[#allocation10 + $0x30] sm:$0xff] %v5794_v20 }
 0x3eb   :  { %4801 = vst [vmem:[#allocation10 + $0x38] sm:$0xff] %v5796_v9 }
 0x3ec   :  { %6068 = shalt.err (!%p6065_p8)
}
 0x3ed   :  { %s6069_s19 = scalar_lea.hbm %s9610_s4, 1024 }
 0x3ee   :  { %p6070_p9 = scmp.ne.s32.totalorder %s9610_s4, %s6069_s19  ;;  %p6073_p10 = scmp.lt.u32.totalorder %s6069_s19, %s9610_s4 }
 0x3f0   :  { %p6075_p11 = pnand %p6073_p10, %p6070_p9 }
 0x3f2   :  { %6078 = shalt.err (!%p6075_p11)
}
 0x3f3   :  { %4813 = dma.vmem_to_hbm [thread:$0]  %s4808_s15, 1024, %s9610_s4, [#allocation4], %s6088_s25, %s6088_s25, %s6089_s26  }
 0x3f4   :  { %6085 = dma.done.wait [#allocation4], 1024  }
 0x3f5   :  { %6086 = vsyncadd [#allocation4], 4294966272 }
 0x3f6   :  { %4817 = vsyncpa [#allocation3], 1 }
 0x3f7   :  { %4818 = vsyncpa [#allocation6], 1 }
 0x3f8   :  { %4819 = vsyncpa [#allocation9], 1 }
 0x3f9   :  { %4820 = vsyncpa [#allocation4], 1 }

</bundles_post_ra>
